<compile_context>
chip_gen: v7x
topology: tpu7x:2x2x1
jax: 0.10.0
libtpu: 0.0.40
codegen_flags: <defaults>
</compile_context>

<pallas_src>
import jax
import jax.numpy as jnp
from jax.experimental import pallas as pl
from jax.experimental.pallas import tpu as pltpu


N = 2
C_IN = 166
C_OUT = 209
L_IN = 29
L_OUT = L_IN - 2           # (L_IN - 1)*1 - 2*1 + 1*(1 - 1) + 1 = 27
SLOPE = 2.125


def _kernel(x_ref, w_ref, b_ref, o_ref):
    # x_ref: (N, C_IN, L_IN)   f32  -- native PyTorch NCL layout, uncropped
    # w_ref: (C_IN, C_OUT)     f32  -- PyTorch ConvTranspose1d weight, kernel=1 axis squeezed
    # b_ref: (C_OUT, 1)        f32
    # o_ref: (N, C_OUT, L_OUT) f32  -- PyTorch output layout, stored directly (no wrapper transpose)
    wt = jnp.transpose(w_ref[...])        # (C_OUT, C_IN); hoisted: one XLU transpose per call
    b = b_ref[...]                        # (C_OUT, 1)
    for n in range(N):                    # static unroll; still a single kernel invocation
        xc = x_ref[n, :, 1:L_IN - 1]      # (C_IN, L_OUT): padding=1 crop, done in-kernel
        h1 = jnp.dot(
            wt, xc,
            preferred_element_type=jnp.float32,
            precision=jax.lax.Precision.HIGHEST,
        ) + b                                                      # (C_OUT, L_OUT)
        h4 = jnp.where(h1 > 0, h1, h1 * SLOPE)
        # softmax over the length axis (PyTorch dim=-1 == lane axis in this layout)
        m = jnp.max(h4, axis=-1, keepdims=True)                    # (C_OUT, 1)
        e = jnp.exp(h4 - m)                                        # (C_OUT, L_OUT)
        s = jnp.sum(e, axis=-1, keepdims=True)                     # (C_OUT, 1)
        o_ref[n] = (e / s).astype(o_ref.dtype)                     # exact normalization


@jax.jit
def model_forward(x, weight, bias):
    """x: (N, C_IN, L_IN) f32; weight: (C_IN, C_OUT) f32 (PyTorch (C_IN, C_OUT, 1) squeezed);
    bias: (C_OUT,) f32.  Returns (N, C_OUT, L_OUT) f32 in the PyTorch output layout."""
    b2d = bias.reshape(C_OUT, 1)          # tiny (836 B) reshape; all other layout work is in-kernel
    return pl.pallas_call(
        _kernel,
        out_shape=jax.ShapeDtypeStruct((N, C_OUT, L_OUT), jnp.float32),
        in_specs=[
            pl.BlockSpec(memory_space=pltpu.MemorySpace.VMEM),
            pl.BlockSpec(memory_space=pltpu.MemorySpace.VMEM),
            pl.BlockSpec(memory_space=pltpu.MemorySpace.VMEM),
        ],
        out_specs=pl.BlockSpec(memory_space=pltpu.MemorySpace.VMEM),
        cost_estimate=pl.CostEstimate(
            flops=2 * N * C_OUT * C_IN * L_OUT,                    # ~3.75e6
            transcendentals=N * C_OUT * L_OUT,                     # exp count
            bytes_accessed=(N * C_IN * L_IN + C_IN * C_OUT + C_OUT
                            + N * C_OUT * L_OUT) * 4,              # ~2.2e5
        ),
    )(x, weight, b2d)


if __name__ == "__main__":
    key = jax.random.PRNGKey(0)
    kx, kw, kb = jax.random.split(key, 3)

    # Input matching the module: (2, 166, 29)
    x = jax.random.normal(kx, (N, C_IN, L_IN), dtype=jnp.float32)

    # Deterministic parameter init (PyTorch-style uniform bound = 1/sqrt(fan_in * k)):
    bound = 1.0 / (C_IN ** 0.5)
    # PyTorch ConvTranspose1d weight shape is (C_IN, C_OUT, 1); stored here as (C_IN, C_OUT).
    weight = jax.random.uniform(kw, (C_IN, C_OUT), jnp.float32, -bound, bound)
    bias = jax.random.uniform(kb, (C_OUT,), jnp.float32, -bound, bound)

    out = jax.block_until_ready(model_forward(x, weight, bias))
    assert out.shape == (N, C_OUT, L_OUT)

    # Pure-JAX reference (same math; HIGHEST-precision matmul to match the kernel's f32 path).
    h1_ref = jnp.einsum(
        "co,ncl->nol", weight, x[:, :, 1:L_IN - 1],
        precision=jax.lax.Precision.HIGHEST,
    ) + bias[None, :, None]
    h4_ref = jnp.where(h1_ref > 0, h1_ref, h1_ref * SLOPE)
    ref = jax.nn.softmax(h4_ref, axis=-1)

    assert jnp.allclose(out, ref, atol=5e-5, rtol=5e-5), float(jnp.max(jnp.abs(out - ref)))

    print("KERNEL_OK")
</pallas_src>

<mosaic_0001>
module attributes {stable_mosaic.version = 11 : i64} {
  func.func @_kernel(%arg0: memref<2x166x29xf32, #tpu.memory_space<vmem>>, %arg1: memref<166x209xf32, #tpu.memory_space<vmem>>, %arg2: memref<209x1xf32, #tpu.memory_space<vmem>>, %arg3: memref<2x209x27xf32, #tpu.memory_space<vmem>>) attributes {dimension_semantics = [], scalar_prefetch = 0 : i64, scratch_operands = 0 : i64, tpu.core_type = #tpu.core_type<tc>} {
    %c0 = arith.constant 0 : index
    %c0_0 = arith.constant 0 : index
    %0 = vector.load %arg1[%c0, %c0_0] : memref<166x209xf32, #tpu.memory_space<vmem>>, vector<166x209xf32>
    %1 = tpu.transpose %0, [1, 0] : vector<166x209xf32> -> vector<209x166xf32>
    %c0_1 = arith.constant 0 : index
    %c0_2 = arith.constant 0 : index
    %2 = vector.load %arg2[%c0_1, %c0_2] : memref<209x1xf32, #tpu.memory_space<vmem>>, vector<209x1xf32>
    %c0_3 = arith.constant 0 : index
    %c0_4 = arith.constant 0 : index
    %c1 = arith.constant 1 : index
    %3 = vector.load %arg0[%c0_3, %c0_4, %c1] : memref<2x166x29xf32, #tpu.memory_space<vmem>>, vector<1x166x27xf32>
    %4 = vector.shape_cast %3 : vector<1x166x27xf32> to vector<166x27xf32>
    %cst = arith.constant dense<0.000000e+00> : vector<209x27xf32>
    %5 = tpu.matmul %1, %4, %cst {dimension_numbers = #tpu.dot_dimension_numbers<[1], [0], [0], [1], [0, 0, 1, 1], [], []>, precision = #tpu.contract_precision<fp32>} : vector<209x166xf32>, vector<166x27xf32>, vector<209x27xf32> -> vector<209x27xf32>
    %6 = vector.broadcast %2 : vector<209x1xf32> to vector<209x27xf32>
    %7 = arith.addf %5, %6 : vector<209x27xf32>
    %cst_5 = arith.constant 0.000000e+00 : f32
    %8 = vector.broadcast %cst_5 : f32 to vector<209x27xf32>
    %9 = arith.cmpf ogt, %7, %8 : vector<209x27xf32>
    %cst_6 = arith.constant 2.125000e+00 : f32
    %10 = vector.broadcast %cst_6 : f32 to vector<209x27xf32>
    %11 = arith.mulf %7, %10 : vector<209x27xf32>
    %12 = arith.select %9, %7, %11 : vector<209x27xi1>, vector<209x27xf32>
    %cst_7 = arith.constant dense<0xFF800000> : vector<209xf32>
    %13 = vector.multi_reduction <maximumf>, %12, %cst_7 [1] : vector<209x27xf32> to vector<209xf32>
    %14 = vector.shape_cast %13 : vector<209xf32> to vector<209x1xf32>
    %15 = vector.broadcast %14 : vector<209x1xf32> to vector<209x27xf32>
    %16 = arith.subf %12, %15 : vector<209x27xf32>
    %17 = math.exp %16 : vector<209x27xf32>
    %cst_8 = arith.constant dense<0.000000e+00> : vector<209xf32>
    %18 = vector.multi_reduction <add>, %17, %cst_8 [1] : vector<209x27xf32> to vector<209xf32>
    %19 = vector.shape_cast %18 : vector<209xf32> to vector<209x1xf32>
    %20 = vector.broadcast %19 : vector<209x1xf32> to vector<209x27xf32>
    %21 = arith.divf %17, %20 : vector<209x27xf32>
    %c0_9 = arith.constant 0 : index
    %c0_10 = arith.constant 0 : index
    %c0_11 = arith.constant 0 : index
    %22 = vector.load %arg3[%c0_9, %c0_10, %c0_11] : memref<2x209x27xf32, #tpu.memory_space<vmem>>, vector<1x209x27xf32>
    %23 = vector.shape_cast %22 : vector<1x209x27xf32> to vector<209x27xf32>
    %24 = vector.shape_cast %21 : vector<209x27xf32> to vector<1x209x27xf32>
    tpu.vector_store %arg3[%c0_9, %c0_10, %c0_11], %24 {strides = array<i32>} : memref<2x209x27xf32, #tpu.memory_space<vmem>>, vector<1x209x27xf32>,
    %c1_12 = arith.constant 1 : index
    %c0_13 = arith.constant 0 : index
    %c1_14 = arith.constant 1 : index
    %25 = vector.load %arg0[%c1_12, %c0_13, %c1_14] : memref<2x166x29xf32, #tpu.memory_space<vmem>>, vector<1x166x27xf32>
    %26 = vector.shape_cast %25 : vector<1x166x27xf32> to vector<166x27xf32>
    %cst_15 = arith.constant dense<0.000000e+00> : vector<209x27xf32>
    %27 = tpu.matmul %1, %26, %cst_15 {dimension_numbers = #tpu.dot_dimension_numbers<[1], [0], [0], [1], [0, 0, 1, 1], [], []>, precision = #tpu.contract_precision<fp32>} : vector<209x166xf32>, vector<166x27xf32>, vector<209x27xf32> -> vector<209x27xf32>
    %28 = vector.broadcast %2 : vector<209x1xf32> to vector<209x27xf32>
    %29 = arith.addf %27, %28 : vector<209x27xf32>
    %cst_16 = arith.constant 0.000000e+00 : f32
    %30 = vector.broadcast %cst_16 : f32 to vector<209x27xf32>
    %31 = arith.cmpf ogt, %29, %30 : vector<209x27xf32>
    %cst_17 = arith.constant 2.125000e+00 : f32
    %32 = vector.broadcast %cst_17 : f32 to vector<209x27xf32>
    %33 = arith.mulf %29, %32 : vector<209x27xf32>
    %34 = arith.select %31, %29, %33 : vector<209x27xi1>, vector<209x27xf32>
    %cst_18 = arith.constant dense<0xFF800000> : vector<209xf32>
    %35 = vector.multi_reduction <maximumf>, %34, %cst_18 [1] : vector<209x27xf32> to vector<209xf32>
    %36 = vector.shape_cast %35 : vector<209xf32> to vector<209x1xf32>
    %37 = vector.broadcast %36 : vector<209x1xf32> to vector<209x27xf32>
    %38 = arith.subf %34, %37 : vector<209x27xf32>
    %39 = math.exp %38 : vector<209x27xf32>
    %cst_19 = arith.constant dense<0.000000e+00> : vector<209xf32>
    %40 = vector.multi_reduction <add>, %39, %cst_19 [1] : vector<209x27xf32> to vector<209xf32>
    %41 = vector.shape_cast %40 : vector<209xf32> to vector<209x1xf32>
    %42 = vector.broadcast %41 : vector<209x1xf32> to vector<209x27xf32>
    %43 = arith.divf %39, %42 : vector<209x27xf32>
    %c1_20 = arith.constant 1 : index
    %c0_21 = arith.constant 0 : index
    %c0_22 = arith.constant 0 : index
    %44 = vector.load %arg3[%c1_20, %c0_21, %c0_22] : memref<2x209x27xf32, #tpu.memory_space<vmem>>, vector<1x209x27xf32>
    %45 = vector.shape_cast %44 : vector<1x209x27xf32> to vector<209x27xf32>
    %46 = vector.shape_cast %43 : vector<209x27xf32> to vector<1x209x27xf32>
    tpu.vector_store %arg3[%c1_20, %c0_21, %c0_22], %46 {strides = array<i32>} : memref<2x209x27xf32, #tpu.memory_space<vmem>>, vector<1x209x27xf32>,
    return
  }
}

</mosaic_0001>

<bundles_post_ra>
// kernel: model_forward.1
= control target key start
LH: loop header
LB: loop body
LE: loop exit
PB: predicated region body
PF: predicated region fallthrough
CT: control target
= control target key end

     0   :  { %v9951_v2 = vmov 0.0|0.0   ;;  %s7034_s16 = smov 127   ;;  %vm532_vm0 = vcmask 1045504   ;;  %vm450_vm1 = vcmask 310272   ;;  %vm2791_vm2 = vcmask 220160   ;;  %s9947_s0 = inlined_call_operand.vmem [shape: f32[2,166,29], index: 0, kind: input, shape index: {}]   ;;  %s9948_s1 = inlined_call_operand.vmem [shape: f32[166,209], index: 1, kind: input, shape index: {}]   ;;  %s9949_s2 = inlined_call_operand.vmem [shape: f32[209,1], index: 2, kind: input, shape index: {}]   ;;  %s9950_s3 = inlined_call_operand.vmem [shape: f32[2,209,27], index: 3, kind: output, shape index: {}]  }
   0x1   :  { %v5809_v0 = vld [vmem:[%s9947_s0 + $0xa8] sm:$0xff]  ;;  %v211_v1 = vld [vmem:[%s9947_s0] sm:$0xff]  ;;  %5857 = vmatprep.subr.bf16.mxu0 %v9951_v2  ;;  %6037 = vmatprep.subr.bf16.mxu1 %v9951_v2  ;;  %v5810_v3 = vld [vmem:[%s9947_s0 + $0xb0] sm:$0xff] }
   0x2   :  { %3160 = vrot.lane.b32.xlu1 %v5809_v0, %s7034_s16  ;;  %388 = vrot.lane.b32.xlu0 %v211_v1, %s7034_s16  ;;  %v212_v4 = vld [vmem:[%s9947_s0 + $0x8] sm:$0xff]  ;;  %v214_v5 = vld [vmem:[%s9947_s0 + $0x18] sm:$0xff] }
   0x3   :  { %v213_v6 = vld [vmem:[%s9947_s0 + $0x10] sm:$0xff]  ;;  %v5812_v7 = vld [vmem:[%s9947_s0 + $0xc0] sm:$0xff]  ;;  %v5811_v8 = vld [vmem:[%s9947_s0 + $0xb8] sm:$0xff] }
   0x4   :  { %v216_v9 = vld [vmem:[%s9947_s0 + $0x28] sm:$0xff]  ;;  %v215_v10 = vld [vmem:[%s9947_s0 + $0x20] sm:$0xff]  ;;  %v5814_v11 = vld [vmem:[%s9947_s0 + $0xd0] sm:$0xff] }
   0x5   :  { %v5813_v12 = vld [vmem:[%s9947_s0 + $0xc8] sm:$0xff]  ;;  %v218_v13 = vld [vmem:[%s9947_s0 + $0x38] sm:$0xff]  ;;  %v217_v14 = vld [vmem:[%s9947_s0 + $0x30] sm:$0xff] }
   0x6   :  { %3162 = vrot.lane.b32.xlu1 %v5810_v3, %s7034_s16  ;;  %390 = vrot.lane.b32.xlu0 %v212_v4, %s7034_s16  ;;  %v5816_v15 = vld [vmem:[%s9947_s0 + $0xe0] sm:$0xff]  ;;  %v5815_v16 = vld [vmem:[%s9947_s0 + $0xd8] sm:$0xff] }
   0x7   :  { %v220_v17 = vld [vmem:[%s9947_s0 + $0x48] sm:$0xff]  ;;  %v219_v18 = vld [vmem:[%s9947_s0 + $0x40] sm:$0xff]  ;;  %v5818_v19 = vld [vmem:[%s9947_s0 + $0xf0] sm:$0xff] }
   0x8   :  { %v5817_v20 = vld [vmem:[%s9947_s0 + $0xe8] sm:$0xff]  ;;  %v222_v21 = vld [vmem:[%s9947_s0 + $0x58] sm:$0xff]  ;;  %v221_v22 = vld [vmem:[%s9947_s0 + $0x50] sm:$0xff] }
   0x9   :  { %v5820_v23 = vld [vmem:[%s9947_s0 + $0x100] sm:$0xff]  ;;  %v5819_v24 = vld [vmem:[%s9947_s0 + $0xf8] sm:$0xff]  ;;  %v224_v25 = vld [vmem:[%s9947_s0 + $0x68] sm:$0xff] }
   0xa   :  { %394 = vrot.lane.b32.xlu1 %v214_v5, %s7034_s16  ;;  %392 = vrot.lane.b32.xlu0 %v213_v6, %s7034_s16  ;;  %v223_v26 = vld [vmem:[%s9947_s0 + $0x60] sm:$0xff]  ;;  %v5822_v27 = vld [vmem:[%s9947_s0 + $0x110] sm:$0xff] }
   0xb   :  { %v5821_v28 = vld [vmem:[%s9947_s0 + $0x108] sm:$0xff]  ;;  %v226_v29 = vld [vmem:[%s9947_s0 + $0x78] sm:$0xff]  ;;  %v225_v30 = vld [vmem:[%s9947_s0 + $0x70] sm:$0xff] }
   0xc   :  { %v5824_v31 = vld [vmem:[%s9947_s0 + $0x120] sm:$0xff]  ;;  %v5823_v32 = vld [vmem:[%s9947_s0 + $0x118] sm:$0xff]  ;;  %v228_v33 = vld [vmem:[%s9947_s0 + $0x88] sm:$0xff] }
   0xd   :  { %v227_v34 = vld [vmem:[%s9947_s0 + $0x80] sm:$0xff]  ;;  %v5826_v35 = vld [vmem:[%s9947_s0 + $0x130] sm:$0xff]  ;;  %v5825_v36 = vld [vmem:[%s9947_s0 + $0x128] sm:$0xff] }
   0xe   :  { %3166 = vrot.lane.b32.xlu1 %v5812_v7, %s7034_s16  ;;  %3164 = vrot.lane.b32.xlu0 %v5811_v8, %s7034_s16  ;;  %v230_v37 = vld [vmem:[%s9947_s0 + $0x98] sm:$0xff]  ;;  %v229_v38 = vld [vmem:[%s9947_s0 + $0x90] sm:$0xff] }
   0xf   :  { %v5828_v39 = vld [vmem:[%s9947_s0 + $0x140] sm:$0xff]  ;;  %v5827_v40 = vld [vmem:[%s9947_s0 + $0x138] sm:$0xff]  ;;  %v5829_v41 = vld [vmem:[%s9947_s0 + $0x148] sm:$0x3f] }
  0x10   :  { %v231_v42 = vld [vmem:[%s9947_s0 + $0xa0] sm:$0x3f]  ;;  %v48_v44 = vld [vmem:[%s9948_s1 + $0x110] sm:$0xff] }
  0x11   :  { %v46_v43 = vld [vmem:[%s9948_s1 + $0x100] sm:$0xff]  ;;  %v52_v59 = vld [vmem:[%s9948_s1 + $0x130] sm:$0xff] }
  0x12   :  { %398 = vrot.lane.b32.xlu1 %v216_v9, %s7034_s16  ;;  %396 = vrot.lane.b32.xlu0 %v215_v10, %s7034_s16  ;;  %v50_v49 = vld [vmem:[%s9948_s1 + $0x120] sm:$0xff]  ;;  %v16_v5 = vld [vmem:[%s9948_s1 + $0x10] sm:$0xff] }
  0x13   :  { %v14_v54 = vld [vmem:[%s9948_s1] sm:$0xff] }
  0x14   :  { %v54_v8 = vld [vmem:[%s9948_s1 + $0x140] sm:$0x3f] }
  0x16   :  { %3170 = vrot.lane.b32.xlu1 %v5814_v11, %s7034_s16  ;;  %3168 = vrot.lane.b32.xlu0 %v5813_v12, %s7034_s16 }
  0x1a   :  { %402 = vrot.lane.b32.xlu1 %v218_v13, %s7034_s16  ;;  %400 = vrot.lane.b32.xlu0 %v217_v14, %s7034_s16 }
  0x1e   :  { %3174 = vrot.lane.b32.xlu1 %v5816_v15, %s7034_s16  ;;  %3172 = vrot.lane.b32.xlu0 %v5815_v16, %s7034_s16 }
  0x22   :  { %406 = vrot.lane.b32.xlu1 %v220_v17, %s7034_s16  ;;  %404 = vrot.lane.b32.xlu0 %v219_v18, %s7034_s16 }
  0x26   :  { %3178 = vrot.lane.b32.xlu1 %v5818_v19, %s7034_s16  ;;  %3176 = vrot.lane.b32.xlu0 %v5817_v20, %s7034_s16 }
  0x2a   :  { %410 = vrot.lane.b32.xlu1 %v222_v21, %s7034_s16  ;;  %408 = vrot.lane.b32.xlu0 %v221_v22, %s7034_s16 }
  0x2e   :  { %3182 = vrot.lane.b32.xlu1 %v5820_v23, %s7034_s16  ;;  %3180 = vrot.lane.b32.xlu0 %v5819_v24, %s7034_s16  ;;  %v18_v23 = vld [vmem:[%s9948_s1 + $0x20] sm:$0xff] }
  0x32   :  { %414 = vrot.lane.b32.xlu1 %v224_v25, %s7034_s16  ;;  %412 = vrot.lane.b32.xlu0 %v223_v26, %s7034_s16 }
  0x36   :  { %3186 = vrot.lane.b32.xlu1 %v5822_v27, %s7034_s16  ;;  %3184 = vrot.lane.b32.xlu0 %v5821_v28, %s7034_s16 }
  0x3a   :  { %418 = vrot.lane.b32.xlu1 %v226_v29, %s7034_s16  ;;  %416 = vrot.lane.b32.xlu0 %v225_v30, %s7034_s16 }
  0x3e   :  { %3190 = vrot.lane.b32.xlu1 %v5824_v31, %s7034_s16  ;;  %3188 = vrot.lane.b32.xlu0 %v5823_v32, %s7034_s16 }
  0x42   :  { %422 = vrot.lane.b32.xlu1 %v228_v33, %s7034_s16  ;;  %420 = vrot.lane.b32.xlu0 %v227_v34, %s7034_s16 }
  0x46   :  { %3194 = vrot.lane.b32.xlu1 %v5826_v35, %s7034_s16  ;;  %3192 = vrot.lane.b32.xlu0 %v5825_v36, %s7034_s16 }
  0x4a   :  { %426 = vrot.lane.b32.xlu1 %v230_v37, %s7034_s16  ;;  %424 = vrot.lane.b32.xlu0 %v229_v38, %s7034_s16 }
  0x4e   :  { %3198 = vrot.lane.b32.xlu1 %v5828_v39, %s7034_s16  ;;  %3196 = vrot.lane.b32.xlu0 %v5827_v40, %s7034_s16  ;;  %v20_v39 = vld [vmem:[%s9948_s1 + $0x30] sm:$0xff] }
  0x52   :  { %3200 = vrot.lane.b32.xlu1 %v5829_v41, %s7034_s16  ;;  %428 = vrot.lane.b32.xlu0 %v231_v42, %s7034_s16 }
  0x70   :  { %120 = vxpose.xlu0.b32.start [1/5] (short) %v46_v43, 128 }
  0x74   :  { %v3161_v45 = vpop.permute.xlu1 %3160  ;;  %v389_v46 = vpop.permute.xlu0 %388  ;;  %121 = vxpose.xlu0.b32.cont [2/5] (short) %v48_v44, 128 }
  0x75   :  { %v3225_v47 = vand.u32 4294901760, %v3161_v45  ;;  %v536_v48 = vand.u32 4294901760, %v389_v46 }
  0x77   :  { %v7236_v50 = vsub.f32 %v3161_v45, %v3225_v47  ;;  %v7238_v51 = vsub.f32 %v389_v46, %v536_v48 }
  0x78   :  { %v3163_v52 = vpop.permute.xlu1 %3162  ;;  %v391_v53 = vpop.permute.xlu0 %390  ;;  %122 = vxpose.xlu0.b32.cont [3/5] (short) %v50_v49, 128 }
  0x79   :  { %v3718_v55 = vand.u32 4294901760, %v7236_v50  ;;  %v1029_v56 = vand.u32 4294901760, %v7238_v51  ;;  %v3228_v57 = vand.u32 4294901760, %v3163_v52  ;;  %v539_v58 = vand.u32 4294901760, %v391_v53 }
  0x7b   :  { %v3719_v60 = vsub.f32 %v7236_v50, %v3718_v55  ;;  %v7249_v61 = vsub.f32 %v3163_v52, %v3228_v57  ;;  %v7251_v62 = vsub.f32 %v391_v53, %v539_v58  ;;  %56 = vxpose.xlu1.b32.start [1/16] %v14_v54, 128  ;;  %v1030_v63 = vsub.f32 %v7238_v51, %v1029_v56 }
  0x7c   :  { %v395_v0 = vpop.permute.xlu1 %394  ;;  %v393_v1 = vpop.permute.xlu0 %392  ;;  %v7254_v3 = vpack.c.bf16 %v3228_v57, %v3225_v47  ;;  %v7256_v4 = vpack.c.bf16 %v539_v58, %v536_v48  ;;  %123 = vxpose.xlu0.b32.cont [4/5] (short) %v52_v59, 128  ;;  %v22_v59 = vld [vmem:[%s9948_s1 + $0x40] sm:$0xff]  ;;  %v32_v48 = vld [vmem:[%s9948_s1 + $0x90] sm:$0xff] }
  0x7d   :  { %v3725_v6 = vand.u32 4294901760, %v7249_v61  ;;  %v1036_v7 = vand.u32 4294901760, %v7251_v62  ;;  %v545_v9 = vand.u32 4294901760, %v395_v0  ;;  %v542_v10 = vand.u32 4294901760, %v393_v1 }
  0x7e   :  { %10315 = vst [vmem:[#allocation2_spill] sm:$0xff] %v7254_v3  ;;  %10316 = vst [vmem:[#allocation3_spill] sm:$0xff] %v7256_v4  ;;  %6039 = vmatpush1.bf16.msra.mxu1 %v7254_v3  ;;  %5859 = vmatpush1.bf16.msra.mxu0 %v7256_v4  ;;  %v3720_v13 = vand.u32 4294901760, %v3719_v60  ;;  %v1031_v17 = vand.u32 4294901760, %v1030_v63 }
  0x7f   :  { %v3726_v14 = vsub.f32 %v7249_v61, %v3725_v6  ;;  %v1037_v15 = vsub.f32 %v7251_v62, %v1036_v7  ;;  %57 = vxpose.xlu1.b32.cont [2/16] %v16_v5, 128  ;;  %5860 = vmatprep.subr.bf16.mxu0 %v9951_v2  ;;  %v7275_v16 = vpack.c.bf16 %v1036_v7, %v1029_v56 }
  0x80   :  { %v7277_v18 = vsub.f32 %v395_v0, %v545_v9  ;;  %v7279_v19 = vsub.f32 %v393_v1, %v542_v10  ;;  %v3167_v20 = vpop.permute.xlu1 %3166  ;;  %v3165_v21 = vpop.permute.xlu0 %3164  ;;  %v7281_v22 = vpack.c.bf16 %v545_v9, %v542_v10  ;;  %6040 = vmatprep.subr.bf16.mxu1 %v9951_v2  ;;  %124 = vxpose.xlu0.b32.end [5/5] (short) %v54_v8, 128 }
  0x81   :  { %10317 = vst [vmem:[#allocation4_spill] sm:$0xff] %v7275_v16  ;;  %v3727_v24 = vand.u32 4294901760, %v3726_v14  ;;  %v1038_v25 = vand.u32 4294901760, %v1037_v15  ;;  %v3234_v26 = vand.u32 4294901760, %v3167_v20  ;;  %v3231_v27 = vand.u32 4294901760, %v3165_v21 }
  0x82   :  { %10318 = vst [vmem:[#allocation5_spill] sm:$0xff] %v7281_v22  ;;  %v1050_v28 = vand.u32 4294901760, %v7277_v18  ;;  %v1043_v29 = vand.u32 4294901760, %v7279_v19  ;;  %5862 = vmatpush1.bf16.msra.mxu0 %v7281_v22  ;;  %v7292_v31 = vpack.c.bf16 %v3725_v6, %v3718_v55 }
  0x83   :  { %v7294_v32 = vsub.f32 %v3167_v20, %v3234_v26  ;;  %v7296_v33 = vsub.f32 %v3165_v21, %v3231_v27  ;;  %58 = vxpose.xlu1.b32.cont [3/16] %v18_v23, 128  ;;  %v7298_v34 = vpack.c.bf16 %v3234_v26, %v3231_v27  ;;  %5863 = vmatprep.subr.bf16.mxu0 %v9951_v2 }
  0x84   :  { %10319 = vst [vmem:[#allocation6_spill] sm:$0xff] %v7292_v31  ;;  %v1051_v35 = vsub.f32 %v7277_v18, %v1050_v28  ;;  %v1044_v36 = vsub.f32 %v7279_v19, %v1043_v29  ;;  %v399_v37 = vpop.permute.xlu1 %398  ;;  %v397_v38 = vpop.permute.xlu0 %396  ;;  %v7306_v40 = vpack.c.bf16 %v1038_v25, %v1031_v17  ;;  %v7308_v41 = vpack.c.bf16 %v3727_v24, %v3720_v13  ;;  %v24_v24 = vld [vmem:[%s9948_s1 + $0x50] sm:$0xff] }
  0x85   :  { %10320 = vst [vmem:[#allocation7_spill] sm:$0xff] %v7298_v34  ;;  %v3739_v42 = vand.u32 4294901760, %v7294_v32  ;;  %v3732_v43 = vand.u32 4294901760, %v7296_v33  ;;  %v551_v44 = vand.u32 4294901760, %v399_v37  ;;  %v548_v45 = vand.u32 4294901760, %v397_v38  ;;  %6042 = vmatpush1.bf16.msra.mxu1 %v7298_v34 }
  0x86   :  { %v1052_v46 = vand.u32 4294901760, %v1051_v35  ;;  %v1045_v47 = vand.u32 4294901760, %v1044_v36  ;;  %6043 = vmatprep.subr.bf16.mxu1 %v9951_v2  ;;  %v7316_v49 = vpack.c.bf16 %v1050_v28, %v1043_v29 }
  0x87   :  { %v3740_v52 = vsub.f32 %v7294_v32, %v3739_v42  ;;  %v3733_v53 = vsub.f32 %v7296_v33, %v3732_v43  ;;  %v7320_v54 = vsub.f32 %v399_v37, %v551_v44  ;;  %v7322_v55 = vsub.f32 %v397_v38, %v548_v45  ;;  %59 = vxpose.xlu1.b32.cont [4/16] %v20_v39, 128 }
  0x88   :  { %10321 = vst [vmem:[#allocation8_spill] sm:$0xff] %v7316_v49  ;;  %v3171_v56 = vpop.permute.xlu1 %3170  ;;  %v3169_v57 = vpop.permute.xlu0 %3168  ;;  %v7324_v58 = vpack.c.bf16 %v551_v44, %v548_v45  ;;  %v7329_v60 = vpack.c.bf16 %v1052_v46, %v1045_v47  ;;  %v7331_v63 = vpack.c.bf16 %v3739_v42, %v3732_v43  ;;  %v26_v47 = vld [vmem:[%s9948_s1 + $0x60] sm:$0xff] }
  0x89   :  { %v3741_v0 = vand.u32 4294901760, %v3740_v52  ;;  %v3734_v1 = vand.u32 4294901760, %v3733_v53  ;;  %v1064_v5 = vand.u32 4294901760, %v7320_v54  ;;  %v1057_v6 = vand.u32 4294901760, %v7322_v55 }
  0x8a   :  { %10322 = vst [vmem:[#allocation9_spill] sm:$0xff] %v7324_v58  ;;  %10323 = vst [vmem:[#allocation10_spill] sm:$0xff] %v7331_v63  ;;  %v3240_v7 = vand.u32 4294901760, %v3171_v56  ;;  %v3237_v8 = vand.u32 4294901760, %v3169_v57  ;;  %5865 = vmatpush1.bf16.msra.mxu0 %v7324_v58 }
  0x8b   :  { %v1065_v10 = vsub.f32 %v7320_v54, %v1064_v5  ;;  %v1058_v13 = vsub.f32 %v7322_v55, %v1057_v6  ;;  %60 = vxpose.xlu1.b32.cont [5/16] %v22_v59, 128  ;;  %5866 = vmatprep.subr.bf16.mxu0 %v9951_v2  ;;  %v7341_v14 = vpack.c.bf16 %v3741_v0, %v3734_v1 }
  0x8c   :  { %v7343_v15 = vsub.f32 %v3171_v56, %v3240_v7  ;;  %v7345_v17 = vsub.f32 %v3169_v57, %v3237_v8  ;;  %v403_v20 = vpop.permute.xlu1 %402  ;;  %v401_v21 = vpop.permute.xlu0 %400  ;;  %v7347_v23 = vpack.c.bf16 %v3240_v7, %v3237_v8  ;;  %v7352_v25 = vpack.c.bf16 %v1064_v5, %v1057_v6 }
  0x8d   :  { %v1066_v26 = vand.u32 4294901760, %v1065_v10  ;;  %v1059_v27 = vand.u32 4294901760, %v1058_v13  ;;  %v557_v28 = vand.u32 4294901760, %v403_v20  ;;  %v554_v29 = vand.u32 4294901760, %v401_v21 }
  0x8e   :  { %10324 = vst [vmem:[#allocation11_spill] sm:$0xff] %v7347_v23  ;;  %10325 = vst [vmem:[#allocation12_spill] sm:$0xff] %v7352_v25  ;;  %v3753_v35 = vand.u32 4294901760, %v7343_v15  ;;  %v3746_v36 = vand.u32 4294901760, %v7345_v17  ;;  %6045 = vmatpush1.bf16.msra.mxu1 %v7347_v23 }
  0x8f   :  { %v7359_v38 = vsub.f32 %v403_v20, %v557_v28  ;;  %v7361_v39 = vsub.f32 %v401_v21, %v554_v29  ;;  %61 = vxpose.xlu1.b32.cont [6/16] %v24_v24, 128  ;;  %v7363_v42 = vpack.c.bf16 %v557_v28, %v554_v29  ;;  %6046 = vmatprep.subr.bf16.mxu1 %v9951_v2 }
  0x90   :  { %v3754_v43 = vsub.f32 %v7343_v15, %v3753_v35  ;;  %v3747_v44 = vsub.f32 %v7345_v17, %v3746_v36  ;;  %v3175_v45 = vpop.permute.xlu1 %3174  ;;  %v3173_v46 = vpop.permute.xlu0 %3172  ;;  %v7371_v52 = vpack.c.bf16 %v1066_v26, %v1059_v27  ;;  %v7373_v53 = vpack.c.bf16 %v3753_v35, %v3746_v36  ;;  %v28_v26 = vld [vmem:[%s9948_s1 + $0x70] sm:$0xff] }
  0x91   :  { %10326 = vst [vmem:[#allocation13_spill] sm:$0xff] %v7359_v38  ;;  %10327 = vst [vmem:[#allocation14_spill] sm:$0xff] %v7361_v39  ;;  %v1078_v56 = vand.u32 4294901760, %v7359_v38  ;;  %v1071_v57 = vand.u32 4294901760, %v7361_v39  ;;  %v3246_v59 = vand.u32 4294901760, %v3175_v45  ;;  %v3243_v0 = vand.u32 4294901760, %v3173_v46  ;;  %5868 = vmatpush1.bf16.msra.mxu0 %v7363_v42 }
  0x92   :  { %10328 = vst [vmem:[#allocation15_spill] sm:$0xff] %v7363_v42  ;;  %10329 = vst [vmem:[#allocation16_spill] sm:$0xff] %v7373_v53  ;;  %v3755_v1 = vand.u32 4294901760, %v3754_v43  ;;  %v3748_v5 = vand.u32 4294901760, %v3747_v44  ;;  %5869 = vmatprep.subr.bf16.mxu0 %v9951_v2 }
  0x93   :  { %v1079_v7 = vsub.f32 %v7359_v38, %v1078_v56  ;;  %v1072_v8 = vsub.f32 %v7361_v39, %v1071_v57  ;;  %v7383_v10 = vsub.f32 %v3175_v45, %v3246_v59  ;;  %v7385_v13 = vsub.f32 %v3173_v46, %v3243_v0  ;;  %62 = vxpose.xlu1.b32.cont [7/16] %v26_v47, 128 }
  0x94   :  { %v407_v20 = vpop.permute.xlu1 %406  ;;  %v405_v21 = vpop.permute.xlu0 %404  ;;  %v7387_v24 = vpack.c.bf16 %v3246_v59, %v3243_v0  ;;  %v7392_v27 = vpack.c.bf16 %v3755_v1, %v3748_v5  ;;  %v7394_v28 = vpack.c.bf16 %v1078_v56, %v1071_v57 }
  0x95   :  { %10330 = vst [vmem:[#allocation17_spill] sm:$0xff] %v7383_v10  ;;  %10331 = vst [vmem:[#allocation18_spill] sm:$0xff] %v7385_v13  ;;  %v1080_v29 = vand.u32 4294901760, %v1079_v7  ;;  %v1073_v35 = vand.u32 4294901760, %v1072_v8  ;;  %v3767_v36 = vand.u32 4294901760, %v7383_v10  ;;  %v3760_v43 = vand.u32 4294901760, %v7385_v13 }
  0x96   :  { %10332 = vst [vmem:[#allocation19_spill] sm:$0xff] %v7387_v24  ;;  %10333 = vst [vmem:[#allocation20_spill] sm:$0xff] %v7394_v28  ;;  %v563_v44 = vand.u32 4294901760, %v407_v20  ;;  %v560_v45 = vand.u32 4294901760, %v405_v21  ;;  %6048 = vmatpush1.bf16.msra.mxu1 %v7387_v24  ;;  %v30_v8 = vld [vmem:[%s9948_s1 + $0x80] sm:$0xff]  ;;  %v40_v24 = vld [vmem:[%s9948_s1 + $0xd0] sm:$0xff] }
  0x97   :  { %v3768_v47 = vsub.f32 %v7383_v10, %v3767_v36  ;;  %v3761_v59 = vsub.f32 %v7385_v13, %v3760_v43  ;;  %63 = vxpose.xlu1.b32.cont [8/16] %v28_v26, 128  ;;  %6049 = vmatprep.subr.bf16.mxu1 %v9951_v2  ;;  %v7404_v56 = vpack.c.bf16 %v1080_v29, %v1073_v35 }
  0x98   :  { %v7406_v57 = vsub.f32 %v407_v20, %v563_v44  ;;  %v7408_v0 = vsub.f32 %v405_v21, %v560_v45  ;;  %v3179_v1 = vpop.permute.xlu1 %3178  ;;  %v3177_v5 = vpop.permute.xlu0 %3176  ;;  %v7410_v7 = vpack.c.bf16 %v563_v44, %v560_v45  ;;  %v7415_v46 = vpack.c.bf16 %v3767_v36, %v3760_v43 }
  0x99   :  { %v3769_v6 = vand.u32 4294901760, %v3768_v47  ;;  %v3762_v26 = vand.u32 4294901760, %v3761_v59  ;;  %v3252_v37 = vand.u32 4294901760, %v3179_v1  ;;  %v3249_v9 = vand.u32 4294901760, %v3177_v5 }
  0x9a   :  { %10334 = vst [vmem:[#allocation21_spill] sm:$0xff] %v7406_v57  ;;  %10335 = vst [vmem:[#allocation22_spill] sm:$0xff] %v7408_v0  ;;  %v1092_v29 = vand.u32 4294901760, %v7406_v57  ;;  %v1085_v20 = vand.u32 4294901760, %v7408_v0  ;;  %5871 = vmatpush1.bf16.msra.mxu0 %v7410_v7 }
  0x9b   :  { %10336 = vst [vmem:[#allocation23_spill] sm:$0xff] %v7410_v7  ;;  %10337 = vst [vmem:[#allocation24_spill] sm:$0xff] %v7415_v46  ;;  %v7422_v35 = vsub.f32 %v3179_v1, %v3252_v37  ;;  %v7424_v44 = vsub.f32 %v3177_v5, %v3249_v9  ;;  %64 = vxpose.xlu1.b32.cont [9/16] %v30_v8, 128  ;;  %v7426_v36 = vpack.c.bf16 %v3252_v37, %v3249_v9  ;;  %v47_v7 = vld [vmem:[%s9948_s1 + $0x108] sm:$0xff] }
  0x9c   :  { %5872 = vmatprep.subr.bf16.mxu0 %v9951_v2  ;;  %v1093_v43 = vsub.f32 %v7406_v57, %v1092_v29  ;;  %v1086_v45 = vsub.f32 %v7408_v0, %v1085_v20  ;;  %v411_v47 = vpop.permute.xlu1 %410  ;;  %v409_v59 = vpop.permute.xlu0 %408  ;;  %v7434_v21 = vpack.c.bf16 %v3769_v6, %v3762_v26  ;;  %v7436_v1 = vpack.c.bf16 %v1092_v29, %v1085_v20 }
  0x9d   :  { %10338 = vst [vmem:[#allocation25_spill] sm:$0xff] %v7422_v35  ;;  %10339 = vst [vmem:[#allocation26_spill] sm:$0xff] %v7424_v44  ;;  %v3781_v5 = vand.u32 4294901760, %v7422_v35  ;;  %v3774_v9 = vand.u32 4294901760, %v7424_v44  ;;  %v569_v37 = vand.u32 4294901760, %v411_v47  ;;  %v566_v8 = vand.u32 4294901760, %v409_v59  ;;  %6051 = vmatpush1.bf16.msra.mxu1 %v7426_v36 }
  0x9e   :  { %10340 = vst [vmem:[#allocation27_spill] sm:$0xff] %v7426_v36  ;;  %10341 = vst [vmem:[#allocation28_spill] sm:$0xff] %v7436_v1  ;;  %v1094_v30 = vand.u32 4294901760, %v1093_v43  ;;  %v1087_v12 = vand.u32 4294901760, %v1086_v45  ;;  %6052 = vmatprep.subr.bf16.mxu1 %v9951_v2  ;;  %v34_v43 = vld [vmem:[%s9948_s1 + $0xa0] sm:$0xff] }
  0x9f   :  { %v3782_v6 = vsub.f32 %v7422_v35, %v3781_v5  ;;  %v3775_v26 = vsub.f32 %v7424_v44, %v3774_v9  ;;  %v7446_v29 = vsub.f32 %v411_v47, %v569_v37  ;;  %v7448_v20 = vsub.f32 %v409_v59, %v566_v8  ;;  %65 = vxpose.xlu1.b32.cont [10/16] %v32_v48, 128 }
  0xa0   :  { %v3183_v1 = vpop.permute.xlu1 %3182  ;;  %v3181_v46 = vpop.permute.xlu0 %3180  ;;  %v7450_v28 = vpack.c.bf16 %v569_v37, %v566_v8  ;;  %v7455_v45 = vpack.c.bf16 %v1094_v30, %v1087_v12  ;;  %v7457_v11 = vpack.c.bf16 %v3781_v5, %v3774_v9  ;;  %v10346_v30 = vmov 0.0|0.0   ;;  %v36_v37 = vld [vmem:[%s9948_s1 + $0xb0] sm:$0xff] }
  0xa1   :  { %10342 = vst [vmem:[#allocation29_spill] sm:$0xff] %v7446_v29  ;;  %10343 = vst [vmem:[#allocation30_spill] sm:$0xff] %v7448_v20  ;;  %v3783_v2 = vand.u32 4294901760, %v3782_v6  ;;  %v3776_v53 = vand.u32 4294901760, %v3775_v26  ;;  %v1106_v47 = vand.u32 4294901760, %v7446_v29  ;;  %v1099_v59 = vand.u32 4294901760, %v7448_v20 }
  0xa2   :  { %10344 = vst [vmem:[#allocation31_spill] sm:$0xff] %v7450_v28  ;;  %10345 = vst [vmem:[#allocation32_spill] sm:$0xff] %v7457_v11  ;;  %v3258_v25 = vand.u32 4294901760, %v3183_v1  ;;  %v3255_v48 = vand.u32 4294901760, %v3181_v46  ;;  %5874 = vmatpush1.bf16.msra.mxu0 %v7450_v28 }
  0xa3   :  { %v1107_v8 = vsub.f32 %v7446_v29, %v1106_v47  ;;  %v1100_v12 = vsub.f32 %v7448_v20, %v1099_v59  ;;  %66 = vxpose.xlu1.b32.cont [11/16] %v34_v43, 128  ;;  %5875 = vmatprep.subr.bf16.mxu0 %v10346_v30  ;;  %v7467_v5 = vpack.c.bf16 %v3783_v2, %v3776_v53 }
  0xa4   :  { %v7469_v9 = vsub.f32 %v3183_v1, %v3258_v25  ;;  %v7471_v6 = vsub.f32 %v3181_v46, %v3255_v48  ;;  %v415_v26 = vpop.permute.xlu1 %414  ;;  %v413_v11 = vpop.permute.xlu0 %412  ;;  %v7473_v63 = vpack.c.bf16 %v3258_v25, %v3255_v48  ;;  %v7478_v49 = vpack.c.bf16 %v1106_v47, %v1099_v59 }
  0xa5   :  { %v1108_v31 = vand.u32 4294901760, %v1107_v8  ;;  %v1101_v43 = vand.u32 4294901760, %v1100_v12  ;;  %v575_v16 = vand.u32 4294901760, %v415_v26  ;;  %v572_v28 = vand.u32 4294901760, %v413_v11 }
  0xa6   :  { %10347 = vst [vmem:[#allocation33_spill] sm:$0xff] %v7469_v9  ;;  %10348 = vst [vmem:[#allocation34_spill] sm:$0xff] %v7471_v6  ;;  %v3795_v2 = vand.u32 4294901760, %v7469_v9  ;;  %v3788_v53 = vand.u32 4294901760, %v7471_v6  ;;  %6054 = vmatpush1.bf16.msra.mxu1 %v7473_v63 }
  0xa7   :  { %10349 = vst [vmem:[#allocation35_spill] sm:$0xff] %v7473_v63  ;;  %10350 = vst [vmem:[#allocation36_spill] sm:$0xff] %v7478_v49  ;;  %v7485_v46 = vsub.f32 %v415_v26, %v575_v16  ;;  %v7487_v1 = vsub.f32 %v413_v11, %v572_v28  ;;  %67 = vxpose.xlu1.b32.cont [12/16] %v36_v37, 128  ;;  %v7489_v47 = vpack.c.bf16 %v575_v16, %v572_v28  ;;  %v38_v49 = vld [vmem:[%s9948_s1 + $0xc0] sm:$0xff] }
  0xa8   :  { %6055 = vmatprep.subr.bf16.mxu1 %v10346_v30  ;;  %v3796_v59 = vsub.f32 %v7469_v9, %v3795_v2  ;;  %v3789_v48 = vsub.f32 %v7471_v6, %v3788_v53  ;;  %v3187_v8 = vpop.permute.xlu1 %3186  ;;  %v3185_v12 = vpop.permute.xlu0 %3184  ;;  %v7497_v25 = vpack.c.bf16 %v1108_v31, %v1101_v43  ;;  %v7499_v26 = vpack.c.bf16 %v3795_v2, %v3788_v53 }
  0xa9   :  { %10351 = vst [vmem:[#allocation37_spill] sm:$0xff] %v7485_v46  ;;  %10352 = vst [vmem:[#allocation38_spill] sm:$0xff] %v7487_v1  ;;  %v1120_v11 = vand.u32 4294901760, %v7485_v46  ;;  %v1113_v16 = vand.u32 4294901760, %v7487_v1  ;;  %v3264_v28 = vand.u32 4294901760, %v3187_v8  ;;  %v3261_v37 = vand.u32 4294901760, %v3185_v12  ;;  %5877 = vmatpush1.bf16.msra.mxu0 %v7489_v47 }
  0xaa   :  { %10353 = vst [vmem:[#allocation39_spill] sm:$0xff] %v7489_v47  ;;  %10354 = vst [vmem:[#allocation40_spill] sm:$0xff] %v7499_v26  ;;  %v3797_v63 = vand.u32 4294901760, %v3796_v59  ;;  %v3790_v36 = vand.u32 4294901760, %v3789_v48  ;;  %5878 = vmatprep.subr.bf16.mxu0 %v10346_v30 }
  0xab   :  { %v1121_v43 = vsub.f32 %v7485_v46, %v1120_v11  ;;  %v1114_v2 = vsub.f32 %v7487_v1, %v1113_v16  ;;  %v7512_v53 = vsub.f32 %v3187_v8, %v3264_v28  ;;  %v7514_v26 = vsub.f32 %v3185_v12, %v3261_v37  ;;  %68 = vxpose.xlu1.b32.cont [13/16] %v38_v49, 128 }
  0xac   :  { %v419_v59 = vpop.permute.xlu1 %418  ;;  %v417_v48 = vpop.permute.xlu0 %416  ;;  %v7516_v47 = vpack.c.bf16 %v3264_v28, %v3261_v37  ;;  %v7521_v42 = vpack.c.bf16 %v3797_v63, %v3790_v36  ;;  %v7523_v31 = vpack.c.bf16 %v1120_v11, %v1113_v16  ;;  %v49_v28 = vld [vmem:[%s9948_s1 + $0x118] sm:$0xff]  ;;  %v42_v63 = vld [vmem:[%s9948_s1 + $0xe0] sm:$0xff] }
  0xad   :  { %10355 = vst [vmem:[#allocation41_spill] sm:$0xff] %v7512_v53  ;;  %10356 = vst [vmem:[#allocation42_spill] sm:$0xff] %v7514_v26  ;;  %v1122_v23 = vand.u32 4294901760, %v1121_v43  ;;  %v1115_v58 = vand.u32 4294901760, %v1114_v2  ;;  %v3809_v8 = vand.u32 4294901760, %v7512_v53  ;;  %v3802_v12 = vand.u32 4294901760, %v7514_v26 }
  0xae   :  { %10357 = vst [vmem:[#allocation43_spill] sm:$0xff] %v7516_v47  ;;  %10358 = vst [vmem:[#allocation44_spill] sm:$0xff] %v7523_v31  ;;  %152 = vxpose.xlu0.b32.start [1/5] (short) (narrow) %v47_v7, 88  ;;  %v581_v49 = vand.u32 4294901760, %v419_v59  ;;  %v578_v34 = vand.u32 4294901760, %v417_v48  ;;  %6057 = vmatpush1.bf16.msra.mxu1 %v7516_v47 }
  0xaf   :  { %v3810_v36 = vsub.f32 %v7512_v53, %v3809_v8  ;;  %v3803_v11 = vsub.f32 %v7514_v26, %v3802_v12  ;;  %69 = vxpose.xlu1.b32.cont [14/16] %v40_v24, 128  ;;  %6058 = vmatprep.subr.bf16.mxu1 %v10346_v30  ;;  %v7536_v16 = vpack.c.bf16 %v1122_v23, %v1115_v58 }
  0xb0   :  { %v7538_v7 = vsub.f32 %v419_v59, %v581_v49  ;;  %v7540_v37 = vsub.f32 %v417_v48, %v578_v34  ;;  %v3191_v43 = vpop.permute.xlu1 %3190  ;;  %v3189_v2 = vpop.permute.xlu0 %3188  ;;  %v7542_v31 = vpack.c.bf16 %v581_v49, %v578_v34  ;;  %v7547_v47 = vpack.c.bf16 %v3809_v8, %v3802_v12  ;;  %v51_v34 = vld [vmem:[%s9948_s1 + $0x128] sm:$0xff] }
  0xb1   :  { %v3811_v22 = vand.u32 4294901760, %v3810_v36  ;;  %v3804_v24 = vand.u32 4294901760, %v3803_v11  ;;  %v3270_v3 = vand.u32 4294901760, %v3191_v43  ;;  %v3267_v4 = vand.u32 4294901760, %v3189_v2 }
  0xb2   :  { %10359 = vst [vmem:[#allocation45_spill] sm:$0xff] %v7538_v7  ;;  %10360 = vst [vmem:[#allocation46_spill] sm:$0xff] %v7540_v37  ;;  %153 = vxpose.xlu0.b32.cont [2/5] (short) (narrow) %v49_v28, 88  ;;  %v1134_v58 = vand.u32 4294901760, %v7538_v7  ;;  %v1127_v23 = vand.u32 4294901760, %v7540_v37  ;;  %5880 = vmatpush1.bf16.msra.mxu0 %v7542_v31 }
  0xb3   :  { %10361 = vst [vmem:[#allocation47_spill] sm:$0xff] %v7542_v31  ;;  %10362 = vst [vmem:[#allocation48_spill] sm:$0xff] %v7547_v47  ;;  %v7557_v48 = vsub.f32 %v3191_v43, %v3270_v3  ;;  %v7559_v8 = vsub.f32 %v3189_v2, %v3267_v4  ;;  %70 = vxpose.xlu1.b32.cont [15/16] %v42_v63, 128  ;;  %v7561_v12 = vpack.c.bf16 %v3270_v3, %v3267_v4  ;;  %v44_v47 = vld [vmem:[%s9948_s1 + $0xf0] sm:$0xff] }
  0xb4   :  { %5881 = vmatprep.subr.bf16.mxu0 %v10346_v30  ;;  %v1135_v49 = vsub.f32 %v7538_v7, %v1134_v58  ;;  %v1128_v28 = vsub.f32 %v7540_v37, %v1127_v23  ;;  %v423_v36 = vpop.permute.xlu1 %422  ;;  %v421_v11 = vpop.permute.xlu0 %420  ;;  %v7569_v59 = vpack.c.bf16 %v3811_v22, %v3804_v24  ;;  %v7571_v43 = vpack.c.bf16 %v1134_v58, %v1127_v23  ;;  %v53_v22 = vld [vmem:[%s9948_s1 + $0x138] sm:$0xff] }
  0xb5   :  { %10363 = vst [vmem:[#allocation49_spill] sm:$0xff] %v7557_v48  ;;  %10364 = vst [vmem:[#allocation50_spill] sm:$0xff] %v7559_v8  ;;  %v3823_v63 = vand.u32 4294901760, %v7557_v48  ;;  %v3816_v3 = vand.u32 4294901760, %v7559_v8  ;;  %v587_v4 = vand.u32 4294901760, %v423_v36  ;;  %v584_v2 = vand.u32 4294901760, %v421_v11  ;;  %6060 = vmatpush1.bf16.msra.mxu1 %v7561_v12 }
  0xb6   :  { %10365 = vst [vmem:[#allocation51_spill] sm:$0xff] %v7561_v12  ;;  %10366 = vst [vmem:[#allocation52_spill] sm:$0xff] %v7571_v43  ;;  %154 = vxpose.xlu0.b32.cont [3/5] (short) (narrow) %v51_v34, 88  ;;  %v1136_v31 = vand.u32 4294901760, %v1135_v49  ;;  %v1129_v37 = vand.u32 4294901760, %v1128_v28  ;;  %6061 = vmatprep.subr.bf16.mxu1 %v10346_v30  ;;  %v15_v12 = vld [vmem:[%s9948_s1 + $0x8] sm:$0xff] }
  0xb7   :  { %v3824_v58 = vsub.f32 %v7557_v48, %v3823_v63  ;;  %v3817_v23 = vsub.f32 %v7559_v8, %v3816_v3  ;;  %v7584_v43 = vsub.f32 %v423_v36, %v587_v4  ;;  %v7586_v7 = vsub.f32 %v421_v11, %v584_v2  ;;  %71 = vxpose.xlu1.b32.end [16/16] %v44_v47, 128 }
  0xb8   :  { %v3195_v34 = vpop.permute.xlu1 %3194  ;;  %v3193_v49 = vpop.permute.xlu0 %3192  ;;  %v7588_v28 = vpack.c.bf16 %v587_v4, %v584_v2  ;;  %v7593_v26 = vpack.c.bf16 %v1136_v31, %v1129_v37  ;;  %v7595_v24 = vpack.c.bf16 %v3823_v63, %v3816_v3  ;;  %v55_v4 = vld [vmem:[%s9948_s1 + $0x148] sm:$0x3f]  ;;  %v17_v31 = vld [vmem:[%s9948_s1 + $0x18] sm:$0xff] }
  0xb9   :  { %10367 = vst [vmem:[#allocation53_spill] sm:$0xff] %v7584_v43  ;;  %10368 = vst [vmem:[#allocation54_spill] sm:$0xff] %v7586_v7  ;;  %v3825_v48 = vand.u32 4294901760, %v3824_v58  ;;  %v3818_v53 = vand.u32 4294901760, %v3817_v23  ;;  %v1148_v36 = vand.u32 4294901760, %v7584_v43  ;;  %v1141_v11 = vand.u32 4294901760, %v7586_v7 }
  0xba   :  { %10369 = vst [vmem:[#allocation55_spill] sm:$0xff] %v7588_v28  ;;  %10370 = vst [vmem:[#allocation56_spill] sm:$0xff] %v7595_v24  ;;  %155 = vxpose.xlu0.b32.cont [4/5] (short) (narrow) %v53_v22, 88  ;;  %v3276_v47 = vand.u32 4294901760, %v3195_v34  ;;  %v3273_v8 = vand.u32 4294901760, %v3193_v49  ;;  %5883 = vmatpush1.bf16.msra.mxu0 %v7588_v28 }
  0xbb   :  { %v1149_v37 = vsub.f32 %v7584_v43, %v1148_v36  ;;  %v1142_v63 = vsub.f32 %v7586_v7, %v1141_v11  ;;  %88 = vxpose.xlu1.b32.start [1/16] (narrow) %v15_v12, 88  ;;  %5884 = vmatprep.subr.bf16.mxu0 %v10346_v30  ;;  %v7608_v3 = vpack.c.bf16 %v3825_v48, %v3818_v53 }
  0xbc   :  { %v7610_v2 = vsub.f32 %v3195_v34, %v3276_v47  ;;  %v7612_v22 = vsub.f32 %v3193_v49, %v3273_v8  ;;  %v427_v58 = vpop.permute.xlu1 %426  ;;  %v425_v23 = vpop.permute.xlu0 %424  ;;  %v7614_v24 = vpack.c.bf16 %v3276_v47, %v3273_v8  ;;  %v7619_v28 = vpack.c.bf16 %v1148_v36, %v1141_v11 }
  0xbd   :  { %v1150_v7 = vand.u32 4294901760, %v1149_v37  ;;  %v1143_v12 = vand.u32 4294901760, %v1142_v63  ;;  %v593_v43 = vand.u32 4294901760, %v427_v58  ;;  %v590_v1 = vand.u32 4294901760, %v425_v23  ;;  %v19_v63 = vld [vmem:[%s9948_s1 + $0x28] sm:$0xff] }
  0xbe   :  { %10371 = vst [vmem:[#allocation57_spill] sm:$0xff] %v7610_v2  ;;  %10372 = vst [vmem:[#allocation58_spill] sm:$0xff] %v7612_v22  ;;  %156 = vxpose.xlu0.b32.end [5/5] (short) (narrow) %v55_v4, 88  ;;  %v3837_v53 = vand.u32 4294901760, %v7610_v2  ;;  %v3830_v48 = vand.u32 4294901760, %v7612_v22  ;;  %6063 = vmatpush1.bf16.msra.mxu1 %v7614_v24 }
  0xbf   :  { %10373 = vst [vmem:[#allocation59_spill] sm:$0xff] %v7614_v24  ;;  %10374 = vst [vmem:[#allocation60_spill] sm:$0xff] %v7619_v28  ;;  %v7626_v34 = vsub.f32 %v427_v58, %v593_v43  ;;  %v7628_v49 = vsub.f32 %v425_v23, %v590_v1  ;;  %89 = vxpose.xlu1.b32.cont [2/16] (narrow) %v17_v31, 88  ;;  %v7630_v36 = vpack.c.bf16 %v593_v43, %v590_v1 }
  0xc0   :  { %6064 = vmatprep.subr.bf16.mxu1 %v10346_v30  ;;  %v3838_v11 = vsub.f32 %v7610_v2, %v3837_v53  ;;  %v3831_v47 = vsub.f32 %v7612_v22, %v3830_v48  ;;  %v3199_v4 = vpop.permute.xlu1 %3198  ;;  %v3197_v37 = vpop.permute.xlu0 %3196  ;;  %v7638_v8 = vpack.c.bf16 %v1150_v7, %v1143_v12  ;;  %v7640_v58 = vpack.c.bf16 %v3837_v53, %v3830_v48 }
  0xc1   :  { %10375 = vst [vmem:[#allocation61_spill] sm:$0xff] %v7626_v34  ;;  %10376 = vst [vmem:[#allocation62_spill] sm:$0xff] %v7628_v49  ;;  %v1162_v31 = vand.u32 4294901760, %v7626_v34  ;;  %v1155_v1 = vand.u32 4294901760, %v7628_v49  ;;  %v3282_v43 = vand.u32 4294901760, %v3199_v4  ;;  %v3279_v23 = vand.u32 4294901760, %v3197_v37  ;;  %5886 = vmatpush1.bf16.msra.mxu0 %v7630_v36 }
  0xc2   :  { %10377 = vst [vmem:[#allocation63_spill] sm:$0xff] %v7630_v36  ;;  %10378 = vst [vmem:[#allocation64_spill] sm:$0xff] %v7640_v58  ;;  %v3839_v28 = vand.u32 4294901760, %v3838_v11  ;;  %v3832_v24 = vand.u32 4294901760, %v3831_v47  ;;  %v10002_v22 = vmov 0.0   ;;  %v21_v11 = vld [vmem:[%s9948_s1 + $0x38] sm:$0xff] }
  0xc3   :  { %595 = vmatprep.subr.mxu0 %v10002_v22  ;;  %v1163_v12 = vsub.f32 %v7626_v34, %v1162_v31  ;;  %v1156_v53 = vsub.f32 %v7628_v49, %v1155_v1  ;;  %v7650_v48 = vsub.f32 %v3199_v4, %v3282_v43  ;;  %v7652_v58 = vsub.f32 %v3197_v37, %v3279_v23 }
  0xc4   :  { %90 = vxpose.xlu1.b32.cont [3/16] (narrow) %v19_v63, 88  ;;  %v3201_v2 = vpop.permute.xlu1 %3200  ;;  %v7654_v36 = vpack.c.bf16 %v3282_v43, %v3279_v23  ;;  %v429_v47 = vpop.permute.xlu0 %428  ;;  %v7659_v22 = vpack.c.bf16 %v3839_v28, %v3832_v24  ;;  %v7661_v7 = vpack.c.bf16 %v1162_v31, %v1155_v1  ;;  %v10384_v23 = vmov 0.0  }
  0xc5   :  { %10379 = vst [vmem:[#allocation65_spill] sm:$0xff] %v7650_v48  ;;  %10380 = vst [vmem:[#allocation66_spill] sm:$0xff] %v7652_v58  ;;  %v1164_v34 = vand.u32 4294901760, %v1163_v12  ;;  %v1157_v46 = vand.u32 4294901760, %v1156_v53  ;;  %v3851_v4 = vand.u32 4294901760, %v7650_v48  ;;  %v3844_v37 = vand.u32 4294901760, %v7652_v58 }
  0xc6   :  { %10381 = vst [vmem:[#allocation67_spill] sm:$0xff] %v7654_v36  ;;  %10382 = vst [vmem:[#allocation68_spill] sm:$0xff] %v7661_v7  ;;  %v7666_v63 = vsel %vm532_vm0, %v3201_v2, 0  ;;  %6066 = vmatpush1.bf16.msra.mxu1 %v7654_v36  ;;  %v7670_v43 = vsel %vm532_vm0, %v429_v47, 0  ;;  %v23_v12 = vld [vmem:[%s9948_s1 + $0x48] sm:$0xff] }
  0xc7   :  { %v3852_v28 = vsub.f32 %v7650_v48, %v3851_v4  ;;  %v3845_v31 = vsub.f32 %v7652_v58, %v3844_v37  ;;  %v7677_v1 = vand.u32 4294901760, %v7666_v63  ;;  %3284 = vmatprep.subr.mxu1 %v10384_v23  ;;  %v7681_v2 = vand.u32 4294901760, %v7670_v43 }
  0xc8   :  { %91 = vxpose.xlu1.b32.cont [4/16] (narrow) %v21_v11, 88  ;;  %v7686_v53 = vpack.c.bf16 %v1164_v34, %v1157_v46  ;;  %v7688_v47 = vpack.c.bf16 %v3851_v4, %v3844_v37  ;;  %v25_v46 = vld [vmem:[%s9948_s1 + $0x58] sm:$0xff]  ;;  %v27_v34 = vld [vmem:[%s9948_s1 + $0x68] sm:$0xff] }
  0xc9   :  { %10383 = vst [vmem:[#allocation69_spill] sm:$0xff] %v7677_v1  ;;  %10385 = vst [vmem:[#allocation70_spill] sm:$0xff] %v7681_v2  ;;  %v3853_v24 = vand.u32 4294901760, %v3852_v28  ;;  %v3846_v7 = vand.u32 4294901760, %v3845_v31  ;;  %597 = vmatpush1.msra.mxu0 %v7681_v2  ;;  %v29_v4 = vld [vmem:[%s9948_s1 + $0x78] sm:$0xff]  ;;  %v39_v31 = vld [vmem:[%s9948_s1 + $0xc8] sm:$0xff] }
  0xca   :  { %10386 = vst [vmem:[#allocation71_spill] sm:$0xff] %v7688_v47  ;;  %3286 = vmatpush1.msra.mxu1 %v7677_v1  ;;  %5887 = vmatprep.subr.bf16.mxu0 %v10346_v30  ;;  %v33_v37 = vld [vmem:[%s9948_s1 + $0x98] sm:$0xff] }
  0xcb   :  { %6067 = vmatprep.subr.bf16.mxu1 %v10346_v30  ;;  %v7694_v11 = vpack.c.bf16 %v3853_v24, %v3846_v7  ;;  %v31_v7 = vld [vmem:[%s9948_s1 + $0x88] sm:$0xff]  ;;  %v37_v28 = vld [vmem:[%s9948_s1 + $0xb8] sm:$0xff] }
  0xcc   :  { %92 = vxpose.xlu1.b32.cont [5/16] (narrow) %v23_v12, 88  ;;  %v35_v24 = vld [vmem:[%s9948_s1 + $0xa8] sm:$0xff]  ;;  %v41_v12 = vld [vmem:[%s9948_s1 + $0xd8] sm:$0xff] }
  0xd0   :  { %93 = vxpose.xlu1.b32.cont [6/16] (narrow) %v25_v46, 88  ;;  %v43_v46 = vld [vmem:[%s9948_s1 + $0xe8] sm:$0xff] }
  0xd4   :  { %94 = vxpose.xlu1.b32.cont [7/16] (narrow) %v27_v34, 88 }
  0xd8   :  { %95 = vxpose.xlu1.b32.cont [8/16] (narrow) %v29_v4, 88 }
  0xdc   :  { %96 = vxpose.xlu1.b32.cont [9/16] (narrow) %v31_v7, 88 }
  0xe0   :  { %97 = vxpose.xlu1.b32.cont [10/16] (narrow) %v33_v37, 88 }
  0xe4   :  { %98 = vxpose.xlu1.b32.cont [11/16] (narrow) %v35_v24, 88  ;;  %v45_v24 = vld [vmem:[%s9948_s1 + $0xf8] sm:$0xff] }
  0xe8   :  { %99 = vxpose.xlu1.b32.cont [12/16] (narrow) %v37_v28, 88 }
  0xec   :  { %100 = vxpose.xlu1.b32.cont [13/16] (narrow) %v39_v31, 88 }
  0xf0   :  { %101 = vxpose.xlu1.b32.cont [14/16] (narrow) %v41_v12, 88  ;;  %v136_v34 = vpop.trf.xlu0 }
  0xf1   :  { %v452_v4 = vsel %vm450_vm1, %v136_v34, 0 }
  0xf2   :  { %v7727_v7 = vand.u32 4294901760, %v452_v4 }
  0xf4   :  { %102 = vxpose.xlu1.b32.cont [15/16] (narrow) %v43_v46, 88  ;;  %v7730_v37 = vsub.f32 %v452_v4, %v7727_v7  ;;  %v137_v28 = vpop.trf.xlu0 }
  0xf5   :  { %v455_v31 = vsel %vm450_vm1, %v137_v28, 0 }
  0xf6   :  { %10387 = vst [vmem:[#allocation72_spill] sm:$0xff] %v7730_v37  ;;  %v7736_v12 = vand.u32 4294901760, %v455_v31  ;;  %v7739_v47 = vand.u32 4294901760, %v7730_v37 }
  0xf8   :  { %10388 = vst [vmem:[#allocation73_spill] sm:$0xff] %v7739_v47  ;;  %103 = vxpose.xlu1.b32.end [16/16] (narrow) %v45_v24, 88  ;;  %v138_v34 = vpop.trf.xlu0  ;;  %v623_v46 = vsub.f32 %v7730_v37, %v7739_v47  ;;  %v7744_v4 = vsub.f32 %v455_v31, %v7736_v12 }
  0xf9   :  { %v458_v36 = vsel %vm450_vm1, %v138_v34, 0 }
  0xfa   :  { %10389 = vst [vmem:[#allocation74_spill] sm:$0xff] %v7744_v4  ;;  %v7747_v58 = vand.u32 4294901760, %v458_v36  ;;  %v624_v48 = vand.u32 4294901760, %v623_v46  ;;  %v7756_v47 = vand.u32 4294901760, %v7744_v4 }
  0xfb   :  { %v72_v49 = vpop.trf.xlu1 }
  0xfc   :  { %v7749_v28 = vand.u32 4294901760, %v72_v49  ;;  %625 = vmatprep.mubr.f32.mxu0 %v624_v48  ;;  %3314 = vmatprep.mubr.f32.mxu1 %v624_v48  ;;  %v139_v6 = vpop.trf.xlu0  ;;  %v7752_v24 = vsub.f32 %v458_v36, %v7747_v58  ;;  %10391 = vst [vmem:[#allocation76_spill] sm:$0xff] %v7756_v47 }
  0xfd   :  { %v461_v9 = vsel %vm450_vm1, %v139_v6, 0  ;;  %v638_v6 = vsub.f32 %v7744_v4, %v7756_v47 }
  0xfe   :  { %10390 = vst [vmem:[#allocation75_spill] sm:$0xff] %v7752_v24  ;;  %v7759_v31 = vsub.f32 %v72_v49, %v7749_v28  ;;  %v7761_v34 = vand.u32 4294901760, %v461_v9  ;;  %v7772_v29 = vand.u32 4294901760, %v7752_v24 }
  0xff   :  { %v73_v46 = vpop.trf.xlu1 }
 0x100   :  { %10392 = vst [vmem:[#allocation77_spill] sm:$0xff] %v7759_v31  ;;  %v7763_v37 = vand.u32 4294901760, %v73_v46  ;;  %v140_v20 = vpop.trf.xlu0  ;;  %v7766_v48 = vand.u32 4294901760, %v7759_v31  ;;  %10394 = vst [vmem:[#allocation79_spill] sm:$0xff] %v7772_v29  ;;  %v7778_v44 = vsub.f32 %v461_v9, %v7761_v34  ;;  %v653_v39 = vsub.f32 %v7752_v24, %v7772_v29 }
 0x101   :  { %v464_v36 = vsel %vm450_vm1, %v140_v20, 0 }
 0x102   :  { %10393 = vst [vmem:[#allocation78_spill] sm:$0xff] %v7766_v48  ;;  %v7775_v49 = vsub.f32 %v73_v46, %v7763_v37  ;;  %10396 = vst [vmem:[#allocation81_spill] sm:$0xff] %v7778_v44  ;;  %v7780_v35 = vand.u32 4294901760, %v464_v36  ;;  %v629_v0 = vsub.f32 %v7759_v31, %v7766_v48  ;;  %v639_v46 = vand.u32 4294901760, %v638_v6 }
 0x103   :  { %v74_v57 = vpop.trf.xlu1  ;;  %v7803_v31 = vand.u32 4294901760, %v7778_v44 }
 0x104   :  { %10395 = vst [vmem:[#allocation80_spill] sm:$0xff] %v7775_v49  ;;  %v7784_v13 = vand.u32 4294901760, %v74_v57  ;;  %v630_v20 = vand.u32 4294901760, %v629_v0  ;;  %v141_v10 = vpop.trf.xlu0  ;;  %v7787_v47 = vand.u32 4294901760, %v7775_v49  ;;  %v7790_v4 = vsub.f32 %v464_v36, %v7780_v35 }
 0x105   :  { %v467_v9 = vsel %vm450_vm1, %v141_v10, 0  ;;  %10400 = vst [vmem:[#allocation85_spill] sm:$0xff] %v7803_v31 }
 0x106   :  { %10397 = vst [vmem:[#allocation82_spill] sm:$0xff] %v7787_v47  ;;  %10398 = vst [vmem:[#allocation83_spill] sm:$0xff] %v7790_v4  ;;  %v7796_v38 = vsub.f32 %v74_v57, %v7784_v13  ;;  %631 = vmatmul.mubr.f32.vlgmr.msra.gmra.mrb[0].mxu0 %v630_v20  ;;  %3320 = vmatmul.mubr.f32.vlgmr.msra.gmra.mrb[0].mxu1 %v630_v20  ;;  %v7798_v48 = vand.u32 4294901760, %v467_v9  ;;  %v644_v0 = vsub.f32 %v7775_v49, %v7787_v47 }
 0x107   :  { %5889 = vmatpush1.bf16.msra.mxu0 %v7306_v40  ;;  %6069 = vmatpush1.bf16.msra.mxu1 %v7308_v41  ;;  %v75_v10 = vpop.trf.xlu1  ;;  %v654_v40 = vand.u32 4294901760, %v653_v39  ;;  %v7819_v47 = vand.u32 4294901760, %v7790_v4 }
 0x108   :  { %10399 = vst [vmem:[#allocation84_spill] sm:$0xff] %v7796_v38  ;;  %v7807_v36 = vand.u32 4294901760, %v75_v10  ;;  %640 = vmatprep.mubr.f32.mxu0 %v639_v46  ;;  %3329 = vmatprep.mubr.f32.mxu1 %v639_v46  ;;  %v645_v57 = vand.u32 4294901760, %v644_v0  ;;  %v142_v6 = vpop.trf.xlu0  ;;  %v7810_v20 = vand.u32 4294901760, %v7796_v38  ;;  %v7815_v29 = vsub.f32 %v467_v9, %v7798_v48 }
 0x109   :  { %5890 = vmatprep.subr.bf16.mxu0 %v10346_v30  ;;  %6070 = vmatprep.subr.bf16.mxu1 %v10346_v30  ;;  %v470_v41 = vsel %vm450_vm1, %v142_v6, 0  ;;  %10403 = vst [vmem:[#allocation88_spill] sm:$0xff] %v7819_v47  ;;  %v668_v9 = vsub.f32 %v7778_v44, %v7803_v31 }
 0x10a   :  { %10401 = vst [vmem:[#allocation86_spill] sm:$0xff] %v7810_v20  ;;  %10402 = vst [vmem:[#allocation87_spill] sm:$0xff] %v7815_v29  ;;  %v7822_v46 = vsub.f32 %v75_v10, %v7807_v36  ;;  %646 = vmatmul.mubr.f32.gmra.mrb[2].mxu0 %v645_v57  ;;  %3335 = vmatmul.mubr.f32.gmra.mrb[2].mxu1 %v645_v57  ;;  %v7824_v0 = vand.u32 4294901760, %v470_v41  ;;  %v659_v24 = vsub.f32 %v7796_v38, %v7810_v20 }
 0x10b   :  { %5892 = vmatpush1.bf16.msra.mxu0 %v7329_v60  ;;  %6072 = vmatpush1.bf16.msra.mxu1 %v7341_v14  ;;  %v76_v39 = vpop.trf.xlu1  ;;  %v683_v14 = vsub.f32 %v7790_v4, %v7819_v47  ;;  %v7846_v20 = vand.u32 4294901760, %v7815_v29 }
 0x10c   :  { %10404 = vst [vmem:[#allocation89_spill] sm:$0xff] %v7822_v46  ;;  %v7832_v6 = vand.u32 4294901760, %v76_v39  ;;  %655 = vmatprep.mubr.f32.mxu0 %v654_v40  ;;  %3344 = vmatprep.mubr.f32.mxu1 %v654_v40  ;;  %v660_v10 = vand.u32 4294901760, %v659_v24  ;;  %v143_v49 = vpop.trf.xlu0  ;;  %v7835_v57 = vand.u32 4294901760, %v7822_v46  ;;  %v7840_v31 = vsub.f32 %v470_v41, %v7824_v0 }
 0x10d   :  { %5893 = vmatprep.subr.bf16.mxu0 %v10346_v30  ;;  %6073 = vmatprep.subr.bf16.mxu1 %v10346_v30  ;;  %v473_v60 = vsel %vm450_vm1, %v143_v49, 0  ;;  %10407 = vst [vmem:[#allocation92_spill] sm:$0xff] %v7846_v20  ;;  %v669_v40 = vand.u32 4294901760, %v668_v9  ;;  %v684_v9 = vand.u32 4294901760, %v683_v14 }
 0x10e   :  { %10405 = vst [vmem:[#allocation90_spill] sm:$0xff] %v7835_v57  ;;  %10406 = vst [vmem:[#allocation91_spill] sm:$0xff] %v7840_v31  ;;  %v7849_v24 = vsub.f32 %v76_v39, %v7832_v6  ;;  %661 = vmatmul.mubr.f32.gmra.mrb[4].mxu0 %v660_v10  ;;  %3350 = vmatmul.mubr.f32.gmra.mrb[4].mxu1 %v660_v10  ;;  %v7851_v44 = vand.u32 4294901760, %v473_v60  ;;  %v674_v41 = vsub.f32 %v7822_v46, %v7835_v57 }
 0x10f   :  { %5895 = vmatpush1.bf16.msra.mxu0 %v7371_v52  ;;  %6075 = vmatpush1.bf16.msra.mxu1 %v7392_v27  ;;  %v77_v49 = vpop.trf.xlu1  ;;  %v698_v52 = vsub.f32 %v7815_v29, %v7846_v20  ;;  %v7868_v27 = vand.u32 4294901760, %v7840_v31 }
 0x110   :  { %10408 = vst [vmem:[#allocation93_spill] sm:$0xff] %v7849_v24  ;;  %v7857_v47 = vand.u32 4294901760, %v77_v49  ;;  %670 = vmatprep.mubr.f32.mxu0 %v669_v40  ;;  %3359 = vmatprep.mubr.f32.mxu1 %v669_v40  ;;  %v675_v4 = vand.u32 4294901760, %v674_v41  ;;  %v144_v39 = vpop.trf.xlu0  ;;  %v7860_v38 = vand.u32 4294901760, %v7849_v24  ;;  %v7874_v41 = vsub.f32 %v473_v60, %v7851_v44 }
 0x111   :  { %5896 = vmatprep.subr.bf16.mxu0 %v10346_v30  ;;  %6076 = vmatprep.subr.bf16.mxu1 %v10346_v30  ;;  %v476_v10 = vsel %vm450_vm1, %v144_v39, 0  ;;  %10410 = vst [vmem:[#allocation95_spill] sm:$0xff] %v7868_v27 }
 0x112   :  { %10409 = vst [vmem:[#allocation94_spill] sm:$0xff] %v7860_v38  ;;  %v7871_v40 = vsub.f32 %v77_v49, %v7857_v47  ;;  %10412 = vst [vmem:[#allocation97_spill] sm:$0xff] %v7874_v41  ;;  %676 = vmatmul.mubr.f32.gmra.mrb[6].mxu0 %v675_v4  ;;  %3365 = vmatmul.mubr.f32.gmra.mrb[6].mxu1 %v675_v4  ;;  %v7876_v57 = vand.u32 4294901760, %v476_v10  ;;  %v689_v14 = vsub.f32 %v7849_v24, %v7860_v38 }
 0x113   :  { %5898 = vmatpush1.bf16.msra.mxu0 %v7404_v56  ;;  %6078 = vmatpush1.bf16.msra.mxu1 %v7434_v21  ;;  %v78_v39 = vpop.trf.xlu1  ;;  %v699_v56 = vand.u32 4294901760, %v698_v52  ;;  %v713_v38 = vsub.f32 %v7840_v31, %v7868_v27  ;;  %v7903_v46 = vand.u32 4294901760, %v7874_v41 }
 0x114   :  { %10411 = vst [vmem:[#allocation96_spill] sm:$0xff] %v7871_v40  ;;  %v7882_v20 = vand.u32 4294901760, %v78_v39  ;;  %685 = vmatprep.mubr.f32.mxu0 %v684_v9  ;;  %3374 = vmatprep.mubr.f32.mxu1 %v684_v9  ;;  %v690_v49 = vand.u32 4294901760, %v689_v14  ;;  %v145_v29 = vpop.trf.xlu0  ;;  %v7885_v60 = vand.u32 4294901760, %v7871_v40  ;;  %v7890_v4 = vsub.f32 %v476_v10, %v7876_v57 }
 0x115   :  { %5899 = vmatprep.subr.bf16.mxu0 %v10346_v30  ;;  %6079 = vmatprep.subr.bf16.mxu1 %v10346_v30  ;;  %v479_v21 = vsel %vm450_vm1, %v145_v29, 0  ;;  %10416 = vst [vmem:[#allocation101_spill] sm:$0xff] %v7903_v46 }
 0x116   :  { %10413 = vst [vmem:[#allocation98_spill] sm:$0xff] %v7885_v60  ;;  %10414 = vst [vmem:[#allocation99_spill] sm:$0xff] %v7890_v4  ;;  %v7896_v9 = vsub.f32 %v78_v39, %v7882_v20  ;;  %691 = vmatmul.mubr.f32.gmra.mrb[8].mxu0 %v690_v49  ;;  %3380 = vmatmul.mubr.f32.gmra.mrb[8].mxu1 %v690_v49  ;;  %v7898_v14 = vand.u32 4294901760, %v479_v21  ;;  %v704_v24 = vsub.f32 %v7871_v40, %v7885_v60 }
 0x117   :  { %5901 = vmatpush1.bf16.msra.mxu0 %v7455_v45  ;;  %6081 = vmatpush1.bf16.msra.mxu1 %v7467_v5  ;;  %v79_v29 = vpop.trf.xlu1  ;;  %v714_v45 = vand.u32 4294901760, %v713_v38  ;;  %v7919_v60 = vand.u32 4294901760, %v7890_v4 }
 0x118   :  { %10415 = vst [vmem:[#allocation100_spill] sm:$0xff] %v7896_v9  ;;  %v7907_v10 = vand.u32 4294901760, %v79_v29  ;;  %700 = vmatprep.mubr.f32.mxu0 %v699_v56  ;;  %3389 = vmatprep.mubr.f32.mxu1 %v699_v56  ;;  %v705_v52 = vand.u32 4294901760, %v704_v24  ;;  %v146_v39 = vpop.trf.xlu0  ;;  %v7910_v49 = vand.u32 4294901760, %v7896_v9  ;;  %v7915_v27 = vsub.f32 %v479_v21, %v7898_v14 }
 0x119   :  { %5902 = vmatprep.subr.bf16.mxu0 %v10346_v30  ;;  %6082 = vmatprep.subr.bf16.mxu1 %v10346_v30  ;;  %v482_v5 = vsel %vm450_vm1, %v146_v39, 0  ;;  %10419 = vst [vmem:[#allocation104_spill] sm:$0xff] %v7919_v60  ;;  %v728_v21 = vsub.f32 %v7874_v41, %v7903_v46 }
 0x11a   :  { %10417 = vst [vmem:[#allocation102_spill] sm:$0xff] %v7910_v49  ;;  %10418 = vst [vmem:[#allocation103_spill] sm:$0xff] %v7915_v27  ;;  %v7922_v56 = vsub.f32 %v79_v29, %v7907_v10  ;;  %706 = vmatmul.mubr.f32.gmra.mrb[10].mxu0 %v705_v52  ;;  %3395 = vmatmul.mubr.f32.gmra.mrb[10].mxu1 %v705_v52  ;;  %v7924_v24 = vand.u32 4294901760, %v482_v5  ;;  %v719_v31 = vsub.f32 %v7896_v9, %v7910_v49 }
 0x11b   :  { %5904 = vmatpush1.bf16.msra.mxu0 %v7497_v25  ;;  %6084 = vmatpush1.bf16.msra.mxu1 %v7521_v42  ;;  %v80_v38 = vpop.trf.xlu1  ;;  %v743_v42 = vsub.f32 %v7890_v4, %v7919_v60  ;;  %v7946_v49 = vand.u32 4294901760, %v7915_v27 }
 0x11c   :  { %10420 = vst [vmem:[#allocation105_spill] sm:$0xff] %v7922_v56  ;;  %v7932_v39 = vand.u32 4294901760, %v80_v38  ;;  %715 = vmatprep.mubr.f32.mxu0 %v714_v45  ;;  %3404 = vmatprep.mubr.f32.mxu1 %v714_v45  ;;  %v720_v29 = vand.u32 4294901760, %v719_v31  ;;  %v147_v40 = vpop.trf.xlu0  ;;  %v7935_v52 = vand.u32 4294901760, %v7922_v56  ;;  %v7940_v46 = vsub.f32 %v482_v5, %v7924_v24 }
 0x11d   :  { %5905 = vmatprep.subr.bf16.mxu0 %v10346_v30  ;;  %6085 = vmatprep.subr.bf16.mxu1 %v10346_v30  ;;  %v485_v25 = vsel %vm450_vm1, %v147_v40, 0  ;;  %10423 = vst [vmem:[#allocation108_spill] sm:$0xff] %v7946_v49  ;;  %v729_v45 = vand.u32 4294901760, %v728_v21  ;;  %v7957_v40 = vsub.f32 %v7670_v43, %v7681_v2 }
 0x11e   :  { %10421 = vst [vmem:[#allocation106_spill] sm:$0xff] %v7935_v52  ;;  %10422 = vst [vmem:[#allocation107_spill] sm:$0xff] %v7940_v46  ;;  %v7949_v31 = vsub.f32 %v80_v38, %v7932_v39  ;;  %721 = vmatmul.mubr.f32.gmra.mrb[12].mxu0 %v720_v29  ;;  %3410 = vmatmul.mubr.f32.gmra.mrb[12].mxu1 %v720_v29  ;;  %v7951_v41 = vand.u32 4294901760, %v485_v25  ;;  %v734_v5 = vsub.f32 %v7922_v56, %v7935_v52 }
 0x11f   :  { %5907 = vmatpush1.bf16.msra.mxu0 %v7536_v16  ;;  %6087 = vmatpush1.bf16.msra.mxu1 %v7569_v59  ;;  %v81_v60 = vpop.trf.xlu1  ;;  %v7963_v38 = vsub.f32 %v7666_v63, %v7677_v1  ;;  %v744_v16 = vand.u32 4294901760, %v743_v42  ;;  %v758_v63 = vsub.f32 %v7915_v27, %v7946_v49  ;;  %v7976_v43 = vand.u32 4294901760, %v7940_v46 }
 0x120   :  { %10424 = vst [vmem:[#allocation109_spill] sm:$0xff] %v7949_v31  ;;  %v7965_v29 = vand.u32 4294901760, %v81_v60  ;;  %730 = vmatprep.mubr.f32.mxu0 %v729_v45  ;;  %3419 = vmatprep.mubr.f32.mxu1 %v729_v45  ;;  %v735_v21 = vand.u32 4294901760, %v734_v5  ;;  %v148_v4 = vpop.trf.xlu0  ;;  %v7968_v52 = vand.u32 4294901760, %v7949_v31  ;;  %v7982_v5 = vsub.f32 %v485_v25, %v7951_v41 }
 0x121   :  { %5908 = vmatprep.subr.bf16.mxu0 %v10346_v30  ;;  %6088 = vmatprep.subr.bf16.mxu1 %v10346_v30  ;;  %v488_v59 = vsel %vm450_vm1, %v148_v4, 0  ;;  %10426 = vst [vmem:[#allocation111_spill] sm:$0xff] %v7976_v43 }
 0x122   :  { %10425 = vst [vmem:[#allocation110_spill] sm:$0xff] %v7968_v52  ;;  %v7979_v45 = vsub.f32 %v81_v60, %v7965_v29  ;;  %10428 = vst [vmem:[#allocation113_spill] sm:$0xff] %v7982_v5  ;;  %736 = vmatmul.mubr.f32.gmra.mrb[14].mxu0 %v735_v21  ;;  %3425 = vmatmul.mubr.f32.gmra.mrb[14].mxu1 %v735_v21  ;;  %v7984_v1 = vand.u32 4294901760, %v488_v59  ;;  %v749_v42 = vsub.f32 %v7949_v31, %v7968_v52 }
 0x123   :  { %5910 = vmatpush1.bf16.msra.mxu0 %v7593_v26  ;;  %6090 = vmatpush1.bf16.msra.mxu1 %v7608_v3  ;;  %v82_v49 = vpop.trf.xlu1  ;;  %v759_v3 = vand.u32 4294901760, %v758_v63  ;;  %v773_v60 = vsub.f32 %v7940_v46, %v7976_v43  ;;  %v8013_v31 = vand.u32 4294901760, %v7982_v5 }
 0x124   :  { %10427 = vst [vmem:[#allocation112_spill] sm:$0xff] %v7979_v45  ;;  %v7992_v2 = vand.u32 4294901760, %v82_v49  ;;  %745 = vmatprep.mubr.f32.mxu0 %v744_v16  ;;  %3434 = vmatprep.mubr.f32.mxu1 %v744_v16  ;;  %v750_v25 = vand.u32 4294901760, %v749_v42  ;;  %v149_v21 = vpop.trf.xlu0  ;;  %v7995_v27 = vand.u32 4294901760, %v7979_v45  ;;  %v8000_v26 = vsub.f32 %v488_v59, %v7984_v1 }
 0x125   :  { %5911 = vmatprep.subr.bf16.mxu0 %v10346_v30  ;;  %6091 = vmatprep.subr.bf16.mxu1 %v10346_v30  ;;  %v491_v4 = vsel %vm450_vm1, %v149_v21, 0  ;;  %10433 = vst [vmem:[#allocation118_spill] sm:$0xff] %v8013_v31  ;;  %v10434_v59 = vand.u32 4294901760, %v7957_v40  ;;  %v10435_v21 = vand.u32 4294901760, %v7963_v38 }
 0x126   :  { %10429 = vst [vmem:[#allocation114_spill] sm:$0xff] %v7995_v27  ;;  %10430 = vst [vmem:[#allocation115_spill] sm:$0xff] %v8000_v26  ;;  %v8006_v16 = vsub.f32 %v82_v49, %v7992_v2  ;;  %751 = vmatmul.mubr.f32.gmra.mrb[16].mxu0 %v750_v25  ;;  %3440 = vmatmul.mubr.f32.gmra.mrb[16].mxu1 %v750_v25  ;;  %v8008_v42 = vand.u32 4294901760, %v491_v4  ;;  %v764_v52 = vsub.f32 %v7979_v45, %v7995_v27 }
 0x127   :  { %v1170_v63 = vsub.f32 %v7957_v40, %v10434_v59  ;;  %5913 = vmatpush1.bf16.msra.mxu0 %v7638_v8  ;;  %6093 = vmatpush1.bf16.msra.mxu1 %v7659_v22  ;;  %v83_v49 = vpop.trf.xlu1  ;;  %v3859_v25 = vsub.f32 %v7963_v38, %v10435_v21  ;;  %v774_v8 = vand.u32 4294901760, %v773_v60  ;;  %v8035_v21 = vand.u32 4294901760, %v8000_v26 }
 0x128   :  { %10431 = vst [vmem:[#allocation116_spill] sm:$0xff] %v8006_v16  ;;  %10432 = vst [vmem:[#allocation117_spill] sm:$0xff] %v8008_v42  ;;  %v8023_v43 = vand.u32 4294901760, %v83_v49  ;;  %760 = vmatprep.mubr.f32.mxu0 %v759_v3  ;;  %3449 = vmatprep.mubr.f32.mxu1 %v759_v3  ;;  %v765_v27 = vand.u32 4294901760, %v764_v52  ;;  %v150_v46 = vpop.trf.xlu0  ;;  %v8026_v45 = vand.u32 4294901760, %v8006_v16  ;;  %v8031_v22 = vsub.f32 %v491_v4, %v8008_v42 }
 0x129   :  { %5914 = vmatprep.subr.bf16.mxu0 %v10346_v30  ;;  %6094 = vmatprep.subr.bf16.mxu1 %v10346_v30  ;;  %v494_v59 = vsel %vm450_vm1, %v150_v46, 0  ;;  %10438 = vst [vmem:[#allocation121_spill] sm:$0xff] %v8035_v21  ;;  %v788_v4 = vsub.f32 %v7982_v5, %v8013_v31  ;;  %v1171_v60 = vand.u32 4294901760, %v1170_v63  ;;  %v803_v63 = vsub.f32 %v8000_v26, %v8035_v21 }
 0x12a   :  { %10436 = vst [vmem:[#allocation119_spill] sm:$0xff] %v8026_v45  ;;  %10437 = vst [vmem:[#allocation120_spill] sm:$0xff] %v8031_v22  ;;  %v8038_v3 = vsub.f32 %v83_v49, %v8023_v43  ;;  %766 = vmatmul.mubr.f32.gmra.mrb[18].mxu0 %v765_v27  ;;  %3455 = vmatmul.mubr.f32.gmra.mrb[18].mxu1 %v765_v27  ;;  %v8040_v52 = vand.u32 4294901760, %v494_v59  ;;  %v779_v56 = vsub.f32 %v8006_v16, %v8026_v45 }
 0x12b   :  { %5916 = vmatpush1.bf16.msra.mxu0 %v7686_v53  ;;  %6096 = vmatpush1.bf16.msra.mxu1 %v7694_v11  ;;  %v84_v46 = vpop.trf.xlu1  ;;  %v3860_v53 = vand.u32 4294901760, %v3859_v25  ;;  %v804_v16 = vand.u32 4294901760, %v803_v63 }
 0x12c   :  { %10439 = vst [vmem:[#allocation122_spill] sm:$0xff] %v8038_v3  ;;  %10440 = vst [vmem:[#allocation123_spill] sm:$0xff] %v8040_v52  ;;  %v8048_v9 = vand.u32 4294901760, %v84_v46  ;;  %775 = vmatprep.mubr.f32.mxu0 %v774_v8  ;;  %3464 = vmatprep.mubr.f32.mxu1 %v774_v8  ;;  %v8051_v27 = vsub.f32 %v494_v59, %v8040_v52  ;;  %v780_v49 = vand.u32 4294901760, %v779_v56  ;;  %v151_v42 = vpop.trf.xlu0  ;;  %v8054_v45 = vand.u32 4294901760, %v8038_v3 }
 0x12d   :  { %1166 = vmatprep.subr.mxu0 %v10384_v23  ;;  %3855 = vmatprep.subr.mxu1 %v10384_v23  ;;  %v497_v11 = vsel %vm450_vm1, %v151_v42, 0  ;;  %v8062_v8 = vand.u32 4294901760, %v8031_v22  ;;  %v789_v56 = vand.u32 4294901760, %v788_v4 }
 0x12e   :  { %10441 = vst [vmem:[#allocation124_spill] sm:$0xff] %v8048_v9  ;;  %10442 = vst [vmem:[#allocation125_spill] sm:$0xff] %v8051_v27  ;;  %v8065_v59 = vsub.f32 %v84_v46, %v8048_v9  ;;  %781 = vmatmul.mubr.f32.gmra.mrb[20].mxu0 %v780_v49  ;;  %3470 = vmatmul.mubr.f32.gmra.mrb[20].mxu1 %v780_v49  ;;  %v8067_v31 = vand.u32 4294901760, %v497_v11  ;;  %v794_v5 = vsub.f32 %v8038_v3, %v8054_v45 }
 0x12f   :  { %10443 = vst [vmem:[#allocation126_spill] sm:$0xff] %v8054_v45  ;;  %10444 = vst [vmem:[#allocation127_spill] sm:$0xff] %v8062_v8  ;;  %1172 = vmatpush1.msra.mxu0 %v1171_v60  ;;  %3861 = vmatpush1.msra.mxu1 %v3860_v53  ;;  %v85_v42 = vpop.trf.xlu1  ;;  %v8077_v49 = vand.u32 4294901760, %v8051_v27  ;;  %v818_v53 = vsub.f32 %v8031_v22, %v8062_v8 }
 0x130   :  { %10445 = vst [vmem:[#allocation128_spill] sm:$0xff] %v8065_v59  ;;  %10446 = vst [vmem:[#allocation129_spill] sm:$0xff] %v8067_v31  ;;  %v8071_v25 = vand.u32 4294901760, %v85_v42  ;;  %790 = vmatprep.mubr.f32.mxu0 %v789_v56  ;;  %3479 = vmatprep.mubr.f32.mxu1 %v789_v56  ;;  %v795_v21 = vand.u32 4294901760, %v794_v5  ;;  %v168_v26 = vpop.trf.xlu0  ;;  %v8074_v46 = vand.u32 4294901760, %v8065_v59  ;;  %v8080_v4 = vsub.f32 %v497_v11, %v8067_v31 }
 0x131   :  { %10449 = vst [vmem:[#allocation132_spill] sm:$0xff] %v8077_v49  ;;  %v500_v60 = vsel %vm450_vm1, %v168_v26, 0  ;;  %5917 = vmatprep.subr.bf16.mxu0 %v10346_v30  ;;  %6097 = vmatprep.subr.bf16.mxu1 %v10346_v30  ;;  %v819_v3 = vand.u32 4294901760, %v818_v53 }
 0x132   :  { %10447 = vst [vmem:[#allocation130_spill] sm:$0xff] %v8071_v25  ;;  %10448 = vst [vmem:[#allocation131_spill] sm:$0xff] %v8074_v46  ;;  %v8088_v5 = vsub.f32 %v85_v42, %v8071_v25  ;;  %796 = vmatmul.mubr.f32.gmra.mrb[22].mxu0 %v795_v21  ;;  %3485 = vmatmul.mubr.f32.gmra.mrb[22].mxu1 %v795_v21  ;;  %v8090_v56 = vand.u32 4294901760, %v500_v60  ;;  %v809_v11 = vsub.f32 %v8065_v59, %v8074_v46 }
 0x133   :  { %10450 = vst [vmem:[#allocation133_spill] sm:$0xff] %v8080_v4  ;;  %v86_v63 = vpop.trf.xlu1  ;;  %805 = vmatprep.mubr.f32.mxu0 %v804_v16  ;;  %3494 = vmatprep.mubr.f32.mxu1 %v804_v16  ;;  %v833_v42 = vsub.f32 %v8051_v27, %v8077_v49  ;;  %v8106_v46 = vand.u32 4294901760, %v8080_v4 }
 0x134   :  { %10451 = vst [vmem:[#allocation134_spill] sm:$0xff] %v8088_v5  ;;  %10452 = vst [vmem:[#allocation135_spill] sm:$0xff] %v8090_v56  ;;  %v8094_v26 = vand.u32 4294901760, %v86_v63  ;;  %v810_v8 = vand.u32 4294901760, %v809_v11  ;;  %v169_v45 = vpop.trf.xlu0  ;;  %v8097_v22 = vand.u32 4294901760, %v8088_v5  ;;  %v8102_v21 = vsub.f32 %v500_v60, %v8090_v56 }
 0x135   :  { %v503_v31 = vsel %vm450_vm1, %v169_v45, 0  ;;  %10456 = vst [vmem:[#allocation139_spill] sm:$0xff] %v8106_v46  ;;  %v834_v45 = vand.u32 4294901760, %v833_v42 }
 0x136   :  { %10453 = vst [vmem:[#allocation136_spill] sm:$0xff] %v8094_v26  ;;  %10454 = vst [vmem:[#allocation137_spill] sm:$0xff] %v8097_v22  ;;  %v8109_v16 = vsub.f32 %v86_v63, %v8094_v26  ;;  %811 = vmatmul.mubr.f32.gmra.mrb[24].mxu0 %v810_v8  ;;  %3500 = vmatmul.mubr.f32.gmra.mrb[24].mxu1 %v810_v8  ;;  %v8111_v11 = vand.u32 4294901760, %v503_v31  ;;  %v824_v59 = vsub.f32 %v8088_v5, %v8097_v22 }
 0x137   :  { %10455 = vst [vmem:[#allocation138_spill] sm:$0xff] %v8102_v21  ;;  %v87_v49 = vpop.trf.xlu1  ;;  %820 = vmatprep.mubr.f32.mxu0 %v819_v3  ;;  %3509 = vmatprep.mubr.f32.mxu1 %v819_v3  ;;  %v848_v26 = vsub.f32 %v8080_v4, %v8106_v46  ;;  %v8127_v22 = vand.u32 4294901760, %v8102_v21 }
 0x138   :  { %10457 = vst [vmem:[#allocation140_spill] sm:$0xff] %v8109_v16  ;;  %10458 = vst [vmem:[#allocation141_spill] sm:$0xff] %v8111_v11  ;;  %v8115_v60 = vand.u32 4294901760, %v87_v49  ;;  %v825_v53 = vand.u32 4294901760, %v824_v59  ;;  %v170_v27 = vpop.trf.xlu0  ;;  %v8118_v56 = vand.u32 4294901760, %v8109_v16  ;;  %v8121_v63 = vsub.f32 %v503_v31, %v8111_v11 }
 0x139   :  { %v506_v8 = vsel %vm450_vm1, %v170_v27, 0  ;;  %10462 = vst [vmem:[#allocation145_spill] sm:$0xff] %v8127_v22  ;;  %v849_v11 = vand.u32 4294901760, %v848_v26 }
 0x13a   :  { %10459 = vst [vmem:[#allocation142_spill] sm:$0xff] %v8115_v60  ;;  %10460 = vst [vmem:[#allocation143_spill] sm:$0xff] %v8118_v56  ;;  %v8130_v3 = vsub.f32 %v87_v49, %v8115_v60  ;;  %826 = vmatmul.mubr.f32.gmra.mrb[26].mxu0 %v825_v53  ;;  %3515 = vmatmul.mubr.f32.gmra.mrb[26].mxu1 %v825_v53  ;;  %v8132_v59 = vand.u32 4294901760, %v506_v8  ;;  %v839_v42 = vsub.f32 %v8109_v16, %v8118_v56 }
 0x13b   :  { %10461 = vst [vmem:[#allocation144_spill] sm:$0xff] %v8121_v63  ;;  %835 = vmatprep.mubr.f32.mxu0 %v834_v45  ;;  %3524 = vmatprep.mubr.f32.mxu1 %v834_v45  ;;  %v863_v60 = vsub.f32 %v8102_v21, %v8127_v22  ;;  %v8148_v56 = vand.u32 4294901760, %v8121_v63 }
 0x13c   :  { %10463 = vst [vmem:[#allocation146_spill] sm:$0xff] %v8130_v3  ;;  %10464 = vst [vmem:[#allocation147_spill] sm:$0xff] %v8132_v59  ;;  %v104_v31 = vpop.trf.xlu1  ;;  %v8139_v46 = vsub.f32 %v506_v8, %v8132_v59  ;;  %v840_v4 = vand.u32 4294901760, %v839_v42  ;;  %v171_v5 = vpop.trf.xlu0  ;;  %v8142_v49 = vand.u32 4294901760, %v8130_v3 }
 0x13d   :  { %v8136_v27 = vand.u32 4294901760, %v104_v31  ;;  %v509_v53 = vsel %vm450_vm1, %v171_v5, 0  ;;  %10468 = vst [vmem:[#allocation151_spill] sm:$0xff] %v8148_v56  ;;  %v864_v59 = vand.u32 4294901760, %v863_v60 }
 0x13e   :  { %10466 = vst [vmem:[#allocation149_spill] sm:$0xff] %v8139_v46  ;;  %10467 = vst [vmem:[#allocation150_spill] sm:$0xff] %v8142_v49  ;;  %841 = vmatmul.mubr.f32.gmra.mrb[28].mxu0 %v840_v4  ;;  %3530 = vmatmul.mubr.f32.gmra.mrb[28].mxu1 %v840_v4  ;;  %v8153_v8 = vand.u32 4294901760, %v509_v53  ;;  %v854_v42 = vsub.f32 %v8130_v3, %v8142_v49  ;;  %v878_v49 = vsub.f32 %v8121_v63, %v8148_v56 }
 0x13f   :  { %10465 = vst [vmem:[#allocation148_spill] sm:$0xff] %v8136_v27  ;;  %v8151_v45 = vsub.f32 %v104_v31, %v8136_v27  ;;  %850 = vmatprep.mubr.f32.mxu0 %v849_v11  ;;  %3539 = vmatprep.mubr.f32.mxu1 %v849_v11  ;;  %v8163_v31 = vand.u32 4294901760, %v8139_v46 }
 0x140   :  { %10470 = vst [vmem:[#allocation153_spill] sm:$0xff] %v8153_v8  ;;  %v105_v16 = vpop.trf.xlu1  ;;  %v855_v26 = vand.u32 4294901760, %v854_v42  ;;  %v172_v22 = vpop.trf.xlu0  ;;  %v8166_v4 = vsub.f32 %v509_v53, %v8153_v8  ;;  %v879_v56 = vand.u32 4294901760, %v878_v49 }
 0x141   :  { %10469 = vst [vmem:[#allocation152_spill] sm:$0xff] %v8151_v45  ;;  %v8157_v5 = vand.u32 4294901760, %v105_v16  ;;  %v8160_v21 = vand.u32 4294901760, %v8151_v45  ;;  %10473 = vst [vmem:[#allocation156_spill] sm:$0xff] %v8163_v31  ;;  %v512_v27 = vsel %vm450_vm1, %v172_v22, 0 }
 0x142   :  { %10474 = vst [vmem:[#allocation157_spill] sm:$0xff] %v8166_v4  ;;  %856 = vmatmul.mubr.f32.gmra.mrb[30].mxu0 %v855_v26  ;;  %3545 = vmatmul.mubr.f32.gmra.mrb[30].mxu1 %v855_v26  ;;  %v8174_v42 = vand.u32 4294901760, %v512_v27 }
 0x143   :  { %10471 = vst [vmem:[#allocation154_spill] sm:$0xff] %v8157_v5  ;;  %10472 = vst [vmem:[#allocation155_spill] sm:$0xff] %v8160_v21  ;;  %v8172_v11 = vsub.f32 %v105_v16, %v8157_v5  ;;  %v869_v3 = vsub.f32 %v8151_v45, %v8160_v21  ;;  %865 = vmatprep.mubr.f32.mxu0 %v864_v59  ;;  %3554 = vmatprep.mubr.f32.mxu1 %v864_v59  ;;  %v8190_v21 = vand.u32 4294901760, %v8166_v4 }
 0x144   :  { %10476 = vst [vmem:[#allocation159_spill] sm:$0xff] %v8174_v42  ;;  %v106_v52 = vpop.trf.xlu1  ;;  %v173_v22 = vpop.trf.xlu0  ;;  %v893_v16 = vsub.f32 %v8139_v46, %v8163_v31  ;;  %v8186_v26 = vsub.f32 %v512_v27, %v8174_v42 }
 0x145   :  { %10475 = vst [vmem:[#allocation158_spill] sm:$0xff] %v8172_v11  ;;  %v8178_v53 = vand.u32 4294901760, %v106_v52  ;;  %v870_v60 = vand.u32 4294901760, %v869_v3  ;;  %v8181_v8 = vand.u32 4294901760, %v8172_v11  ;;  %v515_v63 = vsel %vm450_vm1, %v173_v22, 0  ;;  %10480 = vst [vmem:[#allocation163_spill] sm:$0xff] %v8190_v21 }
 0x146   :  { %10479 = vst [vmem:[#allocation162_spill] sm:$0xff] %v8186_v26  ;;  %v8195_v3 = vand.u32 4294901760, %v515_v63  ;;  %v894_v22 = vand.u32 4294901760, %v893_v16 }
 0x147   :  { %10477 = vst [vmem:[#allocation160_spill] sm:$0xff] %v8178_v53  ;;  %10478 = vst [vmem:[#allocation161_spill] sm:$0xff] %v8181_v8  ;;  %v8193_v59 = vsub.f32 %v106_v52, %v8178_v53  ;;  %871 = vmatmul.mubr.f32.gmra.mrb[32].mxu0 %v870_v60  ;;  %3560 = vmatmul.mubr.f32.gmra.mrb[32].mxu1 %v870_v60  ;;  %v884_v45 = vsub.f32 %v8172_v11, %v8181_v8  ;;  %v8211_v8 = vand.u32 4294901760, %v8186_v26 }
 0x148   :  { %10482 = vst [vmem:[#allocation165_spill] sm:$0xff] %v8195_v3  ;;  %v107_v31 = vpop.trf.xlu1  ;;  %880 = vmatprep.mubr.f32.mxu0 %v879_v56  ;;  %3569 = vmatprep.mubr.f32.mxu1 %v879_v56  ;;  %v174_v46 = vpop.trf.xlu0  ;;  %v8205_v52 = vsub.f32 %v515_v63, %v8195_v3  ;;  %v908_v53 = vsub.f32 %v8166_v4, %v8190_v21 }
 0x149   :  { %10481 = vst [vmem:[#allocation164_spill] sm:$0xff] %v8193_v59  ;;  %v8199_v27 = vand.u32 4294901760, %v107_v31  ;;  %v885_v49 = vand.u32 4294901760, %v884_v45  ;;  %v8202_v42 = vand.u32 4294901760, %v8193_v59  ;;  %v518_v60 = vsel %vm450_vm1, %v174_v46, 0  ;;  %10486 = vst [vmem:[#allocation169_spill] sm:$0xff] %v8211_v8 }
 0x14a   :  { %10485 = vst [vmem:[#allocation168_spill] sm:$0xff] %v8205_v52  ;;  %v8216_v45 = vand.u32 4294901760, %v518_v60  ;;  %v909_v3 = vand.u32 4294901760, %v908_v53 }
 0x14b   :  { %10483 = vst [vmem:[#allocation166_spill] sm:$0xff] %v8199_v27  ;;  %10484 = vst [vmem:[#allocation167_spill] sm:$0xff] %v8202_v42  ;;  %v8214_v56 = vsub.f32 %v107_v31, %v8199_v27  ;;  %886 = vmatmul.mubr.f32.gmra.mrb[34].mxu0 %v885_v49  ;;  %3575 = vmatmul.mubr.f32.gmra.mrb[34].mxu1 %v885_v49  ;;  %v899_v16 = vsub.f32 %v8193_v59, %v8202_v42  ;;  %v8232_v42 = vand.u32 4294901760, %v8205_v52 }
 0x14c   :  { %10488 = vst [vmem:[#allocation171_spill] sm:$0xff] %v8216_v45  ;;  %v108_v63 = vpop.trf.xlu1  ;;  %895 = vmatprep.mubr.f32.mxu0 %v894_v22  ;;  %3584 = vmatprep.mubr.f32.mxu1 %v894_v22  ;;  %v8223_v21 = vsub.f32 %v518_v60, %v8216_v45  ;;  %v175_v11 = vpop.trf.xlu0  ;;  %v923_v27 = vsub.f32 %v8186_v26, %v8211_v8 }
 0x14d   :  { %10487 = vst [vmem:[#allocation170_spill] sm:$0xff] %v8214_v56  ;;  %v8220_v46 = vand.u32 4294901760, %v108_v63  ;;  %v900_v4 = vand.u32 4294901760, %v899_v16  ;;  %v8226_v31 = vand.u32 4294901760, %v8214_v56  ;;  %v521_v49 = vsel %vm450_vm1, %v175_v11, 0  ;;  %10492 = vst [vmem:[#allocation175_spill] sm:$0xff] %v8232_v42 }
 0x14e   :  { %10490 = vst [vmem:[#allocation173_spill] sm:$0xff] %v8223_v21  ;;  %v8237_v60 = vand.u32 4294901760, %v521_v49  ;;  %v924_v45 = vand.u32 4294901760, %v923_v27 }
 0x14f   :  { %10489 = vst [vmem:[#allocation172_spill] sm:$0xff] %v8220_v46  ;;  %10491 = vst [vmem:[#allocation174_spill] sm:$0xff] %v8226_v31  ;;  %v8235_v22 = vsub.f32 %v108_v63, %v8220_v46  ;;  %901 = vmatmul.mubr.f32.gmra.mrb[36].mxu0 %v900_v4  ;;  %3590 = vmatmul.mubr.f32.gmra.mrb[36].mxu1 %v900_v4  ;;  %v914_v16 = vsub.f32 %v8214_v56, %v8226_v31  ;;  %v8247_v63 = vand.u32 4294901760, %v8223_v21 }
 0x150   :  { %10494 = vst [vmem:[#allocation177_spill] sm:$0xff] %v8237_v60  ;;  %v109_v59 = vpop.trf.xlu1  ;;  %910 = vmatprep.mubr.f32.mxu0 %v909_v3  ;;  %3599 = vmatprep.mubr.f32.mxu1 %v909_v3  ;;  %v176_v8 = vpop.trf.xlu0  ;;  %v8250_v4 = vsub.f32 %v521_v49, %v8237_v60  ;;  %v938_v31 = vsub.f32 %v8205_v52, %v8232_v42 }
 0x151   :  { %10493 = vst [vmem:[#allocation176_spill] sm:$0xff] %v8235_v22  ;;  %v8241_v11 = vand.u32 4294901760, %v109_v59  ;;  %v915_v53 = vand.u32 4294901760, %v914_v16  ;;  %v8244_v26 = vand.u32 4294901760, %v8235_v22  ;;  %10497 = vst [vmem:[#allocation180_spill] sm:$0xff] %v8247_v63  ;;  %v524_v46 = vsel %vm450_vm1, %v176_v8, 0 }
 0x152   :  { %10498 = vst [vmem:[#allocation181_spill] sm:$0xff] %v8250_v4  ;;  %v8258_v16 = vand.u32 4294901760, %v524_v46  ;;  %v939_v42 = vand.u32 4294901760, %v938_v31 }
 0x153   :  { %10495 = vst [vmem:[#allocation178_spill] sm:$0xff] %v8241_v11  ;;  %10496 = vst [vmem:[#allocation179_spill] sm:$0xff] %v8244_v26  ;;  %v8256_v3 = vsub.f32 %v109_v59, %v8241_v11  ;;  %916 = vmatmul.mubr.f32.gmra.mrb[38].mxu0 %v915_v53  ;;  %3605 = vmatmul.mubr.f32.gmra.mrb[38].mxu1 %v915_v53  ;;  %v929_v56 = vsub.f32 %v8235_v22, %v8244_v26  ;;  %v8274_v26 = vand.u32 4294901760, %v8250_v4 }
 0x154   :  { %10500 = vst [vmem:[#allocation183_spill] sm:$0xff] %v8258_v16  ;;  %v110_v5 = vpop.trf.xlu1  ;;  %925 = vmatprep.mubr.f32.mxu0 %v924_v45  ;;  %3614 = vmatprep.mubr.f32.mxu1 %v924_v45  ;;  %v177_v8 = vpop.trf.xlu0  ;;  %v953_v59 = vsub.f32 %v8223_v21, %v8247_v63  ;;  %v8270_v53 = vsub.f32 %v524_v46, %v8258_v16 }
 0x155   :  { %10499 = vst [vmem:[#allocation182_spill] sm:$0xff] %v8256_v3  ;;  %v8262_v49 = vand.u32 4294901760, %v110_v5  ;;  %v930_v27 = vand.u32 4294901760, %v929_v56  ;;  %v8265_v60 = vand.u32 4294901760, %v8256_v3  ;;  %v527_v52 = vsel %vm450_vm1, %v177_v8, 0  ;;  %10504 = vst [vmem:[#allocation187_spill] sm:$0xff] %v8274_v26 }
 0x156   :  { %10503 = vst [vmem:[#allocation186_spill] sm:$0xff] %v8270_v53  ;;  %v8279_v56 = vand.u32 4294901760, %v527_v52  ;;  %v954_v8 = vand.u32 4294901760, %v953_v59 }
 0x157   :  { %10501 = vst [vmem:[#allocation184_spill] sm:$0xff] %v8262_v49  ;;  %10502 = vst [vmem:[#allocation185_spill] sm:$0xff] %v8265_v60  ;;  %v8277_v45 = vsub.f32 %v110_v5, %v8262_v49  ;;  %931 = vmatmul.mubr.f32.gmra.mrb[40].mxu0 %v930_v27  ;;  %3620 = vmatmul.mubr.f32.gmra.mrb[40].mxu1 %v930_v27  ;;  %v944_v22 = vsub.f32 %v8256_v3, %v8265_v60  ;;  %v8295_v60 = vand.u32 4294901760, %v8270_v53 }
 0x158   :  { %10506 = vst [vmem:[#allocation189_spill] sm:$0xff] %v8279_v56  ;;  %v111_v63 = vpop.trf.xlu1  ;;  %940 = vmatprep.mubr.f32.mxu0 %v939_v42  ;;  %3629 = vmatprep.mubr.f32.mxu1 %v939_v42  ;;  %v178_v21 = vpop.trf.xlu0  ;;  %v8289_v5 = vsub.f32 %v527_v52, %v8279_v56  ;;  %v968_v49 = vsub.f32 %v8250_v4, %v8274_v26 }
 0x159   :  { %10505 = vst [vmem:[#allocation188_spill] sm:$0xff] %v8277_v45  ;;  %v8283_v46 = vand.u32 4294901760, %v111_v63  ;;  %v945_v31 = vand.u32 4294901760, %v944_v22  ;;  %v8286_v16 = vand.u32 4294901760, %v8277_v45  ;;  %v530_v27 = vsel %vm450_vm1, %v178_v21, 0  ;;  %10510 = vst [vmem:[#allocation193_spill] sm:$0xff] %v8295_v60 }
 0x15a   :  { %10509 = vst [vmem:[#allocation192_spill] sm:$0xff] %v8289_v5  ;;  %v8300_v22 = vand.u32 4294901760, %v530_v27  ;;  %v8315_v56 = vand.u32 4294901760, %v8289_v5 }
 0x15b   :  { %10507 = vst [vmem:[#allocation190_spill] sm:$0xff] %v8283_v46  ;;  %10508 = vst [vmem:[#allocation191_spill] sm:$0xff] %v8286_v16  ;;  %v8298_v42 = vsub.f32 %v111_v63, %v8283_v46  ;;  %946 = vmatmul.mubr.f32.gmra.mrb[42].mxu0 %v945_v31  ;;  %3635 = vmatmul.mubr.f32.gmra.mrb[42].mxu1 %v945_v31  ;;  %v959_v59 = vsub.f32 %v8277_v45, %v8286_v16  ;;  %v969_v63 = vand.u32 4294901760, %v968_v49 }
 0x15c   :  { %10512 = vst [vmem:[#allocation195_spill] sm:$0xff] %v8300_v22  ;;  %v112_v52 = vpop.trf.xlu1  ;;  %955 = vmatprep.mubr.f32.mxu0 %v954_v8  ;;  %3644 = vmatprep.mubr.f32.mxu1 %v954_v8  ;;  %v8310_v4 = vsub.f32 %v530_v27, %v8300_v22  ;;  %v983_v31 = vsub.f32 %v8270_v53, %v8295_v60  ;;  %10515 = vst [vmem:[#allocation198_spill] sm:$0xff] %v8315_v56 }
 0x15d   :  { %10511 = vst [vmem:[#allocation194_spill] sm:$0xff] %v8298_v42  ;;  %v8304_v21 = vand.u32 4294901760, %v112_v52  ;;  %v960_v3 = vand.u32 4294901760, %v959_v59  ;;  %v8307_v26 = vand.u32 4294901760, %v8298_v42  ;;  %v998_v53 = vsub.f32 %v8289_v5, %v8315_v56 }
 0x15e   :  { %v984_v60 = vand.u32 4294901760, %v983_v31 }
 0x15f   :  { %10513 = vst [vmem:[#allocation196_spill] sm:$0xff] %v8304_v21  ;;  %10514 = vst [vmem:[#allocation197_spill] sm:$0xff] %v8307_v26  ;;  %v8318_v16 = vsub.f32 %v112_v52, %v8304_v21  ;;  %961 = vmatmul.mubr.f32.gmra.mrb[44].mxu0 %v960_v3  ;;  %3650 = vmatmul.mubr.f32.gmra.mrb[44].mxu1 %v960_v3  ;;  %v974_v8 = vsub.f32 %v8298_v42, %v8307_v26  ;;  %v8330_v52 = vand.u32 4294901760, %v8310_v4 }
 0x160   :  { %v113_v59 = vpop.trf.xlu1  ;;  %970 = vmatprep.mubr.f32.mxu0 %v969_v63  ;;  %3659 = vmatprep.mubr.f32.mxu1 %v969_v63  ;;  %v999_v56 = vand.u32 4294901760, %v998_v53 }
 0x161   :  { %v8322_v27 = vand.u32 4294901760, %v113_v59  ;;  %v975_v49 = vand.u32 4294901760, %v974_v8  ;;  %v8325_v45 = vand.u32 4294901760, %v8318_v16  ;;  %v1013_v5 = vsub.f32 %v8310_v4, %v8330_v52 }
 0x163   :  { %10516 = vst [vmem:[#allocation199_spill] sm:$0xff] %v8322_v27  ;;  %10517 = vst [vmem:[#allocation200_spill] sm:$0xff] %v8325_v45  ;;  %v8333_v3 = vsub.f32 %v113_v59, %v8322_v27  ;;  %976 = vmatmul.mubr.f32.gmra.mrb[46].mxu0 %v975_v49  ;;  %3665 = vmatmul.mubr.f32.gmra.mrb[46].mxu1 %v975_v49  ;;  %v989_v63 = vsub.f32 %v8318_v16, %v8325_v45  ;;  %v1014_v45 = vand.u32 4294901760, %v1013_v5 }
 0x164   :  { %v114_v26 = vpop.trf.xlu1  ;;  %985 = vmatprep.mubr.f32.mxu0 %v984_v60  ;;  %3674 = vmatprep.mubr.f32.mxu1 %v984_v60  ;;  %v10520_v5 = vpack.c.bf16 %v7249_v61, %v7236_v50  ;;  %v10522_v50 = vpack.c.bf16 %v7294_v32, %v7296_v33  ;;  %v10523_v61 = vpack.c.bf16 %v7320_v54, %v7322_v55  ;;  %v10528_v33 = vld [vmem:[#allocation17_spill] sm:$0xff]  ;;  %v10529_v54 = vld [vmem:[#allocation18_spill] sm:$0xff] }
 0x165   :  { %v8337_v8 = vand.u32 4294901760, %v114_v26  ;;  %v990_v31 = vand.u32 4294901760, %v989_v63  ;;  %v8340_v42 = vand.u32 4294901760, %v8333_v3  ;;  %v10530_v55 = vpack.c.bf16 %v10528_v33, %v10529_v54  ;;  %v10549_v54 = vld [vmem:[#allocation45_spill] sm:$0xff] }
 0x167   :  { %10518 = vst [vmem:[#allocation201_spill] sm:$0xff] %v8337_v8  ;;  %v8345_v59 = vsub.f32 %v114_v26, %v8337_v8  ;;  %991 = vmatmul.mubr.f32.gmra.mrb[48].mxu0 %v990_v31  ;;  %3680 = vmatmul.mubr.f32.gmra.mrb[48].mxu1 %v990_v31  ;;  %v1004_v49 = vsub.f32 %v8333_v3, %v8340_v42  ;;  %v10534_v31 = vld [vmem:[#allocation25_spill] sm:$0xff] }
 0x168   :  { %1000 = vmatprep.mubr.f32.mxu0 %v999_v56  ;;  %3689 = vmatprep.mubr.f32.mxu1 %v999_v56  ;;  %v10519_v56 = vpack.c.bf16 %v7251_v62, %v7238_v51  ;;  %v10521_v51 = vpack.c.bf16 %v7277_v18, %v7279_v19  ;;  %v10524_v62 = vpack.c.bf16 %v7343_v15, %v7345_v17  ;;  %v10525_v18 = vld [vmem:[#allocation13_spill] sm:$0xff]  ;;  %v10526_v19 = vld [vmem:[#allocation14_spill] sm:$0xff] }
 0x169   :  { %v1005_v60 = vand.u32 4294901760, %v1004_v49  ;;  %v8350_v63 = vand.u32 4294901760, %v8345_v59  ;;  %v10527_v32 = vpack.c.bf16 %v10525_v18, %v10526_v19  ;;  %v10531_v15 = vld [vmem:[#allocation21_spill] sm:$0xff]  ;;  %v10532_v17 = vld [vmem:[#allocation22_spill] sm:$0xff] }
 0x16a   :  { %v10535_v49 = vld [vmem:[#allocation26_spill] sm:$0xff]  ;;  %v10546_v19 = vld [vmem:[#allocation41_spill] sm:$0xff] }
 0x16b   :  { %1006 = vmatmul.mubr.f32.gmra.mrb[50].mxu0 %v1005_v60  ;;  %3695 = vmatmul.mubr.f32.gmra.mrb[50].mxu1 %v1005_v60  ;;  %v1019_v53 = vsub.f32 %v8345_v59, %v8350_v63  ;;  %v10536_v60 = vpack.c.bf16 %v10534_v31, %v10535_v49  ;;  %v10555_v49 = vld [vmem:[#allocation53_spill] sm:$0xff] }
 0x16c   :  { %1015 = vmatprep.mubr.f32.mxu0 %v1014_v45  ;;  %3704 = vmatprep.mubr.f32.mxu1 %v1014_v45  ;;  %v10533_v45 = vpack.c.bf16 %v10531_v15, %v10532_v17  ;;  %v10552_v17 = vld [vmem:[#allocation49_spill] sm:$0xff] }
 0x16d   :  { %v1020_v26 = vand.u32 4294901760, %v1019_v53  ;;  %v10537_v53 = vld [vmem:[#allocation29_spill] sm:$0xff] }
 0x16f   :  { %1021 = vmatmul.mubr.f32.gmra.mrb[52].mxu0 %v1020_v26  ;;  %3710 = vmatmul.mubr.f32.gmra.mrb[52].mxu1 %v1020_v26  ;;  %v10538_v26 = vld [vmem:[#allocation30_spill] sm:$0xff] }
 0x170   :  { %1196 = vmatprep.mubr.f32.mxu0 %v7727_v7  ;;  %3885 = vmatprep.mubr.f32.mxu1 %v7727_v7 }
 0x173   :  { %1198 = vmatmul.mubr.f32.vlgmr.msra.gmra.mrb[0].mxu0 %v7749_v28  ;;  %3887 = vmatmul.mubr.f32.vlgmr.msra.gmra.mrb[0].mxu1 %v7749_v28 }
 0x174   :  { %5919 = vmatpush1.bf16.msra.mxu0 %v10519_v56  ;;  %6099 = vmatpush1.bf16.msra.mxu1 %v10520_v5  ;;  %v10539_v56 = vpack.c.bf16 %v10537_v53, %v10538_v26  ;;  %v10540_v5 = vld [vmem:[#allocation33_spill] sm:$0xff] }
 0x175   :  { %1203 = vmatprep.mubr.f32.mxu0 %v7736_v12  ;;  %3892 = vmatprep.mubr.f32.mxu1 %v7736_v12  ;;  %v10558_v26 = vld [vmem:[#allocation57_spill] sm:$0xff] }
 0x176   :  { %5920 = vmatprep.subr.bf16.mxu0 %v10346_v30  ;;  %6100 = vmatprep.subr.bf16.mxu1 %v10346_v30 }
 0x177   :  { %1205 = vmatmul.mubr.f32.gmra.mrb[2].mxu0 %v7763_v37  ;;  %3894 = vmatmul.mubr.f32.gmra.mrb[2].mxu1 %v7763_v37 }
 0x178   :  { %5922 = vmatpush1.bf16.msra.mxu0 %v10521_v51  ;;  %6102 = vmatpush1.bf16.msra.mxu1 %v10522_v50  ;;  %v10541_v51 = vld [vmem:[#allocation34_spill] sm:$0xff] }
 0x179   :  { %1210 = vmatprep.mubr.f32.mxu0 %v7747_v58  ;;  %3899 = vmatprep.mubr.f32.mxu1 %v7747_v58  ;;  %v10542_v50 = vpack.c.bf16 %v10540_v5, %v10541_v51  ;;  %v10561_v51 = vld [vmem:[#allocation61_spill] sm:$0xff] }
 0x17a   :  { %5923 = vmatprep.subr.bf16.mxu0 %v10346_v30  ;;  %6103 = vmatprep.subr.bf16.mxu1 %v10346_v30 }
 0x17b   :  { %1212 = vmatmul.mubr.f32.gmra.mrb[4].mxu0 %v7784_v13  ;;  %3901 = vmatmul.mubr.f32.gmra.mrb[4].mxu1 %v7784_v13 }
 0x17c   :  { %5925 = vmatpush1.bf16.msra.mxu0 %v10523_v61  ;;  %6105 = vmatpush1.bf16.msra.mxu1 %v10524_v62  ;;  %v10543_v61 = vld [vmem:[#allocation37_spill] sm:$0xff]  ;;  %v10544_v62 = vld [vmem:[#allocation38_spill] sm:$0xff] }
 0x17d   :  { %1217 = vmatprep.mubr.f32.mxu0 %v7761_v34  ;;  %3906 = vmatprep.mubr.f32.mxu1 %v7761_v34  ;;  %v10545_v18 = vpack.c.bf16 %v10543_v61, %v10544_v62  ;;  %v10564_v62 = vld [vmem:[#allocation65_spill] sm:$0xff] }
 0x17e   :  { %5926 = vmatprep.subr.bf16.mxu0 %v10346_v30  ;;  %6106 = vmatprep.subr.bf16.mxu1 %v10346_v30 }
 0x17f   :  { %1219 = vmatmul.mubr.f32.gmra.mrb[6].mxu0 %v7807_v36  ;;  %3908 = vmatmul.mubr.f32.gmra.mrb[6].mxu1 %v7807_v36 }
 0x180   :  { %5928 = vmatpush1.bf16.msra.mxu0 %v10527_v32  ;;  %6108 = vmatpush1.bf16.msra.mxu1 %v10530_v55  ;;  %v10547_v32 = vld [vmem:[#allocation42_spill] sm:$0xff] }
 0x181   :  { %1224 = vmatprep.mubr.f32.mxu0 %v7780_v35  ;;  %3913 = vmatprep.mubr.f32.mxu1 %v7780_v35  ;;  %v10548_v33 = vpack.c.bf16 %v10546_v19, %v10547_v32  ;;  %v10550_v55 = vld [vmem:[#allocation46_spill] sm:$0xff]  ;;  %v10567_v32 = vld [vmem:[#allocation117_spill] sm:$0xff] }
 0x182   :  { %5929 = vmatprep.subr.bf16.mxu0 %v10346_v30  ;;  %6109 = vmatprep.subr.bf16.mxu1 %v10346_v30  ;;  %v10551_v15 = vpack.c.bf16 %v10549_v54, %v10550_v55  ;;  %v10569_v54 = vld [vmem:[#allocation136_spill] sm:$0xff]  ;;  %v10570_v55 = vld [vmem:[#allocation129_spill] sm:$0xff] }
 0x183   :  { %1226 = vmatmul.mubr.f32.gmra.mrb[8].mxu0 %v7832_v6  ;;  %3915 = vmatmul.mubr.f32.gmra.mrb[8].mxu1 %v7832_v6 }
 0x184   :  { %5931 = vmatpush1.bf16.msra.mxu0 %v10533_v45  ;;  %6111 = vmatpush1.bf16.msra.mxu1 %v10536_v60  ;;  %v10553_v45 = vld [vmem:[#allocation50_spill] sm:$0xff] }
 0x185   :  { %1231 = vmatprep.mubr.f32.mxu0 %v7798_v48  ;;  %3920 = vmatprep.mubr.f32.mxu1 %v7798_v48  ;;  %v10554_v31 = vpack.c.bf16 %v10552_v17, %v10553_v45  ;;  %v10556_v60 = vld [vmem:[#allocation54_spill] sm:$0xff]  ;;  %v10572_v17 = vld [vmem:[#allocation135_spill] sm:$0xff]  ;;  %v10573_v45 = vld [vmem:[#allocation148_spill] sm:$0xff] }
 0x186   :  { %5932 = vmatprep.subr.bf16.mxu0 %v10346_v30  ;;  %6112 = vmatprep.subr.bf16.mxu1 %v10346_v30  ;;  %v10557_v53 = vpack.c.bf16 %v10555_v49, %v10556_v60  ;;  %v10575_v49 = vld [vmem:[#allocation154_spill] sm:$0xff]  ;;  %v10576_v60 = vld [vmem:[#allocation147_spill] sm:$0xff] }
 0x187   :  { %1233 = vmatmul.mubr.f32.gmra.mrb[10].mxu0 %v7857_v47  ;;  %3922 = vmatmul.mubr.f32.gmra.mrb[10].mxu1 %v7857_v47 }
 0x188   :  { %5934 = vmatpush1.bf16.msra.mxu0 %v10539_v56  ;;  %6114 = vmatpush1.bf16.msra.mxu1 %v10542_v50  ;;  %v10559_v56 = vld [vmem:[#allocation58_spill] sm:$0xff] }
 0x189   :  { %1238 = vmatprep.mubr.f32.mxu0 %v7824_v0  ;;  %3927 = vmatprep.mubr.f32.mxu1 %v7824_v0  ;;  %v10560_v5 = vpack.c.bf16 %v10558_v26, %v10559_v56  ;;  %v10562_v50 = vld [vmem:[#allocation62_spill] sm:$0xff]  ;;  %v10578_v26 = vld [vmem:[#allocation153_spill] sm:$0xff] }
 0x18a   :  { %5935 = vmatprep.subr.bf16.mxu0 %v10346_v30  ;;  %6115 = vmatprep.subr.bf16.mxu1 %v10346_v30  ;;  %v10563_v61 = vpack.c.bf16 %v10561_v51, %v10562_v50  ;;  %v10579_v56 = vld [vmem:[#allocation166_spill] sm:$0xff]  ;;  %v10581_v51 = vld [vmem:[#allocation172_spill] sm:$0xff]  ;;  %v10582_v50 = vld [vmem:[#allocation165_spill] sm:$0xff] }
 0x18b   :  { %1240 = vmatmul.mubr.f32.gmra.mrb[12].mxu0 %v7882_v20  ;;  %3929 = vmatmul.mubr.f32.gmra.mrb[12].mxu1 %v7882_v20 }
 0x18c   :  { %5937 = vmatpush1.bf16.msra.mxu0 %v10545_v18  ;;  %6117 = vmatpush1.bf16.msra.mxu1 %v10548_v33  ;;  %v10565_v18 = vld [vmem:[#allocation66_spill] sm:$0xff]  ;;  %v10568_v33 = vld [vmem:[#allocation123_spill] sm:$0xff] }
 0x18d   :  { %1245 = vmatprep.mubr.f32.mxu0 %v7851_v44  ;;  %3934 = vmatprep.mubr.f32.mxu1 %v7851_v44  ;;  %v10566_v19 = vpack.c.bf16 %v10564_v62, %v10565_v18  ;;  %v10584_v62 = vld [vmem:[#allocation184_spill] sm:$0xff]  ;;  %v10585_v18 = vld [vmem:[#allocation177_spill] sm:$0xff] }
 0x18e   :  { %5938 = vmatprep.subr.bf16.mxu0 %v10346_v30  ;;  %6118 = vmatprep.subr.bf16.mxu1 %v10346_v30 }
 0x18f   :  { %1247 = vmatmul.mubr.f32.gmra.mrb[14].mxu0 %v7907_v10  ;;  %3936 = vmatmul.mubr.f32.gmra.mrb[14].mxu1 %v7907_v10 }
 0x190   :  { %5940 = vmatpush1.bf16.msra.mxu0 %v10551_v15  ;;  %6120 = vmatpush1.bf16.msra.mxu1 %v10554_v31  ;;  %v10571_v15 = vld [vmem:[#allocation142_spill] sm:$0xff]  ;;  %v10574_v31 = vld [vmem:[#allocation141_spill] sm:$0xff] }
 0x191   :  { %1252 = vmatprep.mubr.f32.mxu0 %v7876_v57  ;;  %3941 = vmatprep.mubr.f32.mxu1 %v7876_v57 }
 0x192   :  { %5941 = vmatprep.subr.bf16.mxu0 %v10346_v30  ;;  %6121 = vmatprep.subr.bf16.mxu1 %v10346_v30 }
 0x193   :  { %1254 = vmatmul.mubr.f32.gmra.mrb[16].mxu0 %v7932_v39  ;;  %3943 = vmatmul.mubr.f32.gmra.mrb[16].mxu1 %v7932_v39 }
 0x194   :  { %5943 = vmatpush1.bf16.msra.mxu0 %v10557_v53  ;;  %6123 = vmatpush1.bf16.msra.mxu1 %v10560_v5  ;;  %v10577_v53 = vld [vmem:[#allocation160_spill] sm:$0xff]  ;;  %v10580_v5 = vld [vmem:[#allocation159_spill] sm:$0xff] }
 0x195   :  { %1259 = vmatprep.mubr.f32.mxu0 %v7898_v14  ;;  %3948 = vmatprep.mubr.f32.mxu1 %v7898_v14 }
 0x196   :  { %5944 = vmatprep.subr.bf16.mxu0 %v10346_v30  ;;  %6124 = vmatprep.subr.bf16.mxu1 %v10346_v30 }
 0x197   :  { %1261 = vmatmul.mubr.f32.gmra.mrb[18].mxu0 %v7965_v29  ;;  %3950 = vmatmul.mubr.f32.gmra.mrb[18].mxu1 %v7965_v29 }
 0x198   :  { %5946 = vmatpush1.bf16.msra.mxu0 %v10563_v61  ;;  %6126 = vmatpush1.bf16.msra.mxu1 %v10566_v19  ;;  %v10583_v61 = vld [vmem:[#allocation171_spill] sm:$0xff] }
 0x199   :  { %1266 = vmatprep.mubr.f32.mxu0 %v7924_v24  ;;  %3955 = vmatprep.mubr.f32.mxu1 %v7924_v24  ;;  %v10586_v19 = vld [vmem:[#allocation183_spill] sm:$0xff] }
 0x19a   :  { %1465 = vmatprep.subr.mxu0 %v10384_v23  ;;  %4154 = vmatprep.subr.mxu1 %v10384_v23 }
 0x19b   :  { %1268 = vmatmul.mubr.f32.gmra.mrb[20].mxu0 %v7992_v2  ;;  %3957 = vmatmul.mubr.f32.gmra.mrb[20].mxu1 %v7992_v2 }
 0x19c   :  { %1468 = vmatpush1.msra.mxu0 %v7957_v40  ;;  %4157 = vmatpush1.msra.mxu1 %v7963_v38 }
 0x19d   :  { %1273 = vmatprep.mubr.f32.mxu0 %v7951_v41  ;;  %3962 = vmatprep.mubr.f32.mxu1 %v7951_v41 }
 0x19e   :  { %5947 = vmatprep.subr.bf16.mxu0 %v10346_v30  ;;  %6127 = vmatprep.subr.bf16.mxu1 %v10346_v30 }
 0x19f   :  { %1275 = vmatmul.mubr.f32.gmra.mrb[22].mxu0 %v8023_v43  ;;  %3964 = vmatmul.mubr.f32.gmra.mrb[22].mxu1 %v8023_v43 }
 0x1a0   :  { %1280 = vmatprep.mubr.f32.mxu0 %v7984_v1  ;;  %3969 = vmatprep.mubr.f32.mxu1 %v7984_v1 }
 0x1a3   :  { %1282 = vmatmul.mubr.f32.gmra.mrb[24].mxu0 %v8048_v9  ;;  %3971 = vmatmul.mubr.f32.gmra.mrb[24].mxu1 %v8048_v9  ;;  %v10638_v9 = vld [vmem:[#allocation125_spill] sm:$0xff] }
 0x1a4   :  { %1287 = vmatprep.mubr.f32.mxu0 %v10567_v32  ;;  %3976 = vmatprep.mubr.f32.mxu1 %v10567_v32  ;;  %v10636_v32 = vld [vmem:[#allocation120_spill] sm:$0xff] }
 0x1a7   :  { %1289 = vmatmul.mubr.f32.gmra.mrb[26].mxu0 %v8071_v25  ;;  %3978 = vmatmul.mubr.f32.gmra.mrb[26].mxu1 %v8071_v25  ;;  %v10634_v25 = vld [vmem:[#allocation115_spill] sm:$0xff] }
 0x1a8   :  { %1294 = vmatprep.mubr.f32.mxu0 %v10568_v33  ;;  %3983 = vmatprep.mubr.f32.mxu1 %v10568_v33  ;;  %v10631_v33 = vld [vmem:[#allocation69_spill] sm:$0xff] }
 0x1ab   :  { %1296 = vmatmul.mubr.f32.gmra.mrb[28].mxu0 %v10569_v54  ;;  %3985 = vmatmul.mubr.f32.gmra.mrb[28].mxu1 %v10569_v54  ;;  %v10630_v54 = vld [vmem:[#allocation70_spill] sm:$0xff] }
 0x1ac   :  { %1301 = vmatprep.mubr.f32.mxu0 %v10570_v55  ;;  %3990 = vmatprep.mubr.f32.mxu1 %v10570_v55  ;;  %v10627_v55 = vld [vmem:[#allocation67_spill] sm:$0xff] }
 0x1af   :  { %1303 = vmatmul.mubr.f32.gmra.mrb[30].mxu0 %v10571_v15  ;;  %3992 = vmatmul.mubr.f32.gmra.mrb[30].mxu1 %v10571_v15  ;;  %v10626_v15 = vld [vmem:[#allocation63_spill] sm:$0xff] }
 0x1b0   :  { %1308 = vmatprep.mubr.f32.mxu0 %v10572_v17  ;;  %3997 = vmatprep.mubr.f32.mxu1 %v10572_v17  ;;  %v10623_v17 = vld [vmem:[#allocation59_spill] sm:$0xff] }
 0x1b3   :  { %1310 = vmatmul.mubr.f32.gmra.mrb[32].mxu0 %v10573_v45  ;;  %3999 = vmatmul.mubr.f32.gmra.mrb[32].mxu1 %v10573_v45  ;;  %v10622_v45 = vld [vmem:[#allocation55_spill] sm:$0xff] }
 0x1b4   :  { %1315 = vmatprep.mubr.f32.mxu0 %v10574_v31  ;;  %4004 = vmatprep.mubr.f32.mxu1 %v10574_v31  ;;  %v10619_v31 = vld [vmem:[#allocation51_spill] sm:$0xff] }
 0x1b7   :  { %1317 = vmatmul.mubr.f32.gmra.mrb[34].mxu0 %v10575_v49  ;;  %4006 = vmatmul.mubr.f32.gmra.mrb[34].mxu1 %v10575_v49  ;;  %v10618_v49 = vld [vmem:[#allocation47_spill] sm:$0xff] }
 0x1b8   :  { %1322 = vmatprep.mubr.f32.mxu0 %v10576_v60  ;;  %4011 = vmatprep.mubr.f32.mxu1 %v10576_v60  ;;  %v10615_v60 = vld [vmem:[#allocation43_spill] sm:$0xff] }
 0x1bb   :  { %1324 = vmatmul.mubr.f32.gmra.mrb[36].mxu0 %v10577_v53  ;;  %4013 = vmatmul.mubr.f32.gmra.mrb[36].mxu1 %v10577_v53  ;;  %v10614_v53 = vld [vmem:[#allocation39_spill] sm:$0xff] }
 0x1bc   :  { %1329 = vmatprep.mubr.f32.mxu0 %v10578_v26  ;;  %4018 = vmatprep.mubr.f32.mxu1 %v10578_v26  ;;  %v10611_v26 = vld [vmem:[#allocation35_spill] sm:$0xff] }
 0x1bf   :  { %1331 = vmatmul.mubr.f32.gmra.mrb[38].mxu0 %v10579_v56  ;;  %4020 = vmatmul.mubr.f32.gmra.mrb[38].mxu1 %v10579_v56  ;;  %v10610_v56 = vld [vmem:[#allocation31_spill] sm:$0xff] }
 0x1c0   :  { %1336 = vmatprep.mubr.f32.mxu0 %v10580_v5  ;;  %4025 = vmatprep.mubr.f32.mxu1 %v10580_v5  ;;  %v10607_v5 = vld [vmem:[#allocation27_spill] sm:$0xff] }
 0x1c3   :  { %1338 = vmatmul.mubr.f32.gmra.mrb[40].mxu0 %v10581_v51  ;;  %4027 = vmatmul.mubr.f32.gmra.mrb[40].mxu1 %v10581_v51  ;;  %v10606_v51 = vld [vmem:[#allocation23_spill] sm:$0xff] }
 0x1c4   :  { %1343 = vmatprep.mubr.f32.mxu0 %v10582_v50  ;;  %4032 = vmatprep.mubr.f32.mxu1 %v10582_v50  ;;  %v10603_v50 = vld [vmem:[#allocation19_spill] sm:$0xff] }
 0x1c7   :  { %1345 = vmatmul.mubr.f32.gmra.mrb[42].mxu0 %v8241_v11  ;;  %4034 = vmatmul.mubr.f32.gmra.mrb[42].mxu1 %v8241_v11  ;;  %v10602_v11 = vld [vmem:[#allocation15_spill] sm:$0xff] }
 0x1c8   :  { %1350 = vmatprep.mubr.f32.mxu0 %v10583_v61  ;;  %4039 = vmatprep.mubr.f32.mxu1 %v10583_v61  ;;  %v10587_v61 = vld [vmem:[#allocation189_spill] sm:$0xff] }
 0x1cb   :  { %1352 = vmatmul.mubr.f32.gmra.mrb[44].mxu0 %v10584_v62  ;;  %4041 = vmatmul.mubr.f32.gmra.mrb[44].mxu1 %v10584_v62  ;;  %v10599_v62 = vld [vmem:[#allocation11_spill] sm:$0xff] }
 0x1cc   :  { %1357 = vmatprep.mubr.f32.mxu0 %v10585_v18  ;;  %4046 = vmatprep.mubr.f32.mxu1 %v10585_v18  ;;  %v10598_v18 = vld [vmem:[#allocation9_spill] sm:$0xff] }
 0x1cf   :  { %1359 = vmatmul.mubr.f32.gmra.mrb[46].mxu0 %v8283_v46  ;;  %4048 = vmatmul.mubr.f32.gmra.mrb[46].mxu1 %v8283_v46  ;;  %v10591_v46 = vld [vmem:[#allocation2_spill] sm:$0xff] }
 0x1d0   :  { %1364 = vmatprep.mubr.f32.mxu0 %v10586_v19  ;;  %4053 = vmatprep.mubr.f32.mxu1 %v10586_v19  ;;  %v10588_v19 = vld [vmem:[#allocation72_spill] sm:$0xff] }
 0x1d3   :  { %1366 = vmatmul.mubr.f32.gmra.mrb[48].mxu0 %v8304_v21  ;;  %4055 = vmatmul.mubr.f32.gmra.mrb[48].mxu1 %v8304_v21  ;;  %v10589_v21 = vld [vmem:[#allocation77_spill] sm:$0xff] }
 0x1d4   :  { %1371 = vmatprep.mubr.f32.mxu0 %v10587_v61  ;;  %4060 = vmatprep.mubr.f32.mxu1 %v10587_v61  ;;  %v10590_v61 = vld [vmem:[#allocation3_spill] sm:$0xff] }
 0x1d7   :  { %1373 = vmatmul.mubr.f32.gmra.mrb[50].mxu0 %v8322_v27  ;;  %4062 = vmatmul.mubr.f32.gmra.mrb[50].mxu1 %v8322_v27  ;;  %v10592_v27 = vld [vmem:[#allocation74_spill] sm:$0xff] }
 0x1d8   :  { %1378 = vmatprep.mubr.f32.mxu0 %v8300_v22  ;;  %4067 = vmatprep.mubr.f32.mxu1 %v8300_v22  ;;  %v10595_v22 = vld [vmem:[#allocation7_spill] sm:$0xff] }
 0x1db   :  { %1380 = vmatmul.mubr.f32.gmra.mrb[52].mxu0 %v8337_v8  ;;  %4069 = vmatmul.mubr.f32.gmra.mrb[52].mxu1 %v8337_v8  ;;  %v10593_v8 = vld [vmem:[#allocation80_spill] sm:$0xff] }
 0x1dc   :  { %1493 = vmatprep.mubr.f32.mxu0 %v10588_v19  ;;  %4182 = vmatprep.mubr.f32.mxu1 %v10588_v19  ;;  %v10594_v19 = vld [vmem:[#allocation5_spill] sm:$0xff] }
 0x1df   :  { %1496 = vmatmul.mubr.f32.vlgmr.msra.gmra.mrb[0].mxu0 %v10589_v21  ;;  %4185 = vmatmul.mubr.f32.vlgmr.msra.gmra.mrb[0].mxu1 %v10589_v21  ;;  %v10596_v21 = vld [vmem:[#allocation75_spill] sm:$0xff] }
 0x1e0   :  { %5949 = vmatpush1.bf16.msra.mxu0 %v10590_v61  ;;  %6129 = vmatpush1.bf16.msra.mxu1 %v10591_v46 }
 0x1e1   :  { %1502 = vmatprep.mubr.f32.mxu0 %v10592_v27  ;;  %4191 = vmatprep.mubr.f32.mxu1 %v10592_v27  ;;  %v10597_v27 = vld [vmem:[#allocation84_spill] sm:$0xff] }
 0x1e2   :  { %5950 = vmatprep.subr.bf16.mxu0 %v10346_v30  ;;  %6130 = vmatprep.subr.bf16.mxu1 %v10346_v30 }
 0x1e3   :  { %1505 = vmatmul.mubr.f32.gmra.mrb[2].mxu0 %v10593_v8  ;;  %4194 = vmatmul.mubr.f32.gmra.mrb[2].mxu1 %v10593_v8  ;;  %v10600_v8 = vld [vmem:[#allocation81_spill] sm:$0xff] }
 0x1e4   :  { %5952 = vmatpush1.bf16.msra.mxu0 %v10594_v19  ;;  %6132 = vmatpush1.bf16.msra.mxu1 %v10595_v22 }
 0x1e5   :  { %1511 = vmatprep.mubr.f32.mxu0 %v10596_v21  ;;  %4200 = vmatprep.mubr.f32.mxu1 %v10596_v21  ;;  %v10601_v21 = vld [vmem:[#allocation89_spill] sm:$0xff] }
 0x1e6   :  { %5953 = vmatprep.subr.bf16.mxu0 %v10346_v30  ;;  %6133 = vmatprep.subr.bf16.mxu1 %v10346_v30 }
 0x1e7   :  { %1514 = vmatmul.mubr.f32.gmra.mrb[4].mxu0 %v10597_v27  ;;  %4203 = vmatmul.mubr.f32.gmra.mrb[4].mxu1 %v10597_v27  ;;  %v10604_v27 = vld [vmem:[#allocation83_spill] sm:$0xff] }
 0x1e8   :  { %5955 = vmatpush1.bf16.msra.mxu0 %v10598_v18  ;;  %6135 = vmatpush1.bf16.msra.mxu1 %v10599_v62 }
 0x1e9   :  { %1520 = vmatprep.mubr.f32.mxu0 %v10600_v8  ;;  %4209 = vmatprep.mubr.f32.mxu1 %v10600_v8  ;;  %v10605_v8 = vld [vmem:[#allocation93_spill] sm:$0xff] }
 0x1ea   :  { %5956 = vmatprep.subr.bf16.mxu0 %v10346_v30  ;;  %6136 = vmatprep.subr.bf16.mxu1 %v10346_v30 }
 0x1eb   :  { %1523 = vmatmul.mubr.f32.gmra.mrb[6].mxu0 %v10601_v21  ;;  %4212 = vmatmul.mubr.f32.gmra.mrb[6].mxu1 %v10601_v21  ;;  %v10608_v21 = vld [vmem:[#allocation87_spill] sm:$0xff] }
 0x1ec   :  { %5958 = vmatpush1.bf16.msra.mxu0 %v10602_v11  ;;  %6138 = vmatpush1.bf16.msra.mxu1 %v10603_v50 }
 0x1ed   :  { %1529 = vmatprep.mubr.f32.mxu0 %v10604_v27  ;;  %4218 = vmatprep.mubr.f32.mxu1 %v10604_v27  ;;  %v10609_v27 = vld [vmem:[#allocation96_spill] sm:$0xff] }
 0x1ee   :  { %5959 = vmatprep.subr.bf16.mxu0 %v10346_v30  ;;  %6139 = vmatprep.subr.bf16.mxu1 %v10346_v30 }
 0x1ef   :  { %1532 = vmatmul.mubr.f32.gmra.mrb[8].mxu0 %v10605_v8  ;;  %4221 = vmatmul.mubr.f32.gmra.mrb[8].mxu1 %v10605_v8  ;;  %v10612_v8 = vld [vmem:[#allocation91_spill] sm:$0xff] }
 0x1f0   :  { %5961 = vmatpush1.bf16.msra.mxu0 %v10606_v51  ;;  %6141 = vmatpush1.bf16.msra.mxu1 %v10607_v5 }
 0x1f1   :  { %1538 = vmatprep.mubr.f32.mxu0 %v10608_v21  ;;  %4227 = vmatprep.mubr.f32.mxu1 %v10608_v21  ;;  %v10613_v21 = vld [vmem:[#allocation100_spill] sm:$0xff] }
 0x1f2   :  { %5962 = vmatprep.subr.bf16.mxu0 %v10346_v30  ;;  %6142 = vmatprep.subr.bf16.mxu1 %v10346_v30 }
 0x1f3   :  { %1541 = vmatmul.mubr.f32.gmra.mrb[10].mxu0 %v10609_v27  ;;  %4230 = vmatmul.mubr.f32.gmra.mrb[10].mxu1 %v10609_v27  ;;  %v10616_v27 = vld [vmem:[#allocation97_spill] sm:$0xff] }
 0x1f4   :  { %5964 = vmatpush1.bf16.msra.mxu0 %v10610_v56  ;;  %6144 = vmatpush1.bf16.msra.mxu1 %v10611_v26 }
 0x1f5   :  { %1547 = vmatprep.mubr.f32.mxu0 %v10612_v8  ;;  %4236 = vmatprep.mubr.f32.mxu1 %v10612_v8  ;;  %v10617_v8 = vld [vmem:[#allocation105_spill] sm:$0xff] }
 0x1f6   :  { %5965 = vmatprep.subr.bf16.mxu0 %v10346_v30  ;;  %6145 = vmatprep.subr.bf16.mxu1 %v10346_v30 }
 0x1f7   :  { %1550 = vmatmul.mubr.f32.gmra.mrb[12].mxu0 %v10613_v21  ;;  %4239 = vmatmul.mubr.f32.gmra.mrb[12].mxu1 %v10613_v21  ;;  %v10620_v21 = vld [vmem:[#allocation99_spill] sm:$0xff] }
 0x1f8   :  { %5967 = vmatpush1.bf16.msra.mxu0 %v10614_v53  ;;  %6147 = vmatpush1.bf16.msra.mxu1 %v10615_v60 }
 0x1f9   :  { %1556 = vmatprep.mubr.f32.mxu0 %v10616_v27  ;;  %4245 = vmatprep.mubr.f32.mxu1 %v10616_v27  ;;  %v10621_v27 = vld [vmem:[#allocation109_spill] sm:$0xff] }
 0x1fa   :  { %5968 = vmatprep.subr.bf16.mxu0 %v10346_v30  ;;  %6148 = vmatprep.subr.bf16.mxu1 %v10346_v30 }
 0x1fb   :  { %1559 = vmatmul.mubr.f32.gmra.mrb[14].mxu0 %v10617_v8  ;;  %4248 = vmatmul.mubr.f32.gmra.mrb[14].mxu1 %v10617_v8  ;;  %v10624_v8 = vld [vmem:[#allocation103_spill] sm:$0xff] }
 0x1fc   :  { %5970 = vmatpush1.bf16.msra.mxu0 %v10618_v49  ;;  %6150 = vmatpush1.bf16.msra.mxu1 %v10619_v31 }
 0x1fd   :  { %1565 = vmatprep.mubr.f32.mxu0 %v10620_v21  ;;  %4254 = vmatprep.mubr.f32.mxu1 %v10620_v21  ;;  %v10625_v21 = vld [vmem:[#allocation112_spill] sm:$0xff] }
 0x1fe   :  { %5971 = vmatprep.subr.bf16.mxu0 %v10346_v30  ;;  %6151 = vmatprep.subr.bf16.mxu1 %v10346_v30 }
 0x1ff   :  { %1568 = vmatmul.mubr.f32.gmra.mrb[16].mxu0 %v10621_v27  ;;  %4257 = vmatmul.mubr.f32.gmra.mrb[16].mxu1 %v10621_v27  ;;  %v10628_v27 = vld [vmem:[#allocation107_spill] sm:$0xff] }
 0x200   :  { %5973 = vmatpush1.bf16.msra.mxu0 %v10622_v45  ;;  %6153 = vmatpush1.bf16.msra.mxu1 %v10623_v17 }
 0x201   :  { %1574 = vmatprep.mubr.f32.mxu0 %v10624_v8  ;;  %4263 = vmatprep.mubr.f32.mxu1 %v10624_v8  ;;  %v10629_v8 = vld [vmem:[#allocation116_spill] sm:$0xff] }
 0x202   :  { %5974 = vmatprep.subr.bf16.mxu0 %v10346_v30  ;;  %6154 = vmatprep.subr.bf16.mxu1 %v10346_v30 }
 0x203   :  { %1577 = vmatmul.mubr.f32.gmra.mrb[18].mxu0 %v10625_v21  ;;  %4266 = vmatmul.mubr.f32.gmra.mrb[18].mxu1 %v10625_v21  ;;  %v10632_v21 = vld [vmem:[#allocation113_spill] sm:$0xff] }
 0x204   :  { %5976 = vmatpush1.bf16.msra.mxu0 %v10626_v15  ;;  %6156 = vmatpush1.bf16.msra.mxu1 %v10627_v55 }
 0x205   :  { %1583 = vmatprep.mubr.f32.mxu0 %v10628_v27  ;;  %4272 = vmatprep.mubr.f32.mxu1 %v10628_v27  ;;  %v10633_v27 = vld [vmem:[#allocation122_spill] sm:$0xff] }
 0x206   :  { %1795 = vmatprep.subr.mxu0 %v10384_v23  ;;  %4484 = vmatprep.subr.mxu1 %v10384_v23 }
 0x207   :  { %1586 = vmatmul.mubr.f32.gmra.mrb[20].mxu0 %v10629_v8  ;;  %4275 = vmatmul.mubr.f32.gmra.mrb[20].mxu1 %v10629_v8  ;;  %v10635_v8 = vld [vmem:[#allocation128_spill] sm:$0xff] }
 0x208   :  { %1797 = vmatpush1.msra.mxu0 %v10630_v54  ;;  %4486 = vmatpush1.msra.mxu1 %v10631_v33 }
 0x209   :  { %1592 = vmatprep.mubr.f32.mxu0 %v10632_v21  ;;  %4281 = vmatprep.mubr.f32.mxu1 %v10632_v21  ;;  %v10637_v21 = vld [vmem:[#allocation134_spill] sm:$0xff] }
 0x20a   :  { %5977 = vmatprep.subr.bf16.mxu0 %v10346_v30  ;;  %6157 = vmatprep.subr.bf16.mxu1 %v10346_v30 }
 0x20b   :  { %1595 = vmatmul.mubr.f32.gmra.mrb[22].mxu0 %v10633_v27  ;;  %4284 = vmatmul.mubr.f32.gmra.mrb[22].mxu1 %v10633_v27  ;;  %v10639_v27 = vld [vmem:[#allocation140_spill] sm:$0xff] }
 0x20c   :  { %1601 = vmatprep.mubr.f32.mxu0 %v10634_v25  ;;  %4290 = vmatprep.mubr.f32.mxu1 %v10634_v25  ;;  %v10640_v25 = vld [vmem:[#allocation133_spill] sm:$0xff] }
 0x20f   :  { %1604 = vmatmul.mubr.f32.gmra.mrb[24].mxu0 %v10635_v8  ;;  %4293 = vmatmul.mubr.f32.gmra.mrb[24].mxu1 %v10635_v8  ;;  %v10641_v8 = vld [vmem:[#allocation146_spill] sm:$0xff] }
 0x210   :  { %1610 = vmatprep.mubr.f32.mxu0 %v10636_v32  ;;  %4299 = vmatprep.mubr.f32.mxu1 %v10636_v32  ;;  %v10642_v32 = vld [vmem:[#allocation138_spill] sm:$0xff] }
 0x213   :  { %1613 = vmatmul.mubr.f32.gmra.mrb[26].mxu0 %v10637_v21  ;;  %4302 = vmatmul.mubr.f32.gmra.mrb[26].mxu1 %v10637_v21  ;;  %v10643_v21 = vld [vmem:[#allocation152_spill] sm:$0xff] }
 0x214   :  { %1619 = vmatprep.mubr.f32.mxu0 %v10638_v9  ;;  %4308 = vmatprep.mubr.f32.mxu1 %v10638_v9  ;;  %v10644_v9 = vld [vmem:[#allocation144_spill] sm:$0xff] }
 0x217   :  { %1622 = vmatmul.mubr.f32.gmra.mrb[28].mxu0 %v10639_v27  ;;  %4311 = vmatmul.mubr.f32.gmra.mrb[28].mxu1 %v10639_v27  ;;  %v10645_v27 = vld [vmem:[#allocation158_spill] sm:$0xff] }
 0x218   :  { %1628 = vmatprep.mubr.f32.mxu0 %v10640_v25  ;;  %4317 = vmatprep.mubr.f32.mxu1 %v10640_v25  ;;  %v10646_v25 = vld [vmem:[#allocation149_spill] sm:$0xff] }
 0x21b   :  { %1631 = vmatmul.mubr.f32.gmra.mrb[30].mxu0 %v10641_v8  ;;  %4320 = vmatmul.mubr.f32.gmra.mrb[30].mxu1 %v10641_v8  ;;  %v10647_v8 = vld [vmem:[#allocation164_spill] sm:$0xff] }
 0x21c   :  { %1637 = vmatprep.mubr.f32.mxu0 %v10642_v32  ;;  %4326 = vmatprep.mubr.f32.mxu1 %v10642_v32  ;;  %v10648_v32 = vld [vmem:[#allocation157_spill] sm:$0xff] }
 0x21f   :  { %1640 = vmatmul.mubr.f32.gmra.mrb[32].mxu0 %v10643_v21  ;;  %4329 = vmatmul.mubr.f32.gmra.mrb[32].mxu1 %v10643_v21  ;;  %v10649_v21 = vld [vmem:[#allocation170_spill] sm:$0xff] }
 0x220   :  { %1646 = vmatprep.mubr.f32.mxu0 %v10644_v9  ;;  %4335 = vmatprep.mubr.f32.mxu1 %v10644_v9  ;;  %v10650_v9 = vld [vmem:[#allocation162_spill] sm:$0xff] }
 0x223   :  { %1649 = vmatmul.mubr.f32.gmra.mrb[34].mxu0 %v10645_v27  ;;  %4338 = vmatmul.mubr.f32.gmra.mrb[34].mxu1 %v10645_v27  ;;  %v10651_v27 = vld [vmem:[#allocation176_spill] sm:$0xff] }
 0x224   :  { %1655 = vmatprep.mubr.f32.mxu0 %v10646_v25  ;;  %4344 = vmatprep.mubr.f32.mxu1 %v10646_v25  ;;  %v10652_v25 = vld [vmem:[#allocation168_spill] sm:$0xff] }
 0x227   :  { %1658 = vmatmul.mubr.f32.gmra.mrb[36].mxu0 %v10647_v8  ;;  %4347 = vmatmul.mubr.f32.gmra.mrb[36].mxu1 %v10647_v8  ;;  %v10653_v8 = vld [vmem:[#allocation182_spill] sm:$0xff] }
 0x228   :  { %1664 = vmatprep.mubr.f32.mxu0 %v10648_v32  ;;  %4353 = vmatprep.mubr.f32.mxu1 %v10648_v32  ;;  %v10654_v32 = vld [vmem:[#allocation173_spill] sm:$0xff] }
 0x22b   :  { %1667 = vmatmul.mubr.f32.gmra.mrb[38].mxu0 %v10649_v21  ;;  %4356 = vmatmul.mubr.f32.gmra.mrb[38].mxu1 %v10649_v21  ;;  %v10655_v21 = vld [vmem:[#allocation188_spill] sm:$0xff] }
 0x22c   :  { %1673 = vmatprep.mubr.f32.mxu0 %v10650_v9  ;;  %4362 = vmatprep.mubr.f32.mxu1 %v10650_v9  ;;  %v10656_v9 = vld [vmem:[#allocation181_spill] sm:$0xff] }
 0x22f   :  { %1676 = vmatmul.mubr.f32.gmra.mrb[40].mxu0 %v10651_v27  ;;  %4365 = vmatmul.mubr.f32.gmra.mrb[40].mxu1 %v10651_v27  ;;  %v10657_v27 = vld [vmem:[#allocation194_spill] sm:$0xff] }
 0x230   :  { %1682 = vmatprep.mubr.f32.mxu0 %v10652_v25  ;;  %4371 = vmatprep.mubr.f32.mxu1 %v10652_v25  ;;  %v10658_v25 = vld [vmem:[#allocation186_spill] sm:$0xff] }
 0x233   :  { %1685 = vmatmul.mubr.f32.gmra.mrb[42].mxu0 %v10653_v8  ;;  %4374 = vmatmul.mubr.f32.gmra.mrb[42].mxu1 %v10653_v8  ;;  %v10659_v8 = vld [vmem:[#allocation192_spill] sm:$0xff] }
 0x234   :  { %1691 = vmatprep.mubr.f32.mxu0 %v10654_v32  ;;  %4380 = vmatprep.mubr.f32.mxu1 %v10654_v32  ;;  %v10660_v32 = vld [vmem:[#allocation73_spill] sm:$0xff] }
 0x237   :  { %1694 = vmatmul.mubr.f32.gmra.mrb[44].mxu0 %v10655_v21  ;;  %4383 = vmatmul.mubr.f32.gmra.mrb[44].mxu1 %v10655_v21  ;;  %v10662_v21 = vld [vmem:[#allocation4_spill] sm:$0xff] }
 0x238   :  { %1700 = vmatprep.mubr.f32.mxu0 %v10656_v9  ;;  %4389 = vmatprep.mubr.f32.mxu1 %v10656_v9  ;;  %v10663_v9 = vld [vmem:[#allocation6_spill] sm:$0xff] }
 0x23b   :  { %1703 = vmatmul.mubr.f32.gmra.mrb[46].mxu0 %v10657_v27  ;;  %4392 = vmatmul.mubr.f32.gmra.mrb[46].mxu1 %v10657_v27  ;;  %v10667_v27 = vld [vmem:[#allocation10_spill] sm:$0xff] }
 0x23c   :  { %1709 = vmatprep.mubr.f32.mxu0 %v10658_v25  ;;  %4398 = vmatprep.mubr.f32.mxu1 %v10658_v25  ;;  %v10668_v25 = vld [vmem:[#allocation79_spill] sm:$0xff] }
 0x23f   :  { %1712 = vmatmul.mubr.f32.gmra.mrb[48].mxu0 %v8318_v16  ;;  %4401 = vmatmul.mubr.f32.gmra.mrb[48].mxu1 %v8318_v16  ;;  %v10661_v16 = vld [vmem:[#allocation78_spill] sm:$0xff] }
 0x240   :  { %1718 = vmatprep.mubr.f32.mxu0 %v10659_v8  ;;  %4407 = vmatprep.mubr.f32.mxu1 %v10659_v8  ;;  %v10669_v8 = vld [vmem:[#allocation86_spill] sm:$0xff] }
 0x243   :  { %1721 = vmatmul.mubr.f32.gmra.mrb[50].mxu0 %v8333_v3  ;;  %4410 = vmatmul.mubr.f32.gmra.mrb[50].mxu1 %v8333_v3  ;;  %v10664_v3 = vld [vmem:[#allocation76_spill] sm:$0xff] }
 0x244   :  { %1727 = vmatprep.mubr.f32.mxu0 %v8310_v4  ;;  %4416 = vmatprep.mubr.f32.mxu1 %v8310_v4  ;;  %v10665_v4 = vld [vmem:[#allocation82_spill] sm:$0xff] }
 0x247   :  { %1730 = vmatmul.mubr.f32.gmra.mrb[52].mxu0 %v8345_v59  ;;  %4419 = vmatmul.mubr.f32.gmra.mrb[52].mxu1 %v8345_v59  ;;  %v10666_v59 = vld [vmem:[#allocation8_spill] sm:$0xff] }
 0x248   :  { %1823 = vmatprep.mubr.f32.mxu0 %v10660_v32  ;;  %4512 = vmatprep.mubr.f32.mxu1 %v10660_v32  ;;  %v10670_v32 = vld [vmem:[#allocation12_spill] sm:$0xff] }
 0x24b   :  { %1827 = vmatmul.mubr.f32.vlgmr.msra.gmra.mrb[0].mxu0 %v10661_v16  ;;  %4516 = vmatmul.mubr.f32.vlgmr.msra.gmra.mrb[0].mxu1 %v10661_v16  ;;  %v10671_v16 = vld [vmem:[#allocation16_spill] sm:$0xff] }
 0x24c   :  { %5979 = vmatpush1.bf16.msra.mxu0 %v10662_v21  ;;  %6159 = vmatpush1.bf16.msra.mxu1 %v10663_v9  ;;  %v10672_v21 = vld [vmem:[#allocation85_spill] sm:$0xff]  ;;  %v10673_v9 = vld [vmem:[#allocation90_spill] sm:$0xff] }
 0x24d   :  { %1834 = vmatprep.mubr.f32.mxu0 %v10664_v3  ;;  %4523 = vmatprep.mubr.f32.mxu1 %v10664_v3  ;;  %v10674_v3 = vld [vmem:[#allocation20_spill] sm:$0xff] }
 0x24e   :  { %5980 = vmatprep.subr.bf16.mxu0 %v10346_v30  ;;  %6160 = vmatprep.subr.bf16.mxu1 %v10346_v30 }
 0x24f   :  { %1838 = vmatmul.mubr.f32.gmra.mrb[2].mxu0 %v10665_v4  ;;  %4527 = vmatmul.mubr.f32.gmra.mrb[2].mxu1 %v10665_v4  ;;  %v10675_v4 = vld [vmem:[#allocation24_spill] sm:$0xff] }
 0x250   :  { %5982 = vmatpush1.bf16.msra.mxu0 %v10666_v59  ;;  %6162 = vmatpush1.bf16.msra.mxu1 %v10667_v27  ;;  %v10676_v59 = vld [vmem:[#allocation88_spill] sm:$0xff]  ;;  %v10677_v27 = vld [vmem:[#allocation94_spill] sm:$0xff] }
 0x251   :  { %1845 = vmatprep.mubr.f32.mxu0 %v10668_v25  ;;  %4534 = vmatprep.mubr.f32.mxu1 %v10668_v25  ;;  %v10678_v25 = vld [vmem:[#allocation28_spill] sm:$0xff] }
 0x252   :  { %5983 = vmatprep.subr.bf16.mxu0 %v10346_v30  ;;  %6163 = vmatprep.subr.bf16.mxu1 %v10346_v30 }
 0x253   :  { %1849 = vmatmul.mubr.f32.gmra.mrb[4].mxu0 %v10669_v8  ;;  %4538 = vmatmul.mubr.f32.gmra.mrb[4].mxu1 %v10669_v8  ;;  %v10679_v8 = vld [vmem:[#allocation32_spill] sm:$0xff] }
 0x254   :  { %5985 = vmatpush1.bf16.msra.mxu0 %v10670_v32  ;;  %6165 = vmatpush1.bf16.msra.mxu1 %v10671_v16  ;;  %v10680_v32 = vld [vmem:[#allocation92_spill] sm:$0xff]  ;;  %v10681_v16 = vld [vmem:[#allocation98_spill] sm:$0xff] }
 0x255   :  { %1856 = vmatprep.mubr.f32.mxu0 %v10672_v21  ;;  %4545 = vmatprep.mubr.f32.mxu1 %v10672_v21  ;;  %v10682_v21 = vld [vmem:[#allocation36_spill] sm:$0xff] }
 0x256   :  { %5986 = vmatprep.subr.bf16.mxu0 %v10346_v30  ;;  %6166 = vmatprep.subr.bf16.mxu1 %v10346_v30 }
 0x257   :  { %1860 = vmatmul.mubr.f32.gmra.mrb[6].mxu0 %v10673_v9  ;;  %4549 = vmatmul.mubr.f32.gmra.mrb[6].mxu1 %v10673_v9  ;;  %v10683_v9 = vld [vmem:[#allocation40_spill] sm:$0xff] }
 0x258   :  { %5988 = vmatpush1.bf16.msra.mxu0 %v10674_v3  ;;  %6168 = vmatpush1.bf16.msra.mxu1 %v10675_v4  ;;  %v10684_v3 = vld [vmem:[#allocation95_spill] sm:$0xff]  ;;  %v10685_v4 = vld [vmem:[#allocation102_spill] sm:$0xff] }
 0x259   :  { %1867 = vmatprep.mubr.f32.mxu0 %v10676_v59  ;;  %4556 = vmatprep.mubr.f32.mxu1 %v10676_v59  ;;  %v10686_v59 = vld [vmem:[#allocation44_spill] sm:$0xff] }
 0x25a   :  { %5989 = vmatprep.subr.bf16.mxu0 %v10346_v30  ;;  %6169 = vmatprep.subr.bf16.mxu1 %v10346_v30 }
 0x25b   :  { %1871 = vmatmul.mubr.f32.gmra.mrb[8].mxu0 %v10677_v27  ;;  %4560 = vmatmul.mubr.f32.gmra.mrb[8].mxu1 %v10677_v27  ;;  %v10687_v27 = vld [vmem:[#allocation48_spill] sm:$0xff] }
 0x25c   :  { %5991 = vmatpush1.bf16.msra.mxu0 %v10678_v25  ;;  %6171 = vmatpush1.bf16.msra.mxu1 %v10679_v8  ;;  %v10688_v25 = vld [vmem:[#allocation101_spill] sm:$0xff]  ;;  %v10689_v8 = vld [vmem:[#allocation106_spill] sm:$0xff] }
 0x25d   :  { %1878 = vmatprep.mubr.f32.mxu0 %v10680_v32  ;;  %4567 = vmatprep.mubr.f32.mxu1 %v10680_v32  ;;  %v10690_v32 = vld [vmem:[#allocation52_spill] sm:$0xff] }
 0x25e   :  { %5992 = vmatprep.subr.bf16.mxu0 %v10346_v30  ;;  %6172 = vmatprep.subr.bf16.mxu1 %v10346_v30 }
 0x25f   :  { %1882 = vmatmul.mubr.f32.gmra.mrb[10].mxu0 %v10681_v16  ;;  %4571 = vmatmul.mubr.f32.gmra.mrb[10].mxu1 %v10681_v16  ;;  %v10691_v16 = vld [vmem:[#allocation56_spill] sm:$0xff] }
 0x260   :  { %5994 = vmatpush1.bf16.msra.mxu0 %v10682_v21  ;;  %6174 = vmatpush1.bf16.msra.mxu1 %v10683_v9  ;;  %v10692_v21 = vld [vmem:[#allocation104_spill] sm:$0xff]  ;;  %v10693_v9 = vld [vmem:[#allocation110_spill] sm:$0xff] }
 0x261   :  { %1889 = vmatprep.mubr.f32.mxu0 %v10684_v3  ;;  %4578 = vmatprep.mubr.f32.mxu1 %v10684_v3  ;;  %v10694_v3 = vld [vmem:[#allocation60_spill] sm:$0xff] }
 0x262   :  { %5995 = vmatprep.subr.bf16.mxu0 %v10346_v30  ;;  %6175 = vmatprep.subr.bf16.mxu1 %v10346_v30 }
 0x263   :  { %1893 = vmatmul.mubr.f32.gmra.mrb[12].mxu0 %v10685_v4  ;;  %4582 = vmatmul.mubr.f32.gmra.mrb[12].mxu1 %v10685_v4  ;;  %v10695_v4 = vld [vmem:[#allocation64_spill] sm:$0xff] }
 0x264   :  { %5997 = vmatpush1.bf16.msra.mxu0 %v10686_v59  ;;  %6177 = vmatpush1.bf16.msra.mxu1 %v10687_v27  ;;  %v10696_v59 = vld [vmem:[#allocation108_spill] sm:$0xff]  ;;  %v10697_v27 = vld [vmem:[#allocation114_spill] sm:$0xff] }
 0x265   :  { %1900 = vmatprep.mubr.f32.mxu0 %v10688_v25  ;;  %4589 = vmatprep.mubr.f32.mxu1 %v10688_v25  ;;  %v10698_v25 = vld [vmem:[#allocation68_spill] sm:$0xff] }
 0x266   :  { %5998 = vmatprep.subr.bf16.mxu0 %v10346_v30  ;;  %6178 = vmatprep.subr.bf16.mxu1 %v10346_v30 }
 0x267   :  { %1904 = vmatmul.mubr.f32.gmra.mrb[14].mxu0 %v10689_v8  ;;  %4593 = vmatmul.mubr.f32.gmra.mrb[14].mxu1 %v10689_v8  ;;  %v10699_v8 = vld [vmem:[#allocation71_spill] sm:$0xff] }
 0x268   :  { %6000 = vmatpush1.bf16.msra.mxu0 %v10690_v32  ;;  %6180 = vmatpush1.bf16.msra.mxu1 %v10691_v16  ;;  %v10700_v32 = vld [vmem:[#allocation111_spill] sm:$0xff] }
 0x269   :  { %1911 = vmatprep.mubr.f32.mxu0 %v10692_v21  ;;  %4600 = vmatprep.mubr.f32.mxu1 %v10692_v21  ;;  %v10701_v16 = vld [vmem:[#allocation119_spill] sm:$0xff]  ;;  %v10702_v21 = vand.u32 4294901760, %v7957_v40 }
 0x26a   :  { %6001 = vmatprep.subr.bf16.mxu0 %v10346_v30  ;;  %6181 = vmatprep.subr.bf16.mxu1 %v10346_v30  ;;  %v10707_v40 = vld [vmem:[#allocation131_spill] sm:$0xff] }
 0x26b   :  { %1915 = vmatmul.mubr.f32.gmra.mrb[16].mxu0 %v10693_v9  ;;  %4604 = vmatmul.mubr.f32.gmra.mrb[16].mxu1 %v10693_v9  ;;  %v10703_v9 = vand.u32 4294901760, %v7963_v38  ;;  %v10708_v38 = vld [vmem:[#allocation127_spill] sm:$0xff] }
 0x26c   :  { %6003 = vmatpush1.bf16.msra.mxu0 %v10694_v3  ;;  %6183 = vmatpush1.bf16.msra.mxu1 %v10695_v4  ;;  %v10704_v3 = vld [vmem:[#allocation118_spill] sm:$0xff] }
 0x26d   :  { %1922 = vmatprep.mubr.f32.mxu0 %v10696_v59  ;;  %4611 = vmatprep.mubr.f32.mxu1 %v10696_v59  ;;  %v10705_v4 = vld [vmem:[#allocation126_spill] sm:$0xff]  ;;  %v10706_v59 = vld [vmem:[#allocation121_spill] sm:$0xff] }
 0x26e   :  { %6004 = vmatprep.subr.bf16.mxu0 %v10346_v30  ;;  %6184 = vmatprep.subr.bf16.mxu1 %v10346_v30 }
 0x26f   :  { %1926 = vmatmul.mubr.f32.gmra.mrb[18].mxu0 %v10697_v27  ;;  %4615 = vmatmul.mubr.f32.gmra.mrb[18].mxu1 %v10697_v27  ;;  %v10709_v27 = vld [vmem:[#allocation137_spill] sm:$0xff] }
 0x270   :  { %6006 = vmatpush1.bf16.msra.mxu0 %v10698_v25  ;;  %6186 = vmatpush1.bf16.msra.mxu1 %v10699_v8  ;;  %v10710_v25 = vld [vmem:[#allocation132_spill] sm:$0xff]  ;;  %v10711_v8 = vld [vmem:[#allocation143_spill] sm:$0xff] }
 0x271   :  { %1933 = vmatprep.mubr.f32.mxu0 %v10700_v32  ;;  %4622 = vmatprep.mubr.f32.mxu1 %v10700_v32  ;;  %v10712_v32 = vld [vmem:[#allocation139_spill] sm:$0xff] }
 0x272   :  { %2218 = vmatprep.subr.mxu0 %v10384_v23  ;;  %4907 = vmatprep.subr.mxu1 %v10384_v23 }
 0x273   :  { %1937 = vmatmul.mubr.f32.gmra.mrb[20].mxu0 %v10701_v16  ;;  %4626 = vmatmul.mubr.f32.gmra.mrb[20].mxu1 %v10701_v16  ;;  %v10713_v16 = vld [vmem:[#allocation150_spill] sm:$0xff] }
 0x274   :  { %2222 = vmatpush1.msra.mxu0 %v10702_v21  ;;  %4911 = vmatpush1.msra.mxu1 %v10703_v9  ;;  %v10714_v21 = vld [vmem:[#allocation145_spill] sm:$0xff]  ;;  %v10715_v9 = vld [vmem:[#allocation155_spill] sm:$0xff] }
 0x275   :  { %1944 = vmatprep.mubr.f32.mxu0 %v10704_v3  ;;  %4633 = vmatprep.mubr.f32.mxu1 %v10704_v3  ;;  %v10716_v3 = vld [vmem:[#allocation151_spill] sm:$0xff] }
 0x276   :  { %6007 = vmatprep.subr.bf16.mxu0 %v10346_v30  ;;  %6187 = vmatprep.subr.bf16.mxu1 %v10346_v30 }
 0x277   :  { %1948 = vmatmul.mubr.f32.gmra.mrb[22].mxu0 %v10705_v4  ;;  %4637 = vmatmul.mubr.f32.gmra.mrb[22].mxu1 %v10705_v4  ;;  %v10717_v4 = vld [vmem:[#allocation161_spill] sm:$0xff] }
 0x278   :  { %1955 = vmatprep.mubr.f32.mxu0 %v10706_v59  ;;  %4644 = vmatprep.mubr.f32.mxu1 %v10706_v59  ;;  %v10718_v59 = vld [vmem:[#allocation156_spill] sm:$0xff] }
 0x27b   :  { %1959 = vmatmul.mubr.f32.gmra.mrb[24].mxu0 %v10707_v40  ;;  %4648 = vmatmul.mubr.f32.gmra.mrb[24].mxu1 %v10707_v40  ;;  %v10719_v40 = vld [vmem:[#allocation167_spill] sm:$0xff] }
 0x27c   :  { %1966 = vmatprep.mubr.f32.mxu0 %v10708_v38  ;;  %4655 = vmatprep.mubr.f32.mxu1 %v10708_v38  ;;  %v10720_v38 = vld [vmem:[#allocation163_spill] sm:$0xff] }
 0x27f   :  { %1970 = vmatmul.mubr.f32.gmra.mrb[26].mxu0 %v10709_v27  ;;  %4659 = vmatmul.mubr.f32.gmra.mrb[26].mxu1 %v10709_v27  ;;  %v10721_v27 = vld [vmem:[#allocation174_spill] sm:$0xff] }
 0x280   :  { %1977 = vmatprep.mubr.f32.mxu0 %v10710_v25  ;;  %4666 = vmatprep.mubr.f32.mxu1 %v10710_v25  ;;  %v10722_v25 = vld [vmem:[#allocation169_spill] sm:$0xff] }
 0x283   :  { %1981 = vmatmul.mubr.f32.gmra.mrb[28].mxu0 %v10711_v8  ;;  %4670 = vmatmul.mubr.f32.gmra.mrb[28].mxu1 %v10711_v8  ;;  %v10723_v8 = vld [vmem:[#allocation179_spill] sm:$0xff] }
 0x284   :  { %1988 = vmatprep.mubr.f32.mxu0 %v10712_v32  ;;  %4677 = vmatprep.mubr.f32.mxu1 %v10712_v32  ;;  %v10724_v32 = vld [vmem:[#allocation175_spill] sm:$0xff] }
 0x287   :  { %1992 = vmatmul.mubr.f32.gmra.mrb[30].mxu0 %v10713_v16  ;;  %4681 = vmatmul.mubr.f32.gmra.mrb[30].mxu1 %v10713_v16  ;;  %v10725_v16 = vld [vmem:[#allocation185_spill] sm:$0xff] }
 0x288   :  { %1999 = vmatprep.mubr.f32.mxu0 %v10714_v21  ;;  %4688 = vmatprep.mubr.f32.mxu1 %v10714_v21  ;;  %v10726_v21 = vld [vmem:[#allocation180_spill] sm:$0xff] }
 0x28b   :  { %2003 = vmatmul.mubr.f32.gmra.mrb[32].mxu0 %v10715_v9  ;;  %4692 = vmatmul.mubr.f32.gmra.mrb[32].mxu1 %v10715_v9  ;;  %v10727_v9 = vld [vmem:[#allocation191_spill] sm:$0xff] }
 0x28c   :  { %2010 = vmatprep.mubr.f32.mxu0 %v10716_v3  ;;  %4699 = vmatprep.mubr.f32.mxu1 %v10716_v3  ;;  %v10728_v3 = vld [vmem:[#allocation187_spill] sm:$0xff] }
 0x28f   :  { %2014 = vmatmul.mubr.f32.gmra.mrb[34].mxu0 %v10717_v4  ;;  %4703 = vmatmul.mubr.f32.gmra.mrb[34].mxu1 %v10717_v4  ;;  %v10729_v4 = vld [vmem:[#allocation197_spill] sm:$0xff] }
 0x290   :  { %2021 = vmatprep.mubr.f32.mxu0 %v10718_v59  ;;  %4710 = vmatprep.mubr.f32.mxu1 %v10718_v59  ;;  %v10730_v59 = vld [vmem:[#allocation193_spill] sm:$0xff] }
 0x293   :  { %2025 = vmatmul.mubr.f32.gmra.mrb[36].mxu0 %v10719_v40  ;;  %4714 = vmatmul.mubr.f32.gmra.mrb[36].mxu1 %v10719_v40  ;;  %v10731_v40 = vld [vmem:[#allocation200_spill] sm:$0xff] }
 0x294   :  { %2032 = vmatprep.mubr.f32.mxu0 %v10720_v38  ;;  %4721 = vmatprep.mubr.f32.mxu1 %v10720_v38  ;;  %v10732_v38 = vld [vmem:[#allocation198_spill] sm:$0xff] }
 0x297   :  { %2036 = vmatmul.mubr.f32.gmra.mrb[38].mxu0 %v10721_v27  ;;  %4725 = vmatmul.mubr.f32.gmra.mrb[38].mxu1 %v10721_v27  ;;  %v193_v27 = vld [vmem:[%s9949_s2 + $0x48] sm:$0xff] }
 0x298   :  { %2043 = vmatprep.mubr.f32.mxu0 %v10722_v25  ;;  %4732 = vmatprep.mubr.f32.mxu1 %v10722_v25  ;;  %v204_v25 = vld [vmem:[%s9949_s2 + $0xa0] sm:$0xff] }
 0x29b   :  { %2047 = vmatmul.mubr.f32.gmra.mrb[40].mxu0 %v10723_v8  ;;  %4736 = vmatmul.mubr.f32.gmra.mrb[40].mxu1 %v10723_v8  ;;  %v10745_v8 = vld [vmem:[#allocation160_spill] sm:$0xff] }
 0x29c   :  { %2054 = vmatprep.mubr.f32.mxu0 %v10724_v32  ;;  %4743 = vmatprep.mubr.f32.mxu1 %v10724_v32  ;;  %v10746_v32 = vld [vmem:[#allocation153_spill] sm:$0xff] }
 0x29f   :  { %2058 = vmatmul.mubr.f32.gmra.mrb[42].mxu0 %v10725_v16  ;;  %4747 = vmatmul.mubr.f32.gmra.mrb[42].mxu1 %v10725_v16  ;;  %v195_v16 = vld [vmem:[%s9949_s2 + $0x58] sm:$0xff] }
 0x2a0   :  { %2065 = vmatprep.mubr.f32.mxu0 %v10726_v21  ;;  %4754 = vmatprep.mubr.f32.mxu1 %v10726_v21  ;;  %v206_v21 = vld [vmem:[%s9949_s2 + $0xb0] sm:$0xff] }
 0x2a3   :  { %2069 = vmatmul.mubr.f32.gmra.mrb[44].mxu0 %v10727_v9  ;;  %4758 = vmatmul.mubr.f32.gmra.mrb[44].mxu1 %v10727_v9  ;;  %v10747_v9 = vld [vmem:[#allocation166_spill] sm:$0xff] }
 0x2a4   :  { %2076 = vmatprep.mubr.f32.mxu0 %v10728_v3  ;;  %4765 = vmatprep.mubr.f32.mxu1 %v10728_v3  ;;  %v10748_v3 = vld [vmem:[#allocation159_spill] sm:$0xff] }
 0x2a7   :  { %2080 = vmatmul.mubr.f32.gmra.mrb[46].mxu0 %v10729_v4  ;;  %4769 = vmatmul.mubr.f32.gmra.mrb[46].mxu1 %v10729_v4  ;;  %v197_v4 = vld [vmem:[%s9949_s2 + $0x68] sm:$0xff] }
 0x2a8   :  { %2087 = vmatprep.mubr.f32.mxu0 %v10730_v59  ;;  %4776 = vmatprep.mubr.f32.mxu1 %v10730_v59  ;;  %v208_v59 = vld [vmem:[%s9949_s2 + $0xc0] sm:$0xff] }
 0x2ab   :  { %2091 = vmatmul.mubr.f32.gmra.mrb[48].mxu0 %v10731_v40  ;;  %4780 = vmatmul.mubr.f32.gmra.mrb[48].mxu1 %v10731_v40  ;;  %v10749_v40 = vld [vmem:[#allocation172_spill] sm:$0xff] }
 0x2ac   :  { %2098 = vmatprep.mubr.f32.mxu0 %v10732_v38  ;;  %4787 = vmatprep.mubr.f32.mxu1 %v10732_v38  ;;  %v10750_v38 = vld [vmem:[#allocation165_spill] sm:$0xff] }
 0x2af   :  { %2102 = vmatmul.mubr.f32.gmra.mrb[50].mxu0 %v8340_v42  ;;  %4791 = vmatmul.mubr.f32.gmra.mrb[50].mxu1 %v8340_v42  ;;  %v192_v42 = vld [vmem:[%s9949_s2 + $0x40] sm:$0xff] }
 0x2b0   :  { %2109 = vmatprep.mubr.f32.mxu0 %v8330_v52  ;;  %4798 = vmatprep.mubr.f32.mxu1 %v8330_v52  ;;  %v10734_v52 = vld [vmem:[#allocation117_spill] sm:$0xff] }
 0x2b3   :  { %2113 = vmatmul.mubr.f32.gmra.mrb[52].mxu0 %v8350_v63  ;;  %4802 = vmatmul.mubr.f32.gmra.mrb[52].mxu1 %v8350_v63  ;;  %v187_v63 = vld [vmem:[%s9949_s2 + $0x18] sm:$0xff] }
 0x2b4   :  { %2246 = vmatprep.mubr.f32.mxu0 %v7727_v7  ;;  %4935 = vmatprep.mubr.f32.mxu1 %v7727_v7 }
 0x2b7   :  { %2248 = vmatmul.mubr.f32.vlgmr.msra.gmra.mrb[0].mxu0 %v7749_v28  ;;  %4937 = vmatmul.mubr.f32.vlgmr.msra.gmra.mrb[0].mxu1 %v7749_v28 }
 0x2b8   :  { %6009 = vmatpush1.bf16.msra.mxu0 %v10590_v61  ;;  %6189 = vmatpush1.bf16.msra.mxu1 %v10591_v46  ;;  %v186_v46 = vld [vmem:[%s9949_s2 + $0x10] sm:$0xff]  ;;  %v191_v61 = vld [vmem:[%s9949_s2 + $0x38] sm:$0xff] }
 0x2b9   :  { %2253 = vmatprep.mubr.f32.mxu0 %v7736_v12  ;;  %4942 = vmatprep.mubr.f32.mxu1 %v7736_v12 }
 0x2ba   :  { %6010 = vmatprep.subr.bf16.mxu0 %v10346_v30  ;;  %6190 = vmatprep.subr.bf16.mxu1 %v10346_v30 }
 0x2bb   :  { %2255 = vmatmul.mubr.f32.gmra.mrb[2].mxu0 %v7763_v37  ;;  %4944 = vmatmul.mubr.f32.gmra.mrb[2].mxu1 %v7763_v37 }
 0x2bc   :  { %6012 = vmatpush1.bf16.msra.mxu0 %v10594_v19  ;;  %6192 = vmatpush1.bf16.msra.mxu1 %v10595_v22  ;;  %v10733_v22 = vld [vmem:[#allocation124_spill] sm:$0xff]  ;;  %v10744_v19 = vld [vmem:[#allocation147_spill] sm:$0xff] }
 0x2bd   :  { %2260 = vmatprep.mubr.f32.mxu0 %v7747_v58  ;;  %4949 = vmatprep.mubr.f32.mxu1 %v7747_v58 }
 0x2be   :  { %6013 = vmatprep.subr.bf16.mxu0 %v10346_v30  ;;  %6193 = vmatprep.subr.bf16.mxu1 %v10346_v30 }
 0x2bf   :  { %2262 = vmatmul.mubr.f32.gmra.mrb[4].mxu0 %v7784_v13  ;;  %4951 = vmatmul.mubr.f32.gmra.mrb[4].mxu1 %v7784_v13 }
 0x2c0   :  { %6015 = vmatpush1.bf16.msra.mxu0 %v10598_v18  ;;  %6195 = vmatpush1.bf16.msra.mxu1 %v10599_v62  ;;  %v202_v62 = vld [vmem:[%s9949_s2 + $0x90] sm:$0xff]  ;;  %v10743_v18 = vld [vmem:[#allocation154_spill] sm:$0xff] }
 0x2c1   :  { %2267 = vmatprep.mubr.f32.mxu0 %v7761_v34  ;;  %4956 = vmatprep.mubr.f32.mxu1 %v7761_v34 }
 0x2c2   :  { %6016 = vmatprep.subr.bf16.mxu0 %v10346_v30  ;;  %6196 = vmatprep.subr.bf16.mxu1 %v10346_v30 }
 0x2c3   :  { %2269 = vmatmul.mubr.f32.gmra.mrb[6].mxu0 %v7807_v36  ;;  %4958 = vmatmul.mubr.f32.gmra.mrb[6].mxu1 %v7807_v36 }
 0x2c4   :  { %6018 = vmatpush1.bf16.msra.mxu0 %v10602_v11  ;;  %6198 = vmatpush1.bf16.msra.mxu1 %v10603_v50  ;;  %v184_v11 = vld [vmem:[%s9949_s2] sm:$0xff]  ;;  %v10742_v50 = vld [vmem:[#allocation141_spill] sm:$0xff] }
 0x2c5   :  { %2274 = vmatprep.mubr.f32.mxu0 %v7780_v35  ;;  %4963 = vmatprep.mubr.f32.mxu1 %v7780_v35 }
 0x2c6   :  { %6019 = vmatprep.subr.bf16.mxu0 %v10346_v30  ;;  %6199 = vmatprep.subr.bf16.mxu1 %v10346_v30 }
 0x2c7   :  { %2276 = vmatmul.mubr.f32.gmra.mrb[8].mxu0 %v7832_v6  ;;  %4965 = vmatmul.mubr.f32.gmra.mrb[8].mxu1 %v7832_v6 }
 0x2c8   :  { %6021 = vmatpush1.bf16.msra.mxu0 %v10606_v51  ;;  %6201 = vmatpush1.bf16.msra.mxu1 %v10607_v5  ;;  %v200_v5 = vld [vmem:[%s9949_s2 + $0x80] sm:$0xff]  ;;  %v10741_v51 = vld [vmem:[#allocation148_spill] sm:$0xff] }
 0x2c9   :  { %2281 = vmatprep.mubr.f32.mxu0 %v7798_v48  ;;  %4970 = vmatprep.mubr.f32.mxu1 %v7798_v48 }
 0x2ca   :  { %6022 = vmatprep.subr.bf16.mxu0 %v10346_v30  ;;  %6202 = vmatprep.subr.bf16.mxu1 %v10346_v30 }
 0x2cb   :  { %2283 = vmatmul.mubr.f32.gmra.mrb[10].mxu0 %v7857_v47  ;;  %4972 = vmatmul.mubr.f32.gmra.mrb[10].mxu1 %v7857_v47 }
 0x2cc   :  { %6024 = vmatpush1.bf16.msra.mxu0 %v10610_v56  ;;  %6204 = vmatpush1.bf16.msra.mxu1 %v10611_v26  ;;  %v10740_v26 = vld [vmem:[#allocation135_spill] sm:$0xff]  ;;  %v190_v56 = vld [vmem:[%s9949_s2 + $0x30] sm:$0xff] }
 0x2cd   :  { %2288 = vmatprep.mubr.f32.mxu0 %v7824_v0  ;;  %4977 = vmatprep.mubr.f32.mxu1 %v7824_v0 }
 0x2ce   :  { %6025 = vmatprep.subr.bf16.mxu0 %v10346_v30  ;;  %6205 = vmatprep.subr.bf16.mxu1 %v10346_v30 }
 0x2cf   :  { %2290 = vmatmul.mubr.f32.gmra.mrb[12].mxu0 %v7882_v20  ;;  %4979 = vmatmul.mubr.f32.gmra.mrb[12].mxu1 %v7882_v20 }
 0x2d0   :  { %6027 = vmatpush1.bf16.msra.mxu0 %v10614_v53  ;;  %6207 = vmatpush1.bf16.msra.mxu1 %v10615_v60  ;;  %v198_v60 = vld [vmem:[%s9949_s2 + $0x70] sm:$0xff]  ;;  %v10739_v53 = vld [vmem:[#allocation142_spill] sm:$0xff] }
 0x2d1   :  { %2295 = vmatprep.mubr.f32.mxu0 %v7851_v44  ;;  %4984 = vmatprep.mubr.f32.mxu1 %v7851_v44 }
 0x2d2   :  { %6028 = vmatprep.subr.bf16.mxu0 %v10346_v30  ;;  %6208 = vmatprep.subr.bf16.mxu1 %v10346_v30 }
 0x2d3   :  { %2297 = vmatmul.mubr.f32.gmra.mrb[14].mxu0 %v7907_v10  ;;  %4986 = vmatmul.mubr.f32.gmra.mrb[14].mxu1 %v7907_v10 }
 0x2d4   :  { %6030 = vmatpush1.bf16.msra.mxu0 %v10618_v49  ;;  %6210 = vmatpush1.bf16.msra.mxu1 %v10619_v31  ;;  %v10738_v31 = vld [vmem:[#allocation129_spill] sm:$0xff]  ;;  %v189_v49 = vld [vmem:[%s9949_s2 + $0x28] sm:$0xff] }
 0x2d5   :  { %2302 = vmatprep.mubr.f32.mxu0 %v7876_v57  ;;  %4991 = vmatprep.mubr.f32.mxu1 %v7876_v57 }
 0x2d6   :  { %6031 = vmatprep.subr.bf16.mxu0 %v10346_v30  ;;  %6211 = vmatprep.subr.bf16.mxu1 %v10346_v30 }
 0x2d7   :  { %2304 = vmatmul.mubr.f32.gmra.mrb[16].mxu0 %v7932_v39  ;;  %4993 = vmatmul.mubr.f32.gmra.mrb[16].mxu1 %v7932_v39 }
 0x2d8   :  { %6033 = vmatpush1.bf16.msra.mxu0 %v10622_v45  ;;  %6213 = vmatpush1.bf16.msra.mxu1 %v10623_v17  ;;  %v196_v17 = vld [vmem:[%s9949_s2 + $0x60] sm:$0xff]  ;;  %v10737_v45 = vld [vmem:[#allocation136_spill] sm:$0xff] }
 0x2d9   :  { %2309 = vmatprep.mubr.f32.mxu0 %v7898_v14  ;;  %4998 = vmatprep.mubr.f32.mxu1 %v7898_v14 }
 0x2da   :  { %6034 = vmatprep.subr.bf16.mxu0 %v10346_v30  ;;  %6214 = vmatprep.subr.bf16.mxu1 %v10346_v30  ;;  %v7036_v30 = vmov 0  }
 0x2db   :  { %2311 = vmatmul.mubr.f32.gmra.mrb[18].mxu0 %v7965_v29  ;;  %5000 = vmatmul.mubr.f32.gmra.mrb[18].mxu1 %v7965_v29 }
 0x2dc   :  { %6036 = vmatpush1.bf16.msra.mxu0 %v10626_v15  ;;  %6216 = vmatpush1.bf16.msra.mxu1 %v10627_v55  ;;  %v10736_v55 = vld [vmem:[#allocation123_spill] sm:$0xff]  ;;  %v188_v15 = vld [vmem:[%s9949_s2 + $0x20] sm:$0xff] }
 0x2dd   :  { %2316 = vmatprep.mubr.f32.mxu0 %v7924_v24  ;;  %5005 = vmatprep.mubr.f32.mxu1 %v7924_v24 }
 0x2de   :  { %2495 = vmatprep.subr.mxu0 %v10384_v23  ;;  %5184 = vmatprep.subr.mxu1 %v10384_v23  ;;  %v185_v23 = vld [vmem:[%s9949_s2 + $0x8] sm:$0xff] }
 0x2df   :  { %2318 = vmatmul.mubr.f32.gmra.mrb[20].mxu0 %v7992_v2  ;;  %5007 = vmatmul.mubr.f32.gmra.mrb[20].mxu1 %v7992_v2 }
 0x2e0   :  { %2497 = vmatpush1.msra.mxu0 %v10630_v54  ;;  %5186 = vmatpush1.msra.mxu1 %v10631_v33  ;;  %v194_v33 = vld [vmem:[%s9949_s2 + $0x50] sm:$0xff]  ;;  %v10735_v54 = vld [vmem:[#allocation130_spill] sm:$0xff] }
 0x2e1   :  { %2323 = vmatprep.mubr.f32.mxu0 %v7951_v41  ;;  %5012 = vmatprep.mubr.f32.mxu1 %v7951_v41 }
 0x2e2   :  { %6815 = vset.pattern.permute.xlu0 %v7036_v30  ;;  %6816 = vset.pattern.permute.xlu1 %v7036_v30  ;;  %v199_v30 = vld [vmem:[%s9949_s2 + $0x78] sm:$0xff] }
 0x2e3   :  { %2325 = vmatmul.mubr.f32.gmra.mrb[22].mxu0 %v8023_v43  ;;  %5014 = vmatmul.mubr.f32.gmra.mrb[22].mxu1 %v8023_v43 }
 0x2e4   :  { %2330 = vmatprep.mubr.f32.mxu0 %v7984_v1  ;;  %5019 = vmatprep.mubr.f32.mxu1 %v7984_v1 }
 0x2e5   :  { %234 = vperm.xlu0 %6815, %v184_v11   ;;  %239 = vperm.xlu1 %6816, %v185_v23   ;;  %v210_v11 = vld [vmem:[%s9949_s2 + $0xd0] sm:$0x1]  ;;  %v10751_v23 = vld [vmem:[#allocation178_spill] sm:$0xff] }
 0x2e7   :  { %2332 = vmatmul.mubr.f32.gmra.mrb[24].mxu0 %v10733_v22  ;;  %5021 = vmatmul.mubr.f32.gmra.mrb[24].mxu1 %v10733_v22 }
 0x2e8   :  { %2337 = vmatprep.mubr.f32.mxu0 %v10734_v52  ;;  %5026 = vmatprep.mubr.f32.mxu1 %v10734_v52 }
 0x2e9   :  { %244 = vperm.xlu0 %6815, %v186_v46   ;;  %274 = vperm.xlu1 %6816, %v192_v42   ;;  %v10752_v46 = vld [vmem:[#allocation171_spill] sm:$0xff] }
 0x2ea   :  { %v201_v42 = vld [vmem:[%s9949_s2 + $0x88] sm:$0xff] }
 0x2eb   :  { %2339 = vmatmul.mubr.f32.gmra.mrb[26].mxu0 %v10735_v54  ;;  %5028 = vmatmul.mubr.f32.gmra.mrb[26].mxu1 %v10735_v54 }
 0x2ec   :  { %2344 = vmatprep.mubr.f32.mxu0 %v10736_v55  ;;  %5033 = vmatprep.mubr.f32.mxu1 %v10736_v55 }
 0x2ed   :  { %249 = vperm.xlu0 %6815, %v187_v63   ;;  %284 = vperm.xlu1 %6816, %v194_v33   ;;  %v10753_v63 = vld [vmem:[#allocation184_spill] sm:$0xff]  ;;  %v10754_v33 = vld [vmem:[#allocation177_spill] sm:$0xff] }
 0x2ef   :  { %2346 = vmatmul.mubr.f32.gmra.mrb[28].mxu0 %v10737_v45  ;;  %5035 = vmatmul.mubr.f32.gmra.mrb[28].mxu1 %v10737_v45 }
 0x2f0   :  { %2351 = vmatprep.mubr.f32.mxu0 %v10738_v31  ;;  %5040 = vmatprep.mubr.f32.mxu1 %v10738_v31 }
 0x2f1   :  { %254 = vperm.xlu0 %6815, %v188_v15   ;;  %294 = vperm.xlu1 %6816, %v196_v17   ;;  %v203_v15 = vld [vmem:[%s9949_s2 + $0x98] sm:$0xff]  ;;  %v10755_v17 = vld [vmem:[#allocation190_spill] sm:$0xff] }
 0x2f3   :  { %2353 = vmatmul.mubr.f32.gmra.mrb[30].mxu0 %v10739_v53  ;;  %5042 = vmatmul.mubr.f32.gmra.mrb[30].mxu1 %v10739_v53 }
 0x2f4   :  { %2358 = vmatprep.mubr.f32.mxu0 %v10740_v26  ;;  %5047 = vmatprep.mubr.f32.mxu1 %v10740_v26 }
 0x2f5   :  { %259 = vperm.xlu0 %6815, %v189_v49   ;;  %304 = vperm.xlu1 %6816, %v198_v60   ;;  %v10756_v49 = vld [vmem:[#allocation183_spill] sm:$0xff] }
 0x2f6   :  { %v205_v60 = vld [vmem:[%s9949_s2 + $0xa8] sm:$0xff] }
 0x2f7   :  { %2360 = vmatmul.mubr.f32.gmra.mrb[32].mxu0 %v10741_v51  ;;  %5049 = vmatmul.mubr.f32.gmra.mrb[32].mxu1 %v10741_v51 }
 0x2f8   :  { %2365 = vmatprep.mubr.f32.mxu0 %v10742_v50  ;;  %5054 = vmatprep.mubr.f32.mxu1 %v10742_v50 }
 0x2f9   :  { %264 = vperm.xlu0 %6815, %v190_v56   ;;  %314 = vperm.xlu1 %6816, %v200_v5   ;;  %v10757_v56 = vld [vmem:[#allocation196_spill] sm:$0xff]  ;;  %v10758_v5 = vld [vmem:[#allocation189_spill] sm:$0xff] }
 0x2fb   :  { %2367 = vmatmul.mubr.f32.gmra.mrb[34].mxu0 %v10743_v18  ;;  %5056 = vmatmul.mubr.f32.gmra.mrb[34].mxu1 %v10743_v18 }
 0x2fc   :  { %2372 = vmatprep.mubr.f32.mxu0 %v10744_v19  ;;  %5061 = vmatprep.mubr.f32.mxu1 %v10744_v19 }
 0x2fd   :  { %269 = vperm.xlu0 %6815, %v191_v61   ;;  %324 = vperm.xlu1 %6816, %v202_v62   ;;  %v207_v61 = vld [vmem:[%s9949_s2 + $0xb8] sm:$0xff]  ;;  %v10759_v62 = vld [vmem:[#allocation199_spill] sm:$0xff] }
 0x2ff   :  { %2374 = vmatmul.mubr.f32.gmra.mrb[36].mxu0 %v10745_v8  ;;  %5063 = vmatmul.mubr.f32.gmra.mrb[36].mxu1 %v10745_v8 }
 0x300   :  { %2379 = vmatprep.mubr.f32.mxu0 %v10746_v32  ;;  %5068 = vmatprep.mubr.f32.mxu1 %v10746_v32 }
 0x301   :  { %279 = vperm.xlu0 %6815, %v193_v27   ;;  %334 = vperm.xlu1 %6816, %v204_v25   ;;  %v10760_v27 = vld [vmem:[#allocation195_spill] sm:$0xff] }
 0x302   :  { %v209_v25 = vld [vmem:[%s9949_s2 + $0xc8] sm:$0xff] }
 0x303   :  { %2381 = vmatmul.mubr.f32.gmra.mrb[38].mxu0 %v10747_v9  ;;  %5070 = vmatmul.mubr.f32.gmra.mrb[38].mxu1 %v10747_v9 }
 0x304   :  { %2386 = vmatprep.mubr.f32.mxu0 %v10748_v3  ;;  %5075 = vmatprep.mubr.f32.mxu1 %v10748_v3 }
 0x305   :  { %289 = vperm.xlu0 %6815, %v195_v16   ;;  %344 = vperm.xlu1 %6816, %v206_v21   ;;  %v10761_v16 = vld [vmem:[#allocation201_spill] sm:$0xff] }
 0x307   :  { %2388 = vmatmul.mubr.f32.gmra.mrb[40].mxu0 %v10749_v40  ;;  %5077 = vmatmul.mubr.f32.gmra.mrb[40].mxu1 %v10749_v40 }
 0x308   :  { %2393 = vmatprep.mubr.f32.mxu0 %v10750_v38  ;;  %5082 = vmatprep.mubr.f32.mxu1 %v10750_v38 }
 0x309   :  { %299 = vperm.xlu0 %6815, %v197_v4   ;;  %354 = vperm.xlu1 %6816, %v208_v59  }
 0x30b   :  { %2395 = vmatmul.mubr.f32.gmra.mrb[42].mxu0 %v10751_v23  ;;  %5084 = vmatmul.mubr.f32.gmra.mrb[42].mxu1 %v10751_v23 }
 0x30c   :  { %2400 = vmatprep.mubr.f32.mxu0 %v10752_v46  ;;  %5089 = vmatprep.mubr.f32.mxu1 %v10752_v46 }
 0x30d   :  { %309 = vperm.xlu0 %6815, %v199_v30   ;;  %364 = vperm.xlu1 %6816, %v210_v11  }
 0x30f   :  { %2402 = vmatmul.mubr.f32.gmra.mrb[44].mxu0 %v10753_v63  ;;  %5091 = vmatmul.mubr.f32.gmra.mrb[44].mxu1 %v10753_v63 }
 0x310   :  { %2407 = vmatprep.mubr.f32.mxu0 %v10754_v33  ;;  %5096 = vmatprep.mubr.f32.mxu1 %v10754_v33 }
 0x311   :  { %319 = vperm.xlu0 %6815, %v201_v42  }
 0x313   :  { %2409 = vmatmul.mubr.f32.gmra.mrb[46].mxu0 %v10755_v17  ;;  %5098 = vmatmul.mubr.f32.gmra.mrb[46].mxu1 %v10755_v17 }
 0x314   :  { %2414 = vmatprep.mubr.f32.mxu0 %v10756_v49  ;;  %5103 = vmatprep.mubr.f32.mxu1 %v10756_v49 }
 0x315   :  { %329 = vperm.xlu0 %6815, %v203_v15  }
 0x317   :  { %2416 = vmatmul.mubr.f32.gmra.mrb[48].mxu0 %v10757_v56  ;;  %5105 = vmatmul.mubr.f32.gmra.mrb[48].mxu1 %v10757_v56 }
 0x318   :  { %2421 = vmatprep.mubr.f32.mxu0 %v10758_v5  ;;  %5110 = vmatprep.mubr.f32.mxu1 %v10758_v5 }
 0x319   :  { %339 = vperm.xlu0 %6815, %v205_v60  }
 0x31b   :  { %2423 = vmatmul.mubr.f32.gmra.mrb[50].mxu0 %v10759_v62  ;;  %5112 = vmatmul.mubr.f32.gmra.mrb[50].mxu1 %v10759_v62 }
 0x31c   :  { %2428 = vmatprep.mubr.f32.mxu0 %v10760_v27  ;;  %5117 = vmatprep.mubr.f32.mxu1 %v10760_v27 }
 0x31d   :  { %349 = vperm.xlu0 %6815, %v207_v61  }
 0x31f   :  { %2430 = vmatmul.mubr.f32.gmra.mrb[52].mxu0 %v10761_v16  ;;  %5119 = vmatmul.mubr.f32.gmra.mrb[52].mxu1 %v10761_v16 }
 0x320   :  { %2521 = vmatprep.mubr.f32.mxu0 %v7727_v7  ;;  %5210 = vmatprep.mubr.f32.mxu1 %v7727_v7 }
 0x321   :  { %359 = vperm.xlu0 %6815, %v209_v25  }
 0x323   :  { %2523 = vmatmul.mubr.f32.vlgmr.msra.gmra.mrb[0].mxu0 %v7749_v28  ;;  %5212 = vmatmul.mubr.f32.vlgmr.msra.gmra.mrb[0].mxu1 %v7749_v28 }
 0x324   :  { %2528 = vmatprep.mubr.f32.mxu0 %v7736_v12  ;;  %5217 = vmatprep.mubr.f32.mxu1 %v7736_v12 }
 0x327   :  { %2530 = vmatmul.mubr.f32.gmra.mrb[2].mxu0 %v7763_v37  ;;  %5219 = vmatmul.mubr.f32.gmra.mrb[2].mxu1 %v7763_v37 }
 0x328   :  { %2535 = vmatprep.mubr.f32.mxu0 %v7747_v58  ;;  %5224 = vmatprep.mubr.f32.mxu1 %v7747_v58 }
 0x32b   :  { %2537 = vmatmul.mubr.f32.gmra.mrb[4].mxu0 %v7784_v13  ;;  %5226 = vmatmul.mubr.f32.gmra.mrb[4].mxu1 %v7784_v13 }
 0x32c   :  { %2542 = vmatprep.mubr.f32.mxu0 %v7761_v34  ;;  %5231 = vmatprep.mubr.f32.mxu1 %v7761_v34 }
 0x32f   :  { %2544 = vmatmul.mubr.f32.gmra.mrb[6].mxu0 %v7807_v36  ;;  %5233 = vmatmul.mubr.f32.gmra.mrb[6].mxu1 %v7807_v36 }
 0x330   :  { %2549 = vmatprep.mubr.f32.mxu0 %v7780_v35  ;;  %5238 = vmatprep.mubr.f32.mxu1 %v7780_v35 }
 0x333   :  { %2551 = vmatmul.mubr.f32.gmra.mrb[8].mxu0 %v7832_v6  ;;  %5240 = vmatmul.mubr.f32.gmra.mrb[8].mxu1 %v7832_v6 }
 0x334   :  { %2556 = vmatprep.mubr.f32.mxu0 %v7798_v48  ;;  %5245 = vmatprep.mubr.f32.mxu1 %v7798_v48 }
 0x337   :  { %2558 = vmatmul.mubr.f32.gmra.mrb[10].mxu0 %v7857_v47  ;;  %5247 = vmatmul.mubr.f32.gmra.mrb[10].mxu1 %v7857_v47 }
 0x338   :  { %2563 = vmatprep.mubr.f32.mxu0 %v7824_v0  ;;  %5252 = vmatprep.mubr.f32.mxu1 %v7824_v0 }
 0x33b   :  { %2565 = vmatmul.mubr.f32.gmra.mrb[12].mxu0 %v7882_v20  ;;  %5254 = vmatmul.mubr.f32.gmra.mrb[12].mxu1 %v7882_v20 }
 0x33c   :  { %2570 = vmatprep.mubr.f32.mxu0 %v7851_v44  ;;  %5259 = vmatprep.mubr.f32.mxu1 %v7851_v44 }
 0x33f   :  { %2572 = vmatmul.mubr.f32.gmra.mrb[14].mxu0 %v7907_v10  ;;  %5261 = vmatmul.mubr.f32.gmra.mrb[14].mxu1 %v7907_v10 }
 0x340   :  { %2577 = vmatprep.mubr.f32.mxu0 %v7876_v57  ;;  %5266 = vmatprep.mubr.f32.mxu1 %v7876_v57 }
 0x343   :  { %2579 = vmatmul.mubr.f32.gmra.mrb[16].mxu0 %v7932_v39  ;;  %5268 = vmatmul.mubr.f32.gmra.mrb[16].mxu1 %v7932_v39 }
 0x344   :  { %2584 = vmatprep.mubr.f32.mxu0 %v7898_v14  ;;  %5273 = vmatprep.mubr.f32.mxu1 %v7898_v14 }
 0x347   :  { %2586 = vmatmul.mubr.f32.gmra.mrb[18].mxu0 %v7965_v29  ;;  %5275 = vmatmul.mubr.f32.gmra.mrb[18].mxu1 %v7965_v29 }
 0x348   :  { %2591 = vmatprep.mubr.f32.mxu0 %v7924_v24  ;;  %5280 = vmatprep.mubr.f32.mxu1 %v7924_v24 }
 0x34b   :  { %2593 = vmatmul.mubr.f32.gmra.mrb[20].mxu0 %v7992_v2  ;;  %5282 = vmatmul.mubr.f32.gmra.mrb[20].mxu1 %v7992_v2 }
 0x34c   :  { %2598 = vmatprep.mubr.f32.mxu0 %v7951_v41  ;;  %5287 = vmatprep.mubr.f32.mxu1 %v7951_v41 }
 0x34f   :  { %2600 = vmatmul.mubr.f32.gmra.mrb[22].mxu0 %v8023_v43  ;;  %5289 = vmatmul.mubr.f32.gmra.mrb[22].mxu1 %v8023_v43 }
 0x350   :  { %2605 = vmatprep.mubr.f32.mxu0 %v7984_v1  ;;  %5294 = vmatprep.mubr.f32.mxu1 %v7984_v1 }
 0x353   :  { %2607 = vmatmul.mubr.f32.gmra.mrb[24].mxu0 %v10733_v22  ;;  %5296 = vmatmul.mubr.f32.gmra.mrb[24].mxu1 %v10733_v22 }
 0x354   :  { %2612 = vmatprep.mubr.f32.mxu0 %v10734_v52  ;;  %5301 = vmatprep.mubr.f32.mxu1 %v10734_v52 }
 0x357   :  { %2614 = vmatmul.mubr.f32.gmra.mrb[26].mxu0 %v10735_v54  ;;  %5303 = vmatmul.mubr.f32.gmra.mrb[26].mxu1 %v10735_v54 }
 0x358   :  { %2619 = vmatprep.mubr.f32.mxu0 %v10736_v55  ;;  %5308 = vmatprep.mubr.f32.mxu1 %v10736_v55 }
 0x35b   :  { %2621 = vmatmul.mubr.f32.gmra.mrb[28].mxu0 %v10737_v45  ;;  %5310 = vmatmul.mubr.f32.gmra.mrb[28].mxu1 %v10737_v45 }
 0x35c   :  { %2626 = vmatprep.mubr.f32.mxu0 %v10738_v31  ;;  %5315 = vmatprep.mubr.f32.mxu1 %v10738_v31 }
 0x35f   :  { %2628 = vmatmul.mubr.f32.gmra.mrb[30].mxu0 %v10739_v53  ;;  %5317 = vmatmul.mubr.f32.gmra.mrb[30].mxu1 %v10739_v53 }
 0x360   :  { %2633 = vmatprep.mubr.f32.mxu0 %v10740_v26  ;;  %5322 = vmatprep.mubr.f32.mxu1 %v10740_v26 }
 0x363   :  { %2635 = vmatmul.mubr.f32.gmra.mrb[32].mxu0 %v10741_v51  ;;  %5324 = vmatmul.mubr.f32.gmra.mrb[32].mxu1 %v10741_v51 }
 0x364   :  { %2640 = vmatprep.mubr.f32.mxu0 %v10742_v50  ;;  %5329 = vmatprep.mubr.f32.mxu1 %v10742_v50  ;;  %v235_v13 = vpop.permute.xlu0 %234  ;;  %v240_v28 = vpop.permute.xlu1 %239 }
 0x367   :  { %2642 = vmatmul.mubr.f32.gmra.mrb[34].mxu0 %v10743_v18  ;;  %5331 = vmatmul.mubr.f32.gmra.mrb[34].mxu1 %v10743_v18 }
 0x368   :  { %2647 = vmatprep.mubr.f32.mxu0 %v10744_v19  ;;  %5336 = vmatprep.mubr.f32.mxu1 %v10744_v19  ;;  %v245_v35 = vpop.permute.xlu0 %244 }
 0x36b   :  { %2649 = vmatmul.mubr.f32.gmra.mrb[36].mxu0 %v10745_v8  ;;  %5338 = vmatmul.mubr.f32.gmra.mrb[36].mxu1 %v10745_v8 }
 0x36c   :  { %2654 = vmatprep.mubr.f32.mxu0 %v10746_v32  ;;  %5343 = vmatprep.mubr.f32.mxu1 %v10746_v32  ;;  %v250_v44 = vpop.permute.xlu0 %249 }
 0x36f   :  { %2656 = vmatmul.mubr.f32.gmra.mrb[38].mxu0 %v10747_v9  ;;  %5345 = vmatmul.mubr.f32.gmra.mrb[38].mxu1 %v10747_v9 }
 0x370   :  { %2661 = vmatprep.mubr.f32.mxu0 %v10748_v3  ;;  %5350 = vmatprep.mubr.f32.mxu1 %v10748_v3  ;;  %v255_v12 = vpop.permute.xlu0 %254 }
 0x373   :  { %2663 = vmatmul.mubr.f32.gmra.mrb[40].mxu0 %v10749_v40  ;;  %5352 = vmatmul.mubr.f32.gmra.mrb[40].mxu1 %v10749_v40 }
 0x374   :  { %2668 = vmatprep.mubr.f32.mxu0 %v10750_v38  ;;  %5357 = vmatprep.mubr.f32.mxu1 %v10750_v38  ;;  %v260_v18 = vpop.permute.xlu0 %259 }
 0x377   :  { %2670 = vmatmul.mubr.f32.gmra.mrb[42].mxu0 %v10751_v23  ;;  %5359 = vmatmul.mubr.f32.gmra.mrb[42].mxu1 %v10751_v23 }
 0x378   :  { %2675 = vmatprep.mubr.f32.mxu0 %v10752_v46  ;;  %5364 = vmatprep.mubr.f32.mxu1 %v10752_v46 }
 0x37b   :  { %2677 = vmatmul.mubr.f32.gmra.mrb[44].mxu0 %v10753_v63  ;;  %5366 = vmatmul.mubr.f32.gmra.mrb[44].mxu1 %v10753_v63 }
 0x37c   :  { %2682 = vmatprep.mubr.f32.mxu0 %v10754_v33  ;;  %5371 = vmatprep.mubr.f32.mxu1 %v10754_v33 }
 0x37f   :  { %2684 = vmatmul.mubr.f32.gmra.mrb[46].mxu0 %v10755_v17  ;;  %5373 = vmatmul.mubr.f32.gmra.mrb[46].mxu1 %v10755_v17 }
 0x380   :  { %2689 = vmatprep.mubr.f32.mxu0 %v10756_v49  ;;  %5378 = vmatprep.mubr.f32.mxu1 %v10756_v49 }
 0x383   :  { %2691 = vmatmul.mubr.f32.gmra.mrb[48].mxu0 %v10757_v56  ;;  %5380 = vmatmul.mubr.f32.gmra.mrb[48].mxu1 %v10757_v56 }
 0x384   :  { %2696 = vmatprep.mubr.f32.mxu0 %v10758_v5  ;;  %5385 = vmatprep.mubr.f32.mxu1 %v10758_v5  ;;  %v265_v5 = vpop.permute.xlu0 %264 }
 0x387   :  { %2698 = vmatmul.mubr.f32.gmra.mrb[50].mxu0 %v10759_v62  ;;  %5387 = vmatmul.mubr.f32.gmra.mrb[50].mxu1 %v10759_v62 }
 0x388   :  { %2703 = vmatprep.mubr.f32.mxu0 %v10760_v27  ;;  %5392 = vmatprep.mubr.f32.mxu1 %v10760_v27 }
 0x38b   :  { %2705 = vmatmul.mubr.f32.gmra.mrb[52].mxu0 %v10761_v16  ;;  %5394 = vmatmul.mubr.f32.gmra.mrb[52].mxu1 %v10761_v16 }
 0x3f6   :  { %v2524_v58 = vpop.f32.mrb[0].mxu0  ;;  %v5213_v1 = vpop.f32.mrb[0].mxu1 }
 0x3f7   :  { %v6217_v2 = vadd.f32 %v2524_v58, %v235_v13  ;;  %v6244_v47 = vadd.f32 %v5213_v1, %v235_v13  ;;  %v2526_v7 = vpop.f32.mrb[1].mxu0  ;;  %v5215_v37 = vpop.f32.mrb[1].mxu1 }
 0x3f9   :  { %v2737_v34 = vmul.f32 2.125, %v6217_v2  ;;  %v5426_v48 = vmul.f32 2.125, %v6244_v47  ;;  %vm5399_vm3 = vcmp.gt.f32.partialorder %v6244_v47, 0.0  ;;  %vm2710_vm4 = vcmp.gt.f32.partialorder %v6217_v2, 0.0 }
 0x3fa   :  { %v2531_v36 = vpop.f32.mrb[2].mxu0  ;;  %v5220_v20 = vpop.f32.mrb[2].mxu1 }
 0x3fb   :  { %v6218_v0 = vadd.f32 %v2531_v36, %v240_v28  ;;  %v6245_v6 = vadd.f32 %v5220_v20, %v240_v28  ;;  %v2533_v57 = vpop.f32.mrb[3].mxu0  ;;  %v5222_v41 = vpop.f32.mrb[3].mxu1  ;;  %v9191_v14 = vsel %vm5399_vm3, %v6244_v47, %v5426_v48  ;;  %v9193_v10 = vsel %vm2710_vm4, %v6217_v2, %v2737_v34 }
 0x3fc   :  { %v5480_v24 = vsel %vm2791_vm2, %v9191_v14, -inf  ;;  %v2792_v39 = vsel %vm2791_vm2, %v9193_v10, -inf }
 0x3fd   :  { %v2738_v29 = vmul.f32 2.125, %v6218_v0  ;;  %v5427_v43 = vmul.f32 2.125, %v6245_v6  ;;  %5481 = vmax.xlane.f32.xlu1 %v5480_v24  ;;  %2793 = vmax.xlane.f32.xlu0 %v2792_v39  ;;  %vm2711_vm5 = vcmp.gt.f32.partialorder %v6218_v0, 0.0  ;;  %vm5400_vm6 = vcmp.gt.f32.partialorder %v6245_v6, 0.0  ;;  %v270_v24 = vpop.permute.xlu0 %269 }
 0x3fe   :  { %v2538_v22 = vpop.f32.mrb[4].mxu0  ;;  %v5227_v52 = vpop.f32.mrb[4].mxu1 }
 0x3ff   :  { %v6219_v54 = vadd.f32 %v2538_v22, %v245_v35  ;;  %v6246_v55 = vadd.f32 %v5227_v52, %v245_v35  ;;  %v2540_v45 = vpop.f32.mrb[5].mxu0  ;;  %v5229_v31 = vpop.f32.mrb[5].mxu1  ;;  %v9199_v53 = vsel %vm2711_vm5, %v6218_v0, %v2738_v29  ;;  %v9201_v26 = vsel %vm5400_vm6, %v6245_v6, %v5427_v43 }
 0x400   :  { %v2795_v51 = vsel %vm2791_vm2, %v9199_v53, -inf  ;;  %v5483_v50 = vsel %vm2791_vm2, %v9201_v26, -inf }
 0x401   :  { %v2739_v19 = vmul.f32 2.125, %v6219_v54  ;;  %v5428_v8 = vmul.f32 2.125, %v6246_v55  ;;  %2796 = vmax.xlane.f32.xlu1 %v2795_v51  ;;  %5484 = vmax.xlane.f32.xlu0 %v5483_v50  ;;  %vm5401_vm7 = vcmp.gt.f32.partialorder %v6246_v55, 0.0  ;;  %vm2712_vm8 = vcmp.gt.f32.partialorder %v6219_v54, 0.0 }
 0x402   :  { %v2545_v32 = vpop.f32.mrb[6].mxu0  ;;  %v5234_v21 = vpop.f32.mrb[6].mxu1 }
 0x403   :  { %v6220_v9 = vadd.f32 %v2545_v32, %v250_v44  ;;  %v6247_v3 = vadd.f32 %v5234_v21, %v250_v44  ;;  %v2547_v4 = vpop.f32.mrb[7].mxu0  ;;  %v5236_v59 = vpop.f32.mrb[7].mxu1  ;;  %v9207_v40 = vsel %vm5401_vm7, %v6246_v55, %v5428_v8  ;;  %v9209_v38 = vsel %vm2712_vm8, %v6219_v54, %v2739_v19 }
 0x404   :  { %v5486_v30 = vsel %vm2791_vm2, %v9207_v40, -inf  ;;  %v2798_v11 = vsel %vm2791_vm2, %v9209_v38, -inf  ;;  %v275_v19 = vpop.permute.xlu1 %274 }
 0x405   :  { %v2740_v23 = vmul.f32 2.125, %v6220_v9  ;;  %v5429_v46 = vmul.f32 2.125, %v6247_v3  ;;  %5487 = vmax.xlane.f32.xlu1 %v5486_v30  ;;  %2799 = vmax.xlane.f32.xlu0 %v2798_v11  ;;  %vm2713_vm9 = vcmp.gt.f32.partialorder %v6220_v9, 0.0  ;;  %vm5402_vm10 = vcmp.gt.f32.partialorder %v6247_v3, 0.0 }
 0x406   :  { %v2552_v42 = vpop.f32.mrb[8].mxu0  ;;  %v5241_v63 = vpop.f32.mrb[8].mxu1 }
 0x407   :  { %v6221_v33 = vadd.f32 %v2552_v42, %v255_v12  ;;  %v6248_v15 = vadd.f32 %v5241_v63, %v255_v12  ;;  %v2554_v17 = vpop.f32.mrb[9].mxu0  ;;  %v5243_v49 = vpop.f32.mrb[9].mxu1  ;;  %v9215_v60 = vsel %vm2713_vm9, %v6220_v9, %v2740_v23  ;;  %v9219_v27 = vsel %vm5402_vm10, %v6247_v3, %v5429_v46 }
 0x408   :  { %v2801_v56 = vsel %vm2791_vm2, %v9215_v60, -inf  ;;  %v5489_v2 = vsel %vm2791_vm2, %v9219_v27, -inf  ;;  %v280_v63 = vpop.permute.xlu0 %279 }
 0x409   :  { %v2741_v61 = vmul.f32 2.125, %v6221_v33  ;;  %v5430_v62 = vmul.f32 2.125, %v6248_v15  ;;  %2802 = vmax.xlane.f32.xlu0 %v2801_v56  ;;  %vm5403_vm11 = vcmp.gt.f32.partialorder %v6248_v15, 0.0  ;;  %vm2714_vm12 = vcmp.gt.f32.partialorder %v6221_v33, 0.0 }
 0x40a   :  { %v2559_v25 = vpop.f32.mrb[10].mxu0  ;;  %v5248_v16 = vpop.f32.mrb[10].mxu1 }
 0x40b   :  { %v6222_v13 = vadd.f32 %v2559_v25, %v260_v18  ;;  %v6249_v35 = vadd.f32 %v5248_v16, %v260_v18  ;;  %v2561_v44 = vpop.f32.mrb[11].mxu0  ;;  %v5250_v58 = vpop.f32.mrb[11].mxu1  ;;  %v9221_v1 = vsel %vm5403_vm11, %v6248_v15, %v5430_v62  ;;  %v9227_v12 = vsel %vm2714_vm12, %v6221_v33, %v2741_v61 }
 0x40c   :  { %v5492_v47 = vsel %vm2791_vm2, %v9221_v1, -inf  ;;  %v2804_v57 = vsel %vm2791_vm2, %v9227_v12, -inf  ;;  %v285_v44 = vpop.permute.xlu1 %284 }
 0x40d   :  { %v2742_v7 = vmul.f32 2.125, %v6222_v13  ;;  %v5431_v37 = vmul.f32 2.125, %v6249_v35  ;;  %5490 = vmax.xlane.f32.xlu0 %v5489_v2  ;;  %5493 = vmax.xlane.f32.xlu1 %v5492_v47  ;;  %vm2715_vm13 = vcmp.gt.f32.partialorder %v6222_v13, 0.0  ;;  %vm5404_vm14 = vcmp.gt.f32.partialorder %v6249_v35, 0.0 }
 0x40e   :  { %v2566_v28 = vpop.f32.mrb[12].mxu0  ;;  %v5255_v34 = vpop.f32.mrb[12].mxu1 }
 0x40f   :  { %v6223_v48 = vadd.f32 %v2566_v28, %v265_v5  ;;  %v6250_v36 = vadd.f32 %v5255_v34, %v265_v5  ;;  %v2568_v20 = vpop.f32.mrb[13].mxu0  ;;  %v5257_v0 = vpop.f32.mrb[13].mxu1  ;;  %v9229_v6 = vsel %vm2715_vm13, %v6222_v13, %v2742_v7  ;;  %v9235_v43 = vsel %vm5404_vm14, %v6249_v35, %v5431_v37 }
 0x410   :  { %v2807_v41 = vsel %vm2791_vm2, %v9229_v6, -inf  ;;  %v5495_v50 = vsel %vm2791_vm2, %v9235_v43, -inf }
 0x411   :  { %v2743_v39 = vmul.f32 2.125, %v6223_v48  ;;  %v5432_v29 = vmul.f32 2.125, %v6250_v36  ;;  %2805 = vmax.xlane.f32.xlu0 %v2804_v57  ;;  %2808 = vmax.xlane.f32.xlu1 %v2807_v41  ;;  %vm5405_vm15 = vcmp.gt.f32.partialorder %v6250_v36, 0.0  ;;  %vm2716_vm0 = vcmp.gt.f32.partialorder %v6223_v48, 0.0  ;;  %v290_v41 = vpop.permute.xlu0 %289 }
 0x412   :  { %v2573_v22 = vpop.f32.mrb[14].mxu0  ;;  %v5262_v52 = vpop.f32.mrb[14].mxu1 }
 0x413   :  { %v6224_v54 = vadd.f32 %v2573_v22, %v270_v24  ;;  %v6251_v55 = vadd.f32 %v5262_v52, %v270_v24  ;;  %v2575_v45 = vpop.f32.mrb[15].mxu0  ;;  %v5264_v31 = vpop.f32.mrb[15].mxu1  ;;  %v9237_v51 = vsel %vm5405_vm15, %v6250_v36, %v5432_v29  ;;  %v9243_v21 = vsel %vm2716_vm0, %v6223_v48, %v2743_v39 }
 0x414   :  { %v5498_v18 = vsel %vm2791_vm2, %v9237_v51, -inf  ;;  %v2810_v46 = vsel %vm2791_vm2, %v9243_v21, -inf }
 0x415   :  { %v2744_v8 = vmul.f32 2.125, %v6224_v54  ;;  %v5433_v32 = vmul.f32 2.125, %v6251_v55  ;;  %5496 = vmax.xlane.f32.xlu0 %v5495_v50  ;;  %5499 = vmax.xlane.f32.xlu1 %v5498_v18  ;;  %vm2717_vm1 = vcmp.gt.f32.partialorder %v6224_v54, 0.0  ;;  %vm5406_vm3 = vcmp.gt.f32.partialorder %v6251_v55, 0.0 }
 0x416   :  { %v2580_v9 = vpop.f32.mrb[16].mxu0  ;;  %v5269_v3 = vpop.f32.mrb[16].mxu1 }
 0x417   :  { %v6225_v4 = vadd.f32 %v2580_v9, %v275_v19  ;;  %v6252_v59 = vadd.f32 %v5269_v3, %v275_v19  ;;  %v2582_v30 = vpop.f32.mrb[17].mxu0  ;;  %v5271_v11 = vpop.f32.mrb[17].mxu1  ;;  %v9245_v23 = vsel %vm2717_vm1, %v6224_v54, %v2744_v8  ;;  %v9251_v17 = vsel %vm5406_vm3, %v6251_v55, %v5433_v32 }
 0x418   :  { %v2813_v42 = vsel %vm2791_vm2, %v9245_v23, -inf  ;;  %v5501_v13 = vsel %vm2791_vm2, %v9251_v17, -inf  ;;  %v295_v8 = vpop.permute.xlu1 %294 }
 0x419   :  { %v2745_v33 = vmul.f32 2.125, %v6225_v4  ;;  %v5434_v15 = vmul.f32 2.125, %v6252_v59  ;;  %2811 = vmax.xlane.f32.xlu0 %v2810_v46  ;;  %2814 = vmax.xlane.f32.xlu1 %v2813_v42  ;;  %vm5407_vm4 = vcmp.gt.f32.partialorder %v6252_v59, 0.0  ;;  %vm2718_vm5 = vcmp.gt.f32.partialorder %v6225_v4, 0.0 }
 0x41a   :  { %v2587_v49 = vpop.f32.mrb[18].mxu0  ;;  %v5276_v56 = vpop.f32.mrb[18].mxu1 }
 0x41b   :  { %v6226_v5 = vadd.f32 %v2587_v49, %v280_v63  ;;  %v6253_v61 = vadd.f32 %v5276_v56, %v280_v63  ;;  %v2589_v62 = vpop.f32.mrb[19].mxu0  ;;  %v5278_v25 = vpop.f32.mrb[19].mxu1  ;;  %v9253_v16 = vsel %vm5407_vm4, %v6252_v59, %v5434_v15  ;;  %v9259_v47 = vsel %vm2718_vm5, %v6225_v4, %v2745_v33 }
 0x41c   :  { %v5504_v35 = vsel %vm2791_vm2, %v9253_v16, -inf  ;;  %v2816_v0 = vsel %vm2791_vm2, %v9259_v47, -inf  ;;  %v300_v49 = vpop.permute.xlu0 %299 }
 0x41d   :  { %v2746_v58 = vmul.f32 2.125, %v6226_v5  ;;  %v5435_v2 = vmul.f32 2.125, %v6253_v61  ;;  %5502 = vmax.xlane.f32.xlu0 %v5501_v13  ;;  %5505 = vmax.xlane.f32.xlu1 %v5504_v35  ;;  %vm2719_vm6 = vcmp.gt.f32.partialorder %v6226_v5, 0.0  ;;  %vm5408_vm7 = vcmp.gt.f32.partialorder %v6253_v61, 0.0 }
 0x41e   :  { %v2594_v7 = vpop.f32.mrb[20].mxu0  ;;  %v5283_v37 = vpop.f32.mrb[20].mxu1 }
 0x41f   :  { %v6227_v28 = vadd.f32 %v2594_v7, %v285_v44  ;;  %v6254_v34 = vadd.f32 %v5283_v37, %v285_v44  ;;  %v2596_v48 = vpop.f32.mrb[21].mxu0  ;;  %v5285_v36 = vpop.f32.mrb[21].mxu1  ;;  %v9261_v20 = vsel %vm2719_vm6, %v6226_v5, %v2746_v58  ;;  %v9267_v29 = vsel %vm5408_vm7, %v6253_v61, %v5435_v2 }
 0x420   :  { %v2819_v57 = vsel %vm2791_vm2, %v9261_v20, -inf  ;;  %v5507_v18 = vsel %vm2791_vm2, %v9267_v29, -inf }
 0x421   :  { %v2747_v24 = vmul.f32 2.125, %v6227_v28  ;;  %v5436_v39 = vmul.f32 2.125, %v6254_v34  ;;  %2817 = vmax.xlane.f32.xlu0 %v2816_v0  ;;  %2820 = vmax.xlane.f32.xlu1 %v2819_v57  ;;  %vm5409_vm8 = vcmp.gt.f32.partialorder %v6254_v34, 0.0  ;;  %vm2720_vm9 = vcmp.gt.f32.partialorder %v6227_v28, 0.0 }
 0x422   :  { %v2601_v22 = vpop.f32.mrb[22].mxu0  ;;  %v5290_v52 = vpop.f32.mrb[22].mxu1 }
 0x423   :  { %v6228_v54 = vadd.f32 %v2601_v22, %v290_v41  ;;  %v6255_v55 = vadd.f32 %v5290_v52, %v290_v41  ;;  %v2603_v45 = vpop.f32.mrb[23].mxu0  ;;  %v5292_v31 = vpop.f32.mrb[23].mxu1  ;;  %v9269_v50 = vsel %vm5409_vm8, %v6254_v34, %v5436_v39  ;;  %v9275_v3 = vsel %vm2720_vm9, %v6227_v28, %v2747_v24 }
 0x424   :  { %v5510_v19 = vsel %vm2791_vm2, %v9269_v50, -inf  ;;  %v2822_v33 = vsel %vm2791_vm2, %v9275_v3, -inf  ;;  %v305_v28 = vpop.permute.xlu1 %304  ;;  %v310_v45 = vpop.permute.xlu0 %309 }
 0x425   :  { %v2748_v32 = vmul.f32 2.125, %v6228_v54  ;;  %v5437_v9 = vmul.f32 2.125, %v6255_v55  ;;  %5508 = vmax.xlane.f32.xlu0 %v5507_v18  ;;  %5511 = vmax.xlane.f32.xlu1 %v5510_v19  ;;  %vm2721_vm10 = vcmp.gt.f32.partialorder %v6228_v54, 0.0  ;;  %vm5410_vm11 = vcmp.gt.f32.partialorder %v6255_v55, 0.0 }
 0x426   :  { %v2608_v4 = vpop.f32.mrb[24].mxu0  ;;  %v5297_v59 = vpop.f32.mrb[24].mxu1 }
 0x427   :  { %v6229_v30 = vadd.f32 %v2608_v4, %v295_v8  ;;  %v6256_v11 = vadd.f32 %v5297_v59, %v295_v8  ;;  %v2610_v46 = vpop.f32.mrb[25].mxu0  ;;  %v5299_v42 = vpop.f32.mrb[25].mxu1  ;;  %v9277_v63 = vsel %vm2721_vm10, %v6228_v54, %v2748_v32  ;;  %v9283_v61 = vsel %vm5410_vm11, %v6255_v55, %v5437_v9 }
 0x428   :  { %v2825_v15 = vsel %vm2791_vm2, %v9277_v63, -inf  ;;  %v5513_v7 = vsel %vm2791_vm2, %v9283_v61, -inf }
 0x429   :  { %v2749_v56 = vmul.f32 2.125, %v6229_v30  ;;  %v5438_v5 = vmul.f32 2.125, %v6256_v11  ;;  %2823 = vmax.xlane.f32.xlu0 %v2822_v33  ;;  %2826 = vmax.xlane.f32.xlu1 %v2825_v15  ;;  %vm5411_vm12 = vcmp.gt.f32.partialorder %v6256_v11, 0.0  ;;  %vm2722_vm13 = vcmp.gt.f32.partialorder %v6229_v30, 0.0  ;;  %v315_v33 = vpop.permute.xlu1 %314 }
 0x42a   :  { %v2615_v62 = vpop.f32.mrb[26].mxu0  ;;  %v5304_v25 = vpop.f32.mrb[26].mxu1 }
 0x42b   :  { %v6230_v13 = vadd.f32 %v2615_v62, %v300_v49  ;;  %v6257_v35 = vadd.f32 %v5304_v25, %v300_v49  ;;  %v2617_v44 = vpop.f32.mrb[27].mxu0  ;;  %v5306_v58 = vpop.f32.mrb[27].mxu1  ;;  %v9285_v2 = vsel %vm5411_vm12, %v6256_v11, %v5438_v5  ;;  %v9291_v36 = vsel %vm2722_vm13, %v6229_v30, %v2749_v56 }
 0x42c   :  { %v5516_v37 = vsel %vm2791_vm2, %v9285_v2, -inf  ;;  %v2828_v54 = vsel %vm2791_vm2, %v9291_v36, -inf }
 0x42d   :  { %v2750_v34 = vmul.f32 2.125, %v6230_v13  ;;  %v5439_v48 = vmul.f32 2.125, %v6257_v35  ;;  %5514 = vmax.xlane.f32.xlu0 %v5513_v7  ;;  %5517 = vmax.xlane.f32.xlu1 %v5516_v37  ;;  %vm2723_vm14 = vcmp.gt.f32.partialorder %v6230_v13, 0.0  ;;  %vm5412_vm15 = vcmp.gt.f32.partialorder %v6257_v35, 0.0 }
 0x42e   :  { %v2622_v0 = vpop.f32.mrb[28].mxu0  ;;  %v5311_v57 = vpop.f32.mrb[28].mxu1 }
 0x42f   :  { %v6231_v41 = vadd.f32 %v2622_v0, %v305_v28  ;;  %v6258_v24 = vadd.f32 %v5311_v57, %v305_v28  ;;  %v2624_v39 = vpop.f32.mrb[29].mxu0  ;;  %v5313_v22 = vpop.f32.mrb[29].mxu1  ;;  %v9293_v52 = vsel %vm2723_vm14, %v6230_v13, %v2750_v34  ;;  %v9299_v19 = vsel %vm5412_vm15, %v6257_v35, %v5439_v48 }
 0x430   :  { %v2831_v55 = vsel %vm2791_vm2, %v9293_v52, -inf  ;;  %v5519_v46 = vsel %vm2791_vm2, %v9299_v19, -inf  ;;  %v320_v28 = vpop.permute.xlu0 %319 }
 0x431   :  { %v2751_v31 = vmul.f32 2.125, %v6231_v41  ;;  %v5440_v18 = vmul.f32 2.125, %v6258_v24  ;;  %2829 = vmax.xlane.f32.xlu0 %v2828_v54  ;;  %2832 = vmax.xlane.f32.xlu1 %v2831_v55  ;;  %vm5413_vm0 = vcmp.gt.f32.partialorder %v6258_v24, 0.0  ;;  %vm2724_vm1 = vcmp.gt.f32.partialorder %v6231_v41, 0.0 }
 0x432   :  { %v2629_v8 = vpop.f32.mrb[30].mxu0  ;;  %v5318_v32 = vpop.f32.mrb[30].mxu1 }
 0x433   :  { %v6232_v9 = vadd.f32 %v2629_v8, %v310_v45  ;;  %v6259_v4 = vadd.f32 %v5318_v32, %v310_v45  ;;  %v2631_v59 = vpop.f32.mrb[31].mxu0  ;;  %v5320_v30 = vpop.f32.mrb[31].mxu1  ;;  %v9301_v11 = vsel %vm5413_vm0, %v6258_v24, %v5440_v18  ;;  %v9307_v56 = vsel %vm2724_vm1, %v6231_v41, %v2751_v31 }
 0x434   :  { %v5522_v42 = vsel %vm2791_vm2, %v9301_v11, -inf  ;;  %v2834_v7 = vsel %vm2791_vm2, %v9307_v56, -inf  ;;  %v325_v18 = vpop.permute.xlu1 %324 }
 0x435   :  { %v2752_v15 = vmul.f32 2.125, %v6232_v9  ;;  %v5441_v49 = vmul.f32 2.125, %v6259_v4  ;;  %5520 = vmax.xlane.f32.xlu0 %v5519_v46  ;;  %5523 = vmax.xlane.f32.xlu1 %v5522_v42  ;;  %vm2725_vm3 = vcmp.gt.f32.partialorder %v6232_v9, 0.0  ;;  %vm5414_vm4 = vcmp.gt.f32.partialorder %v6259_v4, 0.0 }
 0x436   :  { %v2636_v5 = vpop.f32.mrb[32].mxu0  ;;  %v5325_v62 = vpop.f32.mrb[32].mxu1 }
 0x437   :  { %v6233_v25 = vadd.f32 %v2636_v5, %v315_v33  ;;  %v6260_v13 = vadd.f32 %v5325_v62, %v315_v33  ;;  %v2638_v35 = vpop.f32.mrb[33].mxu0  ;;  %v5327_v44 = vpop.f32.mrb[33].mxu1  ;;  %v9309_v58 = vsel %vm2725_vm3, %v6232_v9, %v2752_v15  ;;  %v9315_v0 = vsel %vm5414_vm4, %v6259_v4, %v5441_v49 }
 0x438   :  { %v2837_v37 = vsel %vm2791_vm2, %v9309_v58, -inf  ;;  %v5525_v45 = vsel %vm2791_vm2, %v9315_v0, -inf  ;;  %v330_v62 = vpop.permute.xlu0 %329 }
 0x439   :  { %v2753_v34 = vmul.f32 2.125, %v6233_v25  ;;  %v5442_v48 = vmul.f32 2.125, %v6260_v13  ;;  %2835 = vmax.xlane.f32.xlu0 %v2834_v7  ;;  %2838 = vmax.xlane.f32.xlu1 %v2837_v37  ;;  %vm5415_vm5 = vcmp.gt.f32.partialorder %v6260_v13, 0.0  ;;  %vm2726_vm6 = vcmp.gt.f32.partialorder %v6233_v25, 0.0 }
 0x43a   :  { %v2643_v57 = vpop.f32.mrb[34].mxu0  ;;  %v5332_v41 = vpop.f32.mrb[34].mxu1 }
 0x43b   :  { %v6234_v24 = vadd.f32 %v2643_v57, %v320_v28  ;;  %v6261_v39 = vadd.f32 %v5332_v41, %v320_v28  ;;  %v2645_v22 = vpop.f32.mrb[35].mxu0  ;;  %v5334_v54 = vpop.f32.mrb[35].mxu1  ;;  %v9317_v55 = vsel %vm5415_vm5, %v6260_v13, %v5442_v48  ;;  %v9323_v9 = vsel %vm2726_vm6, %v6233_v25, %v2753_v34 }
 0x43c   :  { %v5528_v31 = vsel %vm2791_vm2, %v9317_v55, -inf  ;;  %v2840_v49 = vsel %vm2791_vm2, %v9323_v9, -inf  ;;  %v335_v22 = vpop.permute.xlu1 %334 }
 0x43d   :  { %v2754_v8 = vmul.f32 2.125, %v6234_v24  ;;  %v5443_v32 = vmul.f32 2.125, %v6261_v39  ;;  %5526 = vmax.xlane.f32.xlu0 %v5525_v45  ;;  %5529 = vmax.xlane.f32.xlu1 %v5528_v31  ;;  %vm2727_vm7 = vcmp.gt.f32.partialorder %v6234_v24, 0.0  ;;  %vm5416_vm8 = vcmp.gt.f32.partialorder %v6261_v39, 0.0 }
 0x43e   :  { %v2650_v4 = vpop.f32.mrb[36].mxu0  ;;  %v5339_v59 = vpop.f32.mrb[36].mxu1 }
 0x43f   :  { %v6235_v30 = vadd.f32 %v2650_v4, %v325_v18  ;;  %v6262_v46 = vadd.f32 %v5339_v59, %v325_v18  ;;  %v2652_v42 = vpop.f32.mrb[37].mxu0  ;;  %v5341_v33 = vpop.f32.mrb[37].mxu1  ;;  %v9325_v15 = vsel %vm2727_vm7, %v6234_v24, %v2754_v8  ;;  %v9331_v35 = vsel %vm5416_vm8, %v6261_v39, %v5443_v32 }
 0x440   :  { %v2843_v5 = vsel %vm2791_vm2, %v9325_v15, -inf  ;;  %v5531_v41 = vsel %vm2791_vm2, %v9331_v35, -inf }
 0x441   :  { %v2755_v13 = vmul.f32 2.125, %v6235_v30  ;;  %v5444_v25 = vmul.f32 2.125, %v6262_v46  ;;  %2841 = vmax.xlane.f32.xlu0 %v2840_v49  ;;  %2844 = vmax.xlane.f32.xlu1 %v2843_v5  ;;  %vm5417_vm9 = vcmp.gt.f32.partialorder %v6262_v46, 0.0  ;;  %vm2728_vm10 = vcmp.gt.f32.partialorder %v6235_v30, 0.0  ;;  %v340_v49 = vpop.permute.xlu0 %339 }
 0x442   :  { %v2657_v44 = vpop.f32.mrb[38].mxu0  ;;  %v5346_v7 = vpop.f32.mrb[38].mxu1 }
 0x443   :  { %v6236_v37 = vadd.f32 %v2657_v44, %v330_v62  ;;  %v6263_v28 = vadd.f32 %v5346_v7, %v330_v62  ;;  %v2659_v34 = vpop.f32.mrb[39].mxu0  ;;  %v5348_v48 = vpop.f32.mrb[39].mxu1  ;;  %v9333_v57 = vsel %vm5417_vm9, %v6262_v46, %v5444_v25  ;;  %v9339_v45 = vsel %vm2728_vm10, %v6235_v30, %v2755_v13 }
 0x444   :  { %v5534_v24 = vsel %vm2791_vm2, %v9333_v57, -inf  ;;  %v2846_v42 = vsel %vm2791_vm2, %v9339_v45, -inf  ;;  %vm2870_vm10 = vcmask 212992  }
 0x445   :  { %v2756_v54 = vmul.f32 2.125, %v6236_v37  ;;  %v5445_v39 = vmul.f32 2.125, %v6263_v28  ;;  %5532 = vmax.xlane.f32.xlu0 %v5531_v41  ;;  %5535 = vmax.xlane.f32.xlu1 %v5534_v24  ;;  %vm2729_vm11 = vcmp.gt.f32.partialorder %v6236_v37, 0.0  ;;  %vm5418_vm12 = vcmp.gt.f32.partialorder %v6263_v28, 0.0 }
 0x446   :  { %v2664_v31 = vpop.f32.mrb[40].mxu0  ;;  %v5353_v18 = vpop.f32.mrb[40].mxu1 }
 0x447   :  { %v6237_v8 = vadd.f32 %v2664_v31, %v335_v22  ;;  %v6264_v32 = vadd.f32 %v5353_v18, %v335_v22  ;;  %v2666_v4 = vpop.f32.mrb[41].mxu0  ;;  %v5355_v59 = vpop.f32.mrb[41].mxu1  ;;  %v9341_v46 = vsel %vm2729_vm11, %v6236_v37, %v2756_v54  ;;  %v9347_v62 = vsel %vm5418_vm12, %v6263_v28, %v5445_v39 }
 0x448   :  { %v2849_v33 = vsel %vm2791_vm2, %v9341_v46, -inf  ;;  %v5537_v41 = vsel %vm2791_vm2, %v9347_v62, -inf  ;;  %v345_v22 = vpop.permute.xlu1 %344 }
 0x449   :  { %v2757_v5 = vmul.f32 2.125, %v6237_v8  ;;  %v5446_v30 = vmul.f32 2.125, %v6264_v32  ;;  %2847 = vmax.xlane.f32.xlu0 %v2846_v42  ;;  %2850 = vmax.xlane.f32.xlu1 %v2849_v33  ;;  %vm5419_vm13 = vcmp.gt.f32.partialorder %v6264_v32, 0.0  ;;  %vm2730_vm14 = vcmp.gt.f32.partialorder %v6237_v8, 0.0 }
 0x44a   :  { %v2671_v13 = vpop.f32.mrb[42].mxu0  ;;  %v5360_v25 = vpop.f32.mrb[42].mxu1 }
 0x44b   :  { %v6238_v44 = vadd.f32 %v2671_v13, %v340_v49  ;;  %v6265_v7 = vadd.f32 %v5360_v25, %v340_v49  ;;  %v2673_v37 = vpop.f32.mrb[43].mxu0  ;;  %v5362_v34 = vpop.f32.mrb[43].mxu1  ;;  %v9349_v48 = vsel %vm5419_vm13, %v6264_v32, %v5446_v30  ;;  %v9355_v39 = vsel %vm2730_vm14, %v6237_v8, %v2757_v5 }
 0x44c   :  { %v5540_v24 = vsel %vm2791_vm2, %v9349_v48, -inf  ;;  %v2852_v49 = vsel %vm2791_vm2, %v9355_v39, -inf  ;;  %v350_v13 = vpop.permute.xlu0 %349 }
 0x44d   :  { %v2758_v54 = vmul.f32 2.125, %v6238_v44  ;;  %v5447_v28 = vmul.f32 2.125, %v6265_v7  ;;  %5538 = vmax.xlane.f32.xlu0 %v5537_v41  ;;  %5541 = vmax.xlane.f32.xlu1 %v5540_v24  ;;  %vm2731_vm15 = vcmp.gt.f32.partialorder %v6238_v44, 0.0  ;;  %vm5420_vm0 = vcmp.gt.f32.partialorder %v6265_v7, 0.0 }
 0x44e   :  { %v2678_v31 = vpop.f32.mrb[44].mxu0  ;;  %v5367_v18 = vpop.f32.mrb[44].mxu1 }
 0x44f   :  { %v6239_v4 = vadd.f32 %v2678_v31, %v345_v22  ;;  %v6266_v32 = vadd.f32 %v5367_v18, %v345_v22  ;;  %v2680_v59 = vpop.f32.mrb[45].mxu0  ;;  %v5369_v42 = vpop.f32.mrb[45].mxu1  ;;  %v9357_v33 = vsel %vm2731_vm15, %v6238_v44, %v2758_v54  ;;  %v9363_v5 = vsel %vm5420_vm0, %v6265_v7, %v5447_v28 }
 0x450   :  { %v2855_v30 = vsel %vm2791_vm2, %v9357_v33, -inf  ;;  %v5543_v31 = vsel %vm2791_vm2, %v9363_v5, -inf  ;;  %v355_v59 = vpop.permute.xlu1 %354 }
 0x451   :  { %v2759_v25 = vmul.f32 2.125, %v6239_v4  ;;  %v5448_v8 = vmul.f32 2.125, %v6266_v32  ;;  %2853 = vmax.xlane.f32.xlu0 %v2852_v49  ;;  %2856 = vmax.xlane.f32.xlu1 %v2855_v30  ;;  %vm5421_vm1 = vcmp.gt.f32.partialorder %v6266_v32, 0.0  ;;  %vm2732_vm3 = vcmp.gt.f32.partialorder %v6239_v4, 0.0 }
 0x452   :  { %v2685_v37 = vpop.f32.mrb[46].mxu0  ;;  %v5374_v34 = vpop.f32.mrb[46].mxu1 }
 0x453   :  { %v6240_v41 = vadd.f32 %v2685_v37, %v350_v13  ;;  %v6267_v44 = vadd.f32 %v5374_v34, %v350_v13  ;;  %v2687_v24 = vpop.f32.mrb[47].mxu0  ;;  %v5376_v22 = vpop.f32.mrb[47].mxu1  ;;  %v9365_v54 = vsel %vm5421_vm1, %v6266_v32, %v5448_v8  ;;  %v9371_v28 = vsel %vm2732_vm3, %v6239_v4, %v2759_v25 }
 0x454   :  { %v5546_v18 = vsel %vm2791_vm2, %v9365_v54, -inf  ;;  %10762 = vst [vmem:[#allocation13_spill] sm:$0xff] %v9371_v28  ;;  %v2858_v24 = vsel %vm2791_vm2, %v9371_v28, -inf }
 0x455   :  { %v2760_v42 = vmul.f32 2.125, %v6240_v41  ;;  %v5449_v7 = vmul.f32 2.125, %v6267_v44  ;;  %5544 = vmax.xlane.f32.xlu0 %v5543_v31  ;;  %5547 = vmax.xlane.f32.xlu1 %v5546_v18  ;;  %vm2733_vm4 = vcmp.gt.f32.partialorder %v6240_v41, 0.0  ;;  %vm5422_vm5 = vcmp.gt.f32.partialorder %v6267_v44, 0.0  ;;  %v360_v31 = vpop.permute.xlu0 %359 }
 0x456   :  { %v2692_v49 = vpop.f32.mrb[48].mxu0  ;;  %v5381_v30 = vpop.f32.mrb[48].mxu1 }
 0x457   :  { %v6241_v13 = vadd.f32 %v2692_v49, %v355_v59  ;;  %v6268_v32 = vadd.f32 %v5381_v30, %v355_v59  ;;  %v2694_v8 = vpop.f32.mrb[49].mxu0  ;;  %v5383_v37 = vpop.f32.mrb[49].mxu1  ;;  %v9373_v34 = vsel %vm2733_vm4, %v6240_v41, %v2760_v42  ;;  %v9379_v25 = vsel %vm5422_vm5, %v6267_v44, %v5449_v7 }
 0x458   :  { %10763 = vst [vmem:[#allocation14_spill] sm:$0xff] %v9373_v34  ;;  %v2861_v22 = vsel %vm2791_vm2, %v9373_v34, -inf  ;;  %10764 = vst [vmem:[#allocation17_spill] sm:$0xff] %v9379_v25  ;;  %v5549_v28 = vsel %vm2791_vm2, %v9379_v25, -inf }
 0x459   :  { %v2761_v18 = vmul.f32 2.125, %v6241_v13  ;;  %v5450_v4 = vmul.f32 2.125, %v6268_v32  ;;  %2859 = vmax.xlane.f32.xlu0 %v2858_v24  ;;  %2862 = vmax.xlane.f32.xlu1 %v2861_v22  ;;  %vm5423_vm6 = vcmp.gt.f32.partialorder %v6268_v32, 0.0  ;;  %vm2734_vm7 = vcmp.gt.f32.partialorder %v6241_v13, 0.0  ;;  %v365_v24 = vpop.permute.xlu1 %364 }
 0x45a   :  { %v2699_v49 = vpop.f32.mrb[50].mxu0  ;;  %v5388_v59 = vpop.f32.mrb[50].mxu1 }
 0x45b   :  { %v6242_v30 = vadd.f32 %v2699_v49, %v360_v31  ;;  %v6269_v41 = vadd.f32 %v5388_v59, %v360_v31  ;;  %v2701_v42 = vpop.f32.mrb[51].mxu0  ;;  %v5390_v8 = vpop.f32.mrb[51].mxu1  ;;  %v9381_v37 = vsel %vm5423_vm6, %v6268_v32, %v5450_v4  ;;  %v9387_v7 = vsel %vm2734_vm7, %v6241_v13, %v2761_v18 }
 0x45c   :  { %10765 = vst [vmem:[#allocation18_spill] sm:$0xff] %v9381_v37  ;;  %v5552_v34 = vsel %vm2791_vm2, %v9381_v37, -inf  ;;  %v2864_v25 = vsel %vm2791_vm2, %v9387_v7, -inf }
 0x45d   :  { %v2762_v22 = vmul.f32 2.125, %v6242_v30  ;;  %v5451_v44 = vmul.f32 2.125, %v6269_v41  ;;  %5550 = vmax.xlane.f32.xlu0 %v5549_v28  ;;  %5553 = vmax.xlane.f32.xlu1 %v5552_v34  ;;  %vm2735_vm8 = vcmp.gt.f32.partialorder %v6242_v30, 0.0  ;;  %vm5424_vm9 = vcmp.gt.f32.partialorder %v6269_v41, 0.0 }
 0x45e   :  { %v2706_v49 = vpop.f32.mrb[52].mxu0  ;;  %v5395_v31 = vpop.f32.mrb[52].mxu1 }
 0x45f   :  { %v6243_v59 = vadd.f32 %v2706_v49, %v365_v24  ;;  %v6270_v32 = vadd.f32 %v5395_v31, %v365_v24  ;;  %v2708_v4 = vpop.f32.mrb[53].mxu0  ;;  %v5397_v42 = vpop.f32.mrb[53].mxu1  ;;  %v9389_v8 = vsel %vm2735_vm8, %v6242_v30, %v2762_v22  ;;  %v9395_v34 = vsel %vm5424_vm9, %v6269_v41, %v5451_v44 }
 0x460   :  { %v2867_v37 = vsel %vm2791_vm2, %v9389_v8, -inf  ;;  %v5555_v30 = vsel %vm2791_vm2, %v9395_v34, -inf }
 0x461   :  { %v2763_v28 = vmul.f32 2.125, %v6243_v59  ;;  %v5452_v13 = vmul.f32 2.125, %v6270_v32  ;;  %2865 = vmax.xlane.f32.xlu0 %v2864_v25  ;;  %2868 = vmax.xlane.f32.xlu1 %v2867_v37  ;;  %vm5425_vm11 = vcmp.gt.f32.partialorder %v6270_v32, 0.0  ;;  %vm2736_vm12 = vcmp.gt.f32.partialorder %v6243_v59, 0.0 }
 0x463   :  { %v9397_v18 = vsel %vm5425_vm11, %v6270_v32, %v5452_v13  ;;  %v9403_v22 = vsel %vm2736_vm12, %v6243_v59, %v2763_v28 }
 0x464   :  { %v5558_v24 = vsel %vm2870_vm10, %v9397_v18, -inf  ;;  %10766 = vst [vmem:[#allocation21_spill] sm:$0xff] %v9403_v22  ;;  %v2871_v25 = vsel %vm2870_vm10, %v9403_v22, -inf }
 0x465   :  { %5556 = vmax.xlane.f32.xlu0 %v5555_v30  ;;  %5559 = vmax.xlane.f32.xlu1 %v5558_v24 }
 0x469   :  { %2872 = vmax.xlane.f32.xlu0 %v2871_v25 }
 0x48a   :  { %v5482_v41 = vpop.xlane.xlu1 %5481  ;;  %v2794_v37 = vpop.xlane.xlu0 %2793 }
 0x48b   :  { %v5561_v44 = vsub.f32 %v9191_v14, %v5482_v41  ;;  %v2874_v49 = vsub.f32 %v9193_v10, %v2794_v37 }
 0x48d   :  { %v5588_v31 = vmul.f32 1.442695, %v5561_v44  ;;  %v2901_v32 = vmul.f32 1.442695, %v2874_v49 }
 0x48e   :  { %v2797_v4 = vpop.xlane.xlu1 %2796  ;;  %v5485_v42 = vpop.xlane.xlu0 %5484 }
 0x48f   :  { %6817 = vpow2.f32 %v5588_v31  ;;  %v2875_v13 = vsub.f32 %v9199_v53, %v2797_v4  ;;  %v5562_v59 = vsub.f32 %v9201_v26, %v5485_v42 }
 0x490   :  { %6819 = vpow2.f32 %v2901_v32 }
 0x491   :  { %v2903_v28 = vmul.f32 1.442695, %v2875_v13  ;;  %v5590_v30 = vmul.f32 1.442695, %v5562_v59 }
 0x492   :  { %v5488_v24 = vpop.xlane.xlu1 %5487  ;;  %v2800_v25 = vpop.xlane.xlu0 %2799 }
 0x493   :  { %6821 = vpow2.f32 %v2903_v28  ;;  %v5563_v22 = vsub.f32 %v9207_v40, %v5488_v24  ;;  %v2876_v14 = vsub.f32 %v9209_v38, %v2800_v25 }
 0x494   :  { %6823 = vpow2.f32 %v5590_v30 }
 0x495   :  { %v5592_v10 = vmul.f32 1.442695, %v5563_v22  ;;  %v2905_v41 = vmul.f32 1.442695, %v2876_v14 }
 0x496   :  { %v2803_v37 = vpop.xlane.xlu0 %2802 }
 0x497   :  { %6825 = vpow2.f32 %v5592_v10  ;;  %v2877_v44 = vsub.f32 %v9215_v60, %v2803_v37 }
 0x498   :  { %6827 = vpow2.f32 %v2905_v41 }
 0x499   :  { %v9414_v53 = vpop.eup %6817  ;;  %v2907_v26 = vmul.f32 1.442695, %v2877_v44 }
 0x49a   :  { %v9416_v49 = vpop.eup %6819  ;;  %v5494_v31 = vpop.xlane.xlu1 %5493  ;;  %v5642_v40 = vsel %vm2791_vm2, %v9414_v53, 0.0 }
 0x49b   :  { %v5491_v32 = vpop.xlane.xlu0 %5490  ;;  %6829 = vpow2.f32 %v2907_v26  ;;  %v5565_v38 = vsub.f32 %v9221_v1, %v5494_v31  ;;  %5643 = vadd.xlane.f32.xlu1 %v5642_v40  ;;  %v2955_v60 = vsel %vm2791_vm2, %v9416_v49, 0.0 }
 0x49c   :  { %v5564_v22 = vsub.f32 %v9219_v27, %v5491_v32  ;;  %2956 = vadd.xlane.f32.xlu0 %v2955_v60 }
 0x49d   :  { %v9424_v4 = vpop.eup %6821  ;;  %v5596_v42 = vmul.f32 1.442695, %v5565_v38 }
 0x49e   :  { %v5594_v13 = vmul.f32 1.442695, %v5564_v22  ;;  %v9426_v59 = vpop.eup %6823  ;;  %v2809_v28 = vpop.xlane.xlu1 %2808  ;;  %v2958_v24 = vsel %vm2791_vm2, %v9424_v4, 0.0 }
 0x49f   :  { %v2806_v30 = vpop.xlane.xlu0 %2805  ;;  %6831 = vpow2.f32 %v5596_v42  ;;  %v2879_v1 = vsub.f32 %v9229_v6, %v2809_v28  ;;  %2959 = vadd.xlane.f32.xlu1 %v2958_v24  ;;  %v5645_v25 = vsel %vm2791_vm2, %v9426_v59, 0.0 }
 0x4a0   :  { %v2878_v27 = vsub.f32 %v9227_v12, %v2806_v30  ;;  %6833 = vpow2.f32 %v5594_v13  ;;  %5646 = vadd.xlane.f32.xlu0 %v5645_v25 }
 0x4a1   :  { %v9434_v14 = vpop.eup %6825  ;;  %v2911_v10 = vmul.f32 1.442695, %v2879_v1 }
 0x4a2   :  { %v2909_v41 = vmul.f32 1.442695, %v2878_v27  ;;  %v9436_v37 = vpop.eup %6827  ;;  %v5500_v44 = vpop.xlane.xlu1 %5499  ;;  %v5648_v31 = vsel %vm2791_vm2, %v9434_v14, 0.0 }
 0x4a3   :  { %v5497_v26 = vpop.xlane.xlu0 %5496  ;;  %6835 = vpow2.f32 %v2911_v10  ;;  %v5567_v12 = vsub.f32 %v9237_v51, %v5500_v44  ;;  %5649 = vadd.xlane.f32.xlu1 %v5648_v31  ;;  %v2961_v32 = vsel %vm2791_vm2, %v9436_v37, 0.0 }
 0x4a4   :  { %v5566_v6 = vsub.f32 %v9235_v43, %v5497_v26  ;;  %6837 = vpow2.f32 %v2909_v41  ;;  %2962 = vadd.xlane.f32.xlu0 %v2961_v32 }
 0x4a5   :  { %v9444_v40 = vpop.eup %6829  ;;  %v5600_v38 = vmul.f32 1.442695, %v5567_v12 }
 0x4a6   :  { %v5598_v22 = vmul.f32 1.442695, %v5566_v6  ;;  %v2815_v60 = vpop.xlane.xlu1 %2814  ;;  %v2964_v13 = vsel %vm2791_vm2, %v9444_v40, 0.0 }
 0x4a7   :  { %v2812_v42 = vpop.xlane.xlu0 %2811  ;;  %6839 = vpow2.f32 %v5600_v38  ;;  %v2881_v51 = vsub.f32 %v9245_v23, %v2815_v60  ;;  %2965 = vadd.xlane.f32.xlu1 %v2964_v13 }
 0x4a8   :  { %v2880_v43 = vsub.f32 %v9243_v21, %v2812_v42  ;;  %6841 = vpow2.f32 %v5598_v22 }
 0x4a9   :  { %v9450_v28 = vpop.eup %6831  ;;  %v2915_v30 = vmul.f32 1.442695, %v2881_v51 }
 0x4aa   :  { %v2913_v24 = vmul.f32 1.442695, %v2880_v43  ;;  %v9452_v1 = vpop.eup %6833  ;;  %v5506_v27 = vpop.xlane.xlu1 %5505  ;;  %v5654_v10 = vsel %vm2791_vm2, %v9450_v28, 0.0 }
 0x4ab   :  { %v5503_v25 = vpop.xlane.xlu0 %5502  ;;  %6843 = vpow2.f32 %v2915_v30  ;;  %v5569_v41 = vsub.f32 %v9253_v16, %v5506_v27  ;;  %5655 = vadd.xlane.f32.xlu1 %v5654_v10  ;;  %v5651_v21 = vsel %vm2791_vm2, %v9452_v1, 0.0 }
 0x4ac   :  { %v5568_v23 = vsub.f32 %v9251_v17, %v5503_v25  ;;  %6845 = vpow2.f32 %v2913_v24  ;;  %5652 = vadd.xlane.f32.xlu0 %v5651_v21 }
 0x4ad   :  { %v9460_v44 = vpop.eup %6835  ;;  %v5604_v26 = vmul.f32 1.442695, %v5569_v41 }
 0x4ae   :  { %v5602_v31 = vmul.f32 1.442695, %v5568_v23  ;;  %v9462_v12 = vpop.eup %6837  ;;  %v2821_v6 = vpop.xlane.xlu1 %2820  ;;  %v2970_v38 = vsel %vm2791_vm2, %v9460_v44, 0.0 }
 0x4af   :  { %v2818_v32 = vpop.xlane.xlu0 %2817  ;;  %6847 = vpow2.f32 %v5604_v26  ;;  %v2883_v17 = vsub.f32 %v9261_v20, %v2821_v6  ;;  %2971 = vadd.xlane.f32.xlu1 %v2970_v38  ;;  %v2967_v22 = vsel %vm2791_vm2, %v9462_v12, 0.0 }
 0x4b0   :  { %v2882_v16 = vsub.f32 %v9259_v47, %v2818_v32  ;;  %6849 = vpow2.f32 %v5602_v31  ;;  %2968 = vadd.xlane.f32.xlu0 %v2967_v22 }
 0x4b1   :  { %v9470_v60 = vpop.eup %6839  ;;  %v2919_v42 = vmul.f32 1.442695, %v2883_v17 }
 0x4b2   :  { %v2917_v13 = vmul.f32 1.442695, %v2882_v16  ;;  %v9472_v51 = vpop.eup %6841  ;;  %v5512_v43 = vpop.xlane.xlu1 %5511  ;;  %v5660_v24 = vsel %vm2791_vm2, %v9470_v60, 0.0 }
 0x4b3   :  { %v5509_v30 = vpop.xlane.xlu0 %5508  ;;  %6851 = vpow2.f32 %v2919_v42  ;;  %v5571_v47 = vsub.f32 %v9269_v50, %v5512_v43  ;;  %5661 = vadd.xlane.f32.xlu1 %v5660_v24  ;;  %v5657_v27 = vsel %vm2791_vm2, %v9472_v51, 0.0 }
 0x4b4   :  { %v5570_v20 = vsub.f32 %v9267_v29, %v5509_v30  ;;  %6853 = vpow2.f32 %v2917_v13  ;;  %5658 = vadd.xlane.f32.xlu0 %v5657_v27 }
 0x4b5   :  { %v9480_v25 = vpop.eup %6843  ;;  %v5608_v10 = vmul.f32 1.442695, %v5571_v47 }
 0x4b6   :  { %v5606_v41 = vmul.f32 1.442695, %v5570_v20  ;;  %v9482_v23 = vpop.eup %6845  ;;  %v2827_v21 = vpop.xlane.xlu1 %2826  ;;  %v2976_v31 = vsel %vm2791_vm2, %v9480_v25, 0.0 }
 0x4b7   :  { %v2824_v26 = vpop.xlane.xlu0 %2823  ;;  %6855 = vpow2.f32 %v5608_v10  ;;  %v2885_v29 = vsub.f32 %v9277_v63, %v2827_v21  ;;  %2977 = vadd.xlane.f32.xlu1 %v2976_v31  ;;  %v2973_v6 = vsel %vm2791_vm2, %v9482_v23, 0.0 }
 0x4b8   :  { %v2884_v50 = vsub.f32 %v9275_v3, %v2824_v26  ;;  %6857 = vpow2.f32 %v5606_v41  ;;  %2974 = vadd.xlane.f32.xlu0 %v2973_v6 }
 0x4b9   :  { %v9490_v32 = vpop.eup %6847  ;;  %v2923_v38 = vmul.f32 1.442695, %v2885_v29 }
 0x4ba   :  { %v2921_v17 = vmul.f32 1.442695, %v2884_v50  ;;  %v9492_v16 = vpop.eup %6849  ;;  %v5518_v22 = vpop.xlane.xlu1 %5517  ;;  %v5666_v13 = vsel %vm2791_vm2, %v9490_v32, 0.0 }
 0x4bb   :  { %v5515_v42 = vpop.xlane.xlu0 %5514  ;;  %6859 = vpow2.f32 %v2923_v38  ;;  %v5573_v3 = vsub.f32 %v9285_v2, %v5518_v22  ;;  %5667 = vadd.xlane.f32.xlu1 %v5666_v13  ;;  %v5663_v43 = vsel %vm2791_vm2, %v9492_v16, 0.0 }
 0x4bc   :  { %v5572_v63 = vsub.f32 %v9283_v61, %v5515_v42  ;;  %6861 = vpow2.f32 %v2921_v17  ;;  %5664 = vadd.xlane.f32.xlu0 %v5663_v43 }
 0x4bd   :  { %v9500_v30 = vpop.eup %6851  ;;  %v5612_v24 = vmul.f32 1.442695, %v5573_v3 }
 0x4be   :  { %v5610_v47 = vmul.f32 1.442695, %v5572_v63  ;;  %v9502_v20 = vpop.eup %6853  ;;  %v2833_v27 = vpop.xlane.xlu1 %2832  ;;  %v2982_v41 = vsel %vm2791_vm2, %v9500_v30, 0.0 }
 0x4bf   :  { %v2830_v10 = vpop.xlane.xlu0 %2829  ;;  %6863 = vpow2.f32 %v5612_v24  ;;  %v2887_v61 = vsub.f32 %v9293_v52, %v2833_v27  ;;  %2983 = vadd.xlane.f32.xlu1 %v2982_v41  ;;  %v2979_v21 = vsel %vm2791_vm2, %v9502_v20, 0.0 }
 0x4c0   :  { %v2886_v2 = vsub.f32 %v9291_v36, %v2830_v10  ;;  %6865 = vpow2.f32 %v5610_v47  ;;  %2980 = vadd.xlane.f32.xlu0 %v2979_v21 }
 0x4c1   :  { %v9510_v26 = vpop.eup %6855  ;;  %v2927_v31 = vmul.f32 1.442695, %v2887_v61 }
 0x4c2   :  { %v2925_v29 = vmul.f32 1.442695, %v2886_v2  ;;  %v9512_v50 = vpop.eup %6857  ;;  %v5524_v6 = vpop.xlane.xlu1 %5523  ;;  %v5672_v17 = vsel %vm2791_vm2, %v9510_v26, 0.0 }
 0x4c3   :  { %v5521_v38 = vpop.xlane.xlu0 %5520  ;;  %6867 = vpow2.f32 %v2927_v31  ;;  %v5575_v36 = vsub.f32 %v9301_v11, %v5524_v6  ;;  %5673 = vadd.xlane.f32.xlu1 %v5672_v17  ;;  %v5669_v22 = vsel %vm2791_vm2, %v9512_v50, 0.0 }
 0x4c4   :  { %v5574_v52 = vsub.f32 %v9299_v19, %v5521_v38  ;;  %6869 = vpow2.f32 %v2925_v29  ;;  %5670 = vadd.xlane.f32.xlu0 %v5669_v22 }
 0x4c5   :  { %v9520_v42 = vpop.eup %6859  ;;  %v5616_v13 = vmul.f32 1.442695, %v5575_v36 }
 0x4c6   :  { %v5614_v3 = vmul.f32 1.442695, %v5574_v52  ;;  %v9522_v63 = vpop.eup %6861  ;;  %v2839_v43 = vpop.xlane.xlu1 %2838  ;;  %v2988_v47 = vsel %vm2791_vm2, %v9520_v42, 0.0 }
 0x4c7   :  { %v2836_v24 = vpop.xlane.xlu0 %2835  ;;  %6871 = vpow2.f32 %v5616_v13  ;;  %v2889_v19 = vsub.f32 %v9309_v58, %v2839_v43  ;;  %2989 = vadd.xlane.f32.xlu1 %v2988_v47  ;;  %v2985_v27 = vsel %vm2791_vm2, %v9522_v63, 0.0 }
 0x4c8   :  { %v2888_v11 = vsub.f32 %v9307_v56, %v2836_v24  ;;  %6873 = vpow2.f32 %v5614_v3  ;;  %2986 = vadd.xlane.f32.xlu0 %v2985_v27 }
 0x4c9   :  { %v9530_v10 = vpop.eup %6863  ;;  %v2931_v41 = vmul.f32 1.442695, %v2889_v19 }
 0x4ca   :  { %v2929_v61 = vmul.f32 1.442695, %v2888_v11  ;;  %v9532_v2 = vpop.eup %6865  ;;  %v5530_v21 = vpop.xlane.xlu1 %5529  ;;  %v5678_v29 = vsel %vm2791_vm2, %v9530_v10, 0.0 }
 0x4cb   :  { %v5527_v31 = vpop.xlane.xlu0 %5526  ;;  %6875 = vpow2.f32 %v2931_v41  ;;  %v5577_v56 = vsub.f32 %v9317_v55, %v5530_v21  ;;  %5679 = vadd.xlane.f32.xlu1 %v5678_v29  ;;  %v5675_v6 = vsel %vm2791_vm2, %v9532_v2, 0.0 }
 0x4cc   :  { %v5576_v58 = vsub.f32 %v9315_v0, %v5527_v31  ;;  %6877 = vpow2.f32 %v2929_v61  ;;  %5676 = vadd.xlane.f32.xlu0 %v5675_v6 }
 0x4cd   :  { %v9540_v38 = vpop.eup %6867  ;;  %v5620_v17 = vmul.f32 1.442695, %v5577_v56 }
 0x4ce   :  { %v5618_v36 = vmul.f32 1.442695, %v5576_v58  ;;  %v9542_v52 = vpop.eup %6869  ;;  %v2845_v22 = vpop.xlane.xlu1 %2844  ;;  %v2994_v3 = vsel %vm2791_vm2, %v9540_v38, 0.0 }
 0x4cf   :  { %v2842_v13 = vpop.xlane.xlu0 %2841  ;;  %6879 = vpow2.f32 %v5620_v17  ;;  %v2891_v0 = vsub.f32 %v9325_v15, %v2845_v22  ;;  %2995 = vadd.xlane.f32.xlu1 %v2994_v3  ;;  %v2991_v43 = vsel %vm2791_vm2, %v9542_v52, 0.0 }
 0x4d0   :  { %v2890_v55 = vsub.f32 %v9323_v9, %v2842_v13  ;;  %6881 = vpow2.f32 %v5618_v36  ;;  %2992 = vadd.xlane.f32.xlu0 %v2991_v43 }
 0x4d1   :  { %v9550_v24 = vpop.eup %6871  ;;  %v2935_v47 = vmul.f32 1.442695, %v2891_v0 }
 0x4d2   :  { %v2933_v19 = vmul.f32 1.442695, %v2890_v55  ;;  %v9552_v11 = vpop.eup %6873  ;;  %v5536_v27 = vpop.xlane.xlu1 %5535  ;;  %v5684_v61 = vsel %vm2791_vm2, %v9550_v24, 0.0 }
 0x4d3   :  { %v5533_v41 = vpop.xlane.xlu0 %5532  ;;  %6883 = vpow2.f32 %v2935_v47  ;;  %v5579_v9 = vsub.f32 %v9333_v57, %v5536_v27  ;;  %5685 = vadd.xlane.f32.xlu1 %v5684_v61  ;;  %v5681_v21 = vsel %vm2791_vm2, %v9552_v11, 0.0 }
 0x4d4   :  { %v5578_v15 = vsub.f32 %v9331_v35, %v5533_v41  ;;  %6885 = vpow2.f32 %v2933_v19  ;;  %5682 = vadd.xlane.f32.xlu0 %v5681_v21 }
 0x4d5   :  { %v9560_v31 = vpop.eup %6875  ;;  %v5624_v29 = vmul.f32 1.442695, %v5579_v9 }
 0x4d6   :  { %v5622_v56 = vmul.f32 1.442695, %v5578_v15  ;;  %v9562_v58 = vpop.eup %6877  ;;  %v2851_v6 = vpop.xlane.xlu1 %2850  ;;  %v3000_v36 = vsel %vm2791_vm2, %v9560_v31, 0.0 }
 0x4d7   :  { %v2848_v17 = vpop.xlane.xlu0 %2847  ;;  %6887 = vpow2.f32 %v5624_v29  ;;  %v2893_v35 = vsub.f32 %v9341_v46, %v2851_v6  ;;  %3001 = vadd.xlane.f32.xlu1 %v3000_v36  ;;  %v2997_v22 = vsel %vm2791_vm2, %v9562_v58, 0.0 }
 0x4d8   :  { %v2892_v57 = vsub.f32 %v9339_v45, %v2848_v17  ;;  %6889 = vpow2.f32 %v5622_v56  ;;  %2998 = vadd.xlane.f32.xlu0 %v2997_v22 }
 0x4d9   :  { %v9570_v13 = vpop.eup %6879  ;;  %v2939_v3 = vmul.f32 1.442695, %v2893_v35 }
 0x4da   :  { %v2937_v0 = vmul.f32 1.442695, %v2892_v57  ;;  %v9572_v55 = vpop.eup %6881  ;;  %v5542_v43 = vpop.xlane.xlu1 %5541  ;;  %v5690_v19 = vsel %vm2791_vm2, %v9570_v13, 0.0 }
 0x4db   :  { %v5539_v47 = vpop.xlane.xlu0 %5538  ;;  %6891 = vpow2.f32 %v2939_v3  ;;  %v5581_v45 = vsub.f32 %v9349_v48, %v5542_v43  ;;  %5691 = vadd.xlane.f32.xlu1 %v5690_v19  ;;  %v5687_v27 = vsel %vm2791_vm2, %v9572_v55, 0.0 }
 0x4dc   :  { %v5580_v46 = vsub.f32 %v9347_v62, %v5539_v47  ;;  %6893 = vpow2.f32 %v2937_v0  ;;  %5688 = vadd.xlane.f32.xlu0 %v5687_v27 }
 0x4dd   :  { %v9580_v41 = vpop.eup %6883  ;;  %v5628_v61 = vmul.f32 1.442695, %v5581_v45 }
 0x4de   :  { %v5626_v9 = vmul.f32 1.442695, %v5580_v46  ;;  %v9582_v15 = vpop.eup %6885  ;;  %v2857_v21 = vpop.xlane.xlu1 %2856  ;;  %v3006_v56 = vsel %vm2791_vm2, %v9580_v41, 0.0 }
 0x4df   :  { %v2854_v29 = vpop.xlane.xlu0 %2853  ;;  %6895 = vpow2.f32 %v5628_v61  ;;  %v2895_v62 = vsub.f32 %v9357_v33, %v2857_v21  ;;  %3007 = vadd.xlane.f32.xlu1 %v3006_v56  ;;  %v3003_v6 = vsel %vm2791_vm2, %v9582_v15, 0.0  ;;  %v10768_v21 = vld [vmem:[#allocation13_spill] sm:$0xff] }
 0x4e0   :  { %v2894_v48 = vsub.f32 %v9355_v39, %v2854_v29  ;;  %6897 = vpow2.f32 %v5626_v9  ;;  %3004 = vadd.xlane.f32.xlu0 %v3003_v6 }
 0x4e1   :  { %v9590_v17 = vpop.eup %6887  ;;  %v2943_v36 = vmul.f32 1.442695, %v2895_v62 }
 0x4e2   :  { %v2941_v35 = vmul.f32 1.442695, %v2894_v48  ;;  %v9592_v57 = vpop.eup %6889  ;;  %v5548_v22 = vpop.xlane.xlu1 %5547  ;;  %v5696_v0 = vsel %vm2791_vm2, %v9590_v17, 0.0 }
 0x4e3   :  { %v5545_v3 = vpop.xlane.xlu0 %5544  ;;  %6899 = vpow2.f32 %v2943_v36  ;;  %v5583_v39 = vsub.f32 %v9365_v54, %v5548_v22  ;;  %5697 = vadd.xlane.f32.xlu1 %v5696_v0  ;;  %v5693_v43 = vsel %vm2791_vm2, %v9592_v57, 0.0  ;;  %v10767_v54 = vld [vmem:[#allocation14_spill] sm:$0xff] }
 0x4e4   :  { %v5582_v33 = vsub.f32 %v9363_v5, %v5545_v3  ;;  %6901 = vpow2.f32 %v2941_v35  ;;  %5694 = vadd.xlane.f32.xlu0 %v5693_v43  ;;  %v10769_v0 = vld [vmem:[#allocation18_spill] sm:$0xff] }
 0x4e5   :  { %v9600_v47 = vpop.eup %6891  ;;  %v5632_v19 = vmul.f32 1.442695, %v5583_v39 }
 0x4e6   :  { %v5630_v45 = vmul.f32 1.442695, %v5582_v33  ;;  %v9602_v46 = vpop.eup %6893  ;;  %v2863_v27 = vpop.xlane.xlu1 %2862  ;;  %v3012_v9 = vsel %vm2791_vm2, %v9600_v47, 0.0  ;;  %v10770_v33 = vld [vmem:[#allocation17_spill] sm:$0xff] }
 0x4e7   :  { %v2860_v61 = vpop.xlane.xlu0 %2859  ;;  %6903 = vpow2.f32 %v5632_v19  ;;  %v2897_v5 = vsub.f32 %v10767_v54, %v2863_v27  ;;  %3013 = vadd.xlane.f32.xlu1 %v3012_v9  ;;  %v3009_v56 = vsel %vm2791_vm2, %v9602_v46, 0.0 }
 0x4e8   :  { %v2896_v29 = vsub.f32 %v10768_v21, %v2860_v61  ;;  %6905 = vpow2.f32 %v5630_v45  ;;  %3010 = vadd.xlane.f32.xlu0 %v3009_v56 }
 0x4e9   :  { %v9610_v62 = vpop.eup %6895  ;;  %v2947_v48 = vmul.f32 1.442695, %v2897_v5 }
 0x4ea   :  { %v2945_v6 = vmul.f32 1.442695, %v2896_v29  ;;  %v9612_v36 = vpop.eup %6897  ;;  %v5554_v35 = vpop.xlane.xlu1 %5553  ;;  %v5702_v3 = vsel %vm2791_vm2, %v9610_v62, 0.0 }
 0x4eb   :  { %v5551_v22 = vpop.xlane.xlu0 %5550  ;;  %6907 = vpow2.f32 %v2947_v48  ;;  %v5585_v39 = vsub.f32 %v10769_v0, %v5554_v35  ;;  %5703 = vadd.xlane.f32.xlu1 %v5702_v3  ;;  %v5699_v19 = vsel %vm2791_vm2, %v9612_v36, 0.0 }
 0x4ec   :  { %v5584_v43 = vsub.f32 %v10770_v33, %v5551_v22  ;;  %6909 = vpow2.f32 %v2945_v6  ;;  %5700 = vadd.xlane.f32.xlu0 %v5699_v19 }
 0x4ed   :  { %v9620_v45 = vpop.eup %6899  ;;  %v5636_v27 = vmul.f32 1.442695, %v5585_v39 }
 0x4ee   :  { %v5634_v61 = vmul.f32 1.442695, %v5584_v43  ;;  %v9622_v9 = vpop.eup %6901  ;;  %v2869_v54 = vpop.xlane.xlu1 %2868  ;;  %v3018_v21 = vsel %vm2791_vm2, %v9620_v45, 0.0 }
 0x4ef   :  { %v2866_v5 = vpop.xlane.xlu0 %2865  ;;  %6911 = vpow2.f32 %v5636_v27  ;;  %v2899_v29 = vsub.f32 %v9389_v8, %v2869_v54  ;;  %3019 = vadd.xlane.f32.xlu1 %v3018_v21  ;;  %v3015_v48 = vsel %vm2791_vm2, %v9622_v9, 0.0  ;;  %v10771_v21 = vld [vmem:[#allocation21_spill] sm:$0xff] }
 0x4f0   :  { %v2898_v56 = vsub.f32 %v9387_v7, %v2866_v5  ;;  %6913 = vpow2.f32 %v5634_v61  ;;  %3016 = vadd.xlane.f32.xlu0 %v3015_v48 }
 0x4f1   :  { %v9630_v6 = vpop.eup %6903  ;;  %v2951_v35 = vmul.f32 1.442695, %v2899_v29 }
 0x4f2   :  { %v2949_v22 = vmul.f32 1.442695, %v2898_v56  ;;  %v9632_v3 = vpop.eup %6905  ;;  %v5560_v0 = vpop.xlane.xlu1 %5559  ;;  %v5708_v33 = vsel %vm2791_vm2, %v9630_v6, 0.0 }
 0x4f3   :  { %v5557_v39 = vpop.xlane.xlu0 %5556  ;;  %6915 = vpow2.f32 %v2951_v35  ;;  %v5587_v7 = vsub.f32 %v9397_v18, %v5560_v0  ;;  %5709 = vadd.xlane.f32.xlu1 %v5708_v33  ;;  %v5705_v8 = vsel %vm2791_vm2, %v9632_v3, 0.0 }
 0x4f4   :  { %6917 = vpow2.f32 %v2949_v22  ;;  %5706 = vadd.xlane.f32.xlu0 %v5705_v8  ;;  %v5586_v27 = vsub.f32 %v9395_v34, %v5557_v39 }
 0x4f5   :  { %v9639_v43 = vpop.eup %6907  ;;  %v5640_v19 = vmul.f32 1.442695, %v5587_v7 }
 0x4f6   :  { %v9642_v61 = vpop.eup %6909  ;;  %v3024_v5 = vsel %vm2791_vm2, %v9639_v43, 0.0  ;;  %v5638_v48 = vmul.f32 1.442695, %v5586_v27 }
 0x4f7   :  { %v2873_v54 = vpop.xlane.xlu0 %2872  ;;  %6919 = vpow2.f32 %v5640_v19  ;;  %3025 = vadd.xlane.f32.xlu1 %v3024_v5  ;;  %v3021_v29 = vsel %vm2791_vm2, %v9642_v61, 0.0 }
 0x4f8   :  { %v2900_v18 = vsub.f32 %v10771_v21, %v2873_v54  ;;  %3022 = vadd.xlane.f32.xlu0 %v3021_v29 }
 0x4f9   :  { %v9649_v56 = vpop.eup %6911 }
 0x4fa   :  { %v2953_v35 = vmul.f32 1.442695, %v2900_v18  ;;  %v9651_v22 = vpop.eup %6913  ;;  %v5714_v34 = vsel %vm2791_vm2, %v9649_v56, 0.0 }
 0x4fb   :  { %5715 = vadd.xlane.f32.xlu1 %v5714_v34  ;;  %v5711_v0 = vsel %vm2791_vm2, %v9651_v22, 0.0 }
 0x4fc   :  { %6921 = vpow2.f32 %v2953_v35  ;;  %5712 = vadd.xlane.f32.xlu0 %v5711_v0 }
 0x4fd   :  { %v9657_v39 = vpop.eup %6915  ;;  %6923 = vpow2.f32 %v5638_v48 }
 0x4fe   :  { %v9659_v33 = vpop.eup %6917  ;;  %v3030_v7 = vsel %vm2791_vm2, %v9657_v39, 0.0 }
 0x4ff   :  { %3031 = vadd.xlane.f32.xlu1 %v3030_v7  ;;  %v3027_v8 = vsel %vm2791_vm2, %v9659_v33, 0.0 }
 0x500   :  { %3028 = vadd.xlane.f32.xlu0 %v3027_v8 }
 0x501   :  { %v9665_v19 = vpop.eup %6919 }
 0x502   :  { %v5720_v27 = vsel %vm2870_vm10, %v9665_v19, 0.0 }
 0x503   :  { %5721 = vadd.xlane.f32.xlu1 %v5720_v27 }
 0x506   :  { %v9669_v54 = vpop.eup %6921 }
 0x507   :  { %10772 = vst [vmem:[#allocation22_spill] sm:$0xff] %v9669_v54  ;;  %v3033_v5 = vsel %vm2870_vm10, %v9669_v54, 0.0  ;;  %v9673_v21 = vpop.eup %6923 }
 0x508   :  { %10773 = vst [vmem:[#allocation25_spill] sm:$0xff] %v9673_v21  ;;  %3034 = vadd.xlane.f32.xlu0 %v3033_v5  ;;  %v5717_v18 = vsel %vm2791_vm2, %v9673_v21, 0.0 }
 0x50c   :  { %5718 = vadd.xlane.f32.xlu0 %v5717_v18 }
 0x528   :  { %v5644_v29 = vpop.xlane.xlu1 %5643 }
 0x529   :  { %6925 = vrcp.f32 %v5644_v29  ;;  %v2957_v48 = vpop.xlane.xlu0 %2956 }
 0x52a   :  { %6927 = vrcp.f32 %v2957_v48 }
 0x52c   :  { %v2960_v35 = vpop.xlane.xlu1 %2959 }
 0x52d   :  { %6929 = vrcp.f32 %v2960_v35  ;;  %v5647_v34 = vpop.xlane.xlu0 %5646 }
 0x52e   :  { %6931 = vrcp.f32 %v5647_v34 }
 0x530   :  { %v5650_v0 = vpop.xlane.xlu1 %5649 }
 0x531   :  { %6933 = vrcp.f32 %v5650_v0  ;;  %v2963_v7 = vpop.xlane.xlu0 %2962 }
 0x532   :  { %6935 = vrcp.f32 %v2963_v7 }
 0x533   :  { %v6926_v8 = vpop.eup %6925 }
 0x534   :  { %v6928_v27 = vpop.eup %6927  ;;  %v5724_v5 = vmul.f32 %v6926_v8, %v9414_v53  ;;  %v2966_v54 = vpop.xlane.xlu1 %2965 }
 0x535   :  { %v3037_v21 = vmul.f32 %v6928_v27, %v9416_v49  ;;  %6937 = vrcp.f32 %v2966_v54 }
 0x536   :  { %5830 = vst.msk [vmem:[%s9950_s3 + $0xd8] sm:$0xff] %vm2791_vm2, %v5724_v5 }
 0x537   :  { %v6930_v18 = vpop.eup %6929  ;;  %3090 = vst.msk [vmem:[%s9950_s3] sm:$0xff] %vm2791_vm2, %v3037_v21 }
 0x538   :  { %v6932_v29 = vpop.eup %6931  ;;  %v3039_v48 = vmul.f32 %v6930_v18, %v9424_v4  ;;  %v5656_v35 = vpop.xlane.xlu1 %5655 }
 0x539   :  { %v5726_v53 = vmul.f32 %v6932_v29, %v9426_v59  ;;  %6939 = vrcp.f32 %v5656_v35  ;;  %v5653_v49 = vpop.xlane.xlu0 %5652 }
 0x53a   :  { %3091 = vst.msk [vmem:[%s9950_s3 + $0x8] sm:$0xff] %vm2791_vm2, %v3039_v48  ;;  %6941 = vrcp.f32 %v5653_v49 }
 0x53b   :  { %v6934_v54 = vpop.eup %6933  ;;  %5831 = vst.msk [vmem:[%s9950_s3 + $0xe0] sm:$0xff] %vm2791_vm2, %v5726_v53 }
 0x53c   :  { %v6936_v21 = vpop.eup %6935  ;;  %v5728_v4 = vmul.f32 %v6934_v54, %v9434_v14  ;;  %v2972_v34 = vpop.xlane.xlu1 %2971 }
 0x53d   :  { %v3041_v59 = vmul.f32 %v6936_v21, %v9436_v37  ;;  %6943 = vrcp.f32 %v2972_v34  ;;  %v2969_v0 = vpop.xlane.xlu0 %2968 }
 0x53e   :  { %5832 = vst.msk [vmem:[%s9950_s3 + $0xe8] sm:$0xff] %vm2791_vm2, %v5728_v4  ;;  %6945 = vrcp.f32 %v2969_v0 }
 0x53f   :  { %v6938_v7 = vpop.eup %6937  ;;  %3092 = vst.msk [vmem:[%s9950_s3 + $0x10] sm:$0xff] %vm2791_vm2, %v3041_v59 }
 0x540   :  { %v3043_v8 = vmul.f32 %v6938_v7, %v9444_v40  ;;  %v5662_v14 = vpop.xlane.xlu1 %5661 }
 0x541   :  { %6947 = vrcp.f32 %v5662_v14  ;;  %v5659_v27 = vpop.xlane.xlu0 %5658 }
 0x542   :  { %3093 = vst.msk [vmem:[%s9950_s3 + $0x18] sm:$0xff] %vm2791_vm2, %v3043_v8  ;;  %6949 = vrcp.f32 %v5659_v27 }
 0x543   :  { %v6940_v37 = vpop.eup %6939 }
 0x544   :  { %v6942_v5 = vpop.eup %6941  ;;  %v5732_v18 = vmul.f32 %v6940_v37, %v9450_v28  ;;  %v2978_v29 = vpop.xlane.xlu1 %2977 }
 0x545   :  { %v5730_v48 = vmul.f32 %v6942_v5, %v9452_v1  ;;  %6951 = vrcp.f32 %v2978_v29  ;;  %v2975_v35 = vpop.xlane.xlu0 %2974 }
 0x546   :  { %5834 = vst.msk [vmem:[%s9950_s3 + $0xf8] sm:$0xff] %vm2791_vm2, %v5732_v18  ;;  %6953 = vrcp.f32 %v2975_v35 }
 0x547   :  { %v6944_v40 = vpop.eup %6943  ;;  %5833 = vst.msk [vmem:[%s9950_s3 + $0xf0] sm:$0xff] %vm2791_vm2, %v5730_v48 }
 0x548   :  { %v6946_v53 = vpop.eup %6945  ;;  %v3047_v28 = vmul.f32 %v6944_v40, %v9460_v44  ;;  %v5668_v49 = vpop.xlane.xlu1 %5667 }
 0x549   :  { %v3045_v1 = vmul.f32 %v6946_v53, %v9462_v12  ;;  %6955 = vrcp.f32 %v5668_v49  ;;  %v5665_v54 = vpop.xlane.xlu0 %5664 }
 0x54a   :  { %3095 = vst.msk [vmem:[%s9950_s3 + $0x28] sm:$0xff] %vm2791_vm2, %v3047_v28  ;;  %6957 = vrcp.f32 %v5665_v54 }
 0x54b   :  { %v6948_v21 = vpop.eup %6947  ;;  %3094 = vst.msk [vmem:[%s9950_s3 + $0x20] sm:$0xff] %vm2791_vm2, %v3045_v1 }
 0x54c   :  { %v6950_v4 = vpop.eup %6949  ;;  %v5736_v44 = vmul.f32 %v6948_v21, %v9470_v60  ;;  %v2984_v34 = vpop.xlane.xlu1 %2983 }
 0x54d   :  { %v5734_v12 = vmul.f32 %v6950_v4, %v9472_v51  ;;  %6959 = vrcp.f32 %v2984_v34  ;;  %v2981_v59 = vpop.xlane.xlu0 %2980 }
 0x54e   :  { %5836 = vst.msk [vmem:[%s9950_s3 + $0x108] sm:$0xff] %vm2791_vm2, %v5736_v44  ;;  %6961 = vrcp.f32 %v2981_v59 }
 0x54f   :  { %v6952_v0 = vpop.eup %6951  ;;  %5835 = vst.msk [vmem:[%s9950_s3 + $0x100] sm:$0xff] %vm2791_vm2, %v5734_v12 }
 0x550   :  { %v6954_v7 = vpop.eup %6953  ;;  %v3051_v60 = vmul.f32 %v6952_v0, %v9480_v25  ;;  %v5674_v8 = vpop.xlane.xlu1 %5673 }
 0x551   :  { %v3049_v51 = vmul.f32 %v6954_v7, %v9482_v23  ;;  %6963 = vrcp.f32 %v5674_v8  ;;  %v5671_v14 = vpop.xlane.xlu0 %5670 }
 0x552   :  { %3097 = vst.msk [vmem:[%s9950_s3 + $0x38] sm:$0xff] %vm2791_vm2, %v3051_v60  ;;  %6965 = vrcp.f32 %v5671_v14 }
 0x553   :  { %v6956_v27 = vpop.eup %6955  ;;  %3096 = vst.msk [vmem:[%s9950_s3 + $0x30] sm:$0xff] %vm2791_vm2, %v3049_v51 }
 0x554   :  { %v6958_v37 = vpop.eup %6957  ;;  %v5740_v25 = vmul.f32 %v6956_v27, %v9490_v32  ;;  %v2990_v5 = vpop.xlane.xlu1 %2989 }
 0x555   :  { %v5738_v23 = vmul.f32 %v6958_v37, %v9492_v16  ;;  %6967 = vrcp.f32 %v2990_v5  ;;  %v2987_v18 = vpop.xlane.xlu0 %2986 }
 0x556   :  { %5838 = vst.msk [vmem:[%s9950_s3 + $0x118] sm:$0xff] %vm2791_vm2, %v5740_v25  ;;  %6969 = vrcp.f32 %v2987_v18 }
 0x557   :  { %v6960_v29 = vpop.eup %6959  ;;  %5837 = vst.msk [vmem:[%s9950_s3 + $0x110] sm:$0xff] %vm2791_vm2, %v5738_v23 }
 0x558   :  { %v6962_v48 = vpop.eup %6961  ;;  %v3055_v32 = vmul.f32 %v6960_v29, %v9500_v30  ;;  %v5680_v35 = vpop.xlane.xlu1 %5679 }
 0x559   :  { %v3053_v16 = vmul.f32 %v6962_v48, %v9502_v20  ;;  %6971 = vrcp.f32 %v5680_v35  ;;  %v5677_v40 = vpop.xlane.xlu0 %5676 }
 0x55a   :  { %3099 = vst.msk [vmem:[%s9950_s3 + $0x48] sm:$0xff] %vm2791_vm2, %v3055_v32  ;;  %6973 = vrcp.f32 %v5677_v40 }
 0x55b   :  { %v6964_v53 = vpop.eup %6963  ;;  %3098 = vst.msk [vmem:[%s9950_s3 + $0x40] sm:$0xff] %vm2791_vm2, %v3053_v16 }
 0x55c   :  { %v6966_v28 = vpop.eup %6965  ;;  %v5744_v30 = vmul.f32 %v6964_v53, %v9510_v26  ;;  %v2996_v49 = vpop.xlane.xlu1 %2995 }
 0x55d   :  { %v5742_v20 = vmul.f32 %v6966_v28, %v9512_v50  ;;  %6975 = vrcp.f32 %v2996_v49  ;;  %v2993_v1 = vpop.xlane.xlu0 %2992 }
 0x55e   :  { %5840 = vst.msk [vmem:[%s9950_s3 + $0x128] sm:$0xff] %vm2791_vm2, %v5744_v30  ;;  %6977 = vrcp.f32 %v2993_v1 }
 0x55f   :  { %v6968_v54 = vpop.eup %6967  ;;  %5839 = vst.msk [vmem:[%s9950_s3 + $0x120] sm:$0xff] %vm2791_vm2, %v5742_v20 }
 0x560   :  { %v6970_v21 = vpop.eup %6969  ;;  %v3059_v26 = vmul.f32 %v6968_v54, %v9520_v42  ;;  %v5686_v4 = vpop.xlane.xlu1 %5685 }
 0x561   :  { %v3057_v50 = vmul.f32 %v6970_v21, %v9522_v63  ;;  %6979 = vrcp.f32 %v5686_v4  ;;  %v5683_v44 = vpop.xlane.xlu0 %5682 }
 0x562   :  { %3101 = vst.msk [vmem:[%s9950_s3 + $0x58] sm:$0xff] %vm2791_vm2, %v3059_v26  ;;  %6981 = vrcp.f32 %v5683_v44 }
 0x563   :  { %v6972_v34 = vpop.eup %6971  ;;  %3100 = vst.msk [vmem:[%s9950_s3 + $0x50] sm:$0xff] %vm2791_vm2, %v3057_v50 }
 0x564   :  { %v6974_v12 = vpop.eup %6973  ;;  %v5748_v42 = vmul.f32 %v6972_v34, %v9530_v10  ;;  %v3002_v59 = vpop.xlane.xlu1 %3001 }
 0x565   :  { %v5746_v63 = vmul.f32 %v6974_v12, %v9532_v2  ;;  %6983 = vrcp.f32 %v3002_v59  ;;  %v2999_v0 = vpop.xlane.xlu0 %2998 }
 0x566   :  { %5842 = vst.msk [vmem:[%s9950_s3 + $0x138] sm:$0xff] %vm2791_vm2, %v5748_v42  ;;  %6985 = vrcp.f32 %v2999_v0 }
 0x567   :  { %v6976_v7 = vpop.eup %6975  ;;  %5841 = vst.msk [vmem:[%s9950_s3 + $0x130] sm:$0xff] %vm2791_vm2, %v5746_v63 }
 0x568   :  { %v6978_v60 = vpop.eup %6977  ;;  %v3063_v10 = vmul.f32 %v6976_v7, %v9540_v38  ;;  %v5692_v8 = vpop.xlane.xlu1 %5691 }
 0x569   :  { %v3061_v2 = vmul.f32 %v6978_v60, %v9542_v52  ;;  %6987 = vrcp.f32 %v5692_v8  ;;  %v5689_v51 = vpop.xlane.xlu0 %5688 }
 0x56a   :  { %3103 = vst.msk [vmem:[%s9950_s3 + $0x68] sm:$0xff] %vm2791_vm2, %v3063_v10  ;;  %6989 = vrcp.f32 %v5689_v51 }
 0x56b   :  { %v6980_v14 = vpop.eup %6979  ;;  %3102 = vst.msk [vmem:[%s9950_s3 + $0x60] sm:$0xff] %vm2791_vm2, %v3061_v2 }
 0x56c   :  { %v6982_v27 = vpop.eup %6981  ;;  %v5752_v38 = vmul.f32 %v6980_v14, %v9550_v24  ;;  %v3008_v37 = vpop.xlane.xlu1 %3007 }
 0x56d   :  { %v5750_v52 = vmul.f32 %v6982_v27, %v9552_v11  ;;  %6991 = vrcp.f32 %v3008_v37  ;;  %v3005_v25 = vpop.xlane.xlu0 %3004 }
 0x56e   :  { %5844 = vst.msk [vmem:[%s9950_s3 + $0x148] sm:$0xff] %vm2791_vm2, %v5752_v38  ;;  %6993 = vrcp.f32 %v3005_v25 }
 0x56f   :  { %v6984_v5 = vpop.eup %6983  ;;  %5843 = vst.msk [vmem:[%s9950_s3 + $0x140] sm:$0xff] %vm2791_vm2, %v5750_v52 }
 0x570   :  { %v6986_v23 = vpop.eup %6985  ;;  %v3067_v24 = vmul.f32 %v6984_v5, %v9560_v31  ;;  %v5698_v18 = vpop.xlane.xlu1 %5697 }
 0x571   :  { %v3065_v11 = vmul.f32 %v6986_v23, %v9562_v58  ;;  %6995 = vrcp.f32 %v5698_v18  ;;  %v5695_v29 = vpop.xlane.xlu0 %5694 }
 0x572   :  { %3105 = vst.msk [vmem:[%s9950_s3 + $0x78] sm:$0xff] %vm2791_vm2, %v3067_v24  ;;  %6997 = vrcp.f32 %v5695_v29 }
 0x573   :  { %v6988_v48 = vpop.eup %6987  ;;  %3104 = vst.msk [vmem:[%s9950_s3 + $0x70] sm:$0xff] %vm2791_vm2, %v3065_v11 }
 0x574   :  { %v6990_v32 = vpop.eup %6989  ;;  %v5756_v31 = vmul.f32 %v6988_v48, %v9570_v13  ;;  %v3014_v35 = vpop.xlane.xlu1 %3013  ;;  %v10775_v48 = vld [vmem:[#allocation25_spill] sm:$0xff] }
 0x575   :  { %v5754_v58 = vmul.f32 %v6990_v32, %v9572_v55  ;;  %6999 = vrcp.f32 %v3014_v35  ;;  %v3011_v16 = vpop.xlane.xlu0 %3010 }
 0x576   :  { %5846 = vst.msk [vmem:[%s9950_s3 + $0x158] sm:$0xff] %vm2791_vm2, %v5756_v31  ;;  %7001 = vrcp.f32 %v3011_v16 }
 0x577   :  { %v6992_v40 = vpop.eup %6991  ;;  %5845 = vst.msk [vmem:[%s9950_s3 + $0x150] sm:$0xff] %vm2791_vm2, %v5754_v58 }
 0x578   :  { %v6994_v53 = vpop.eup %6993  ;;  %v3071_v13 = vmul.f32 %v6992_v40, %v9580_v41  ;;  %v5704_v28 = vpop.xlane.xlu1 %5703 }
 0x579   :  { %v3069_v55 = vmul.f32 %v6994_v53, %v9582_v15  ;;  %7003 = vrcp.f32 %v5704_v28  ;;  %v5701_v30 = vpop.xlane.xlu0 %5700 }
 0x57a   :  { %3107 = vst.msk [vmem:[%s9950_s3 + $0x88] sm:$0xff] %vm2791_vm2, %v3071_v13  ;;  %7005 = vrcp.f32 %v5701_v30 }
 0x57b   :  { %v6996_v49 = vpop.eup %6995  ;;  %3106 = vst.msk [vmem:[%s9950_s3 + $0x80] sm:$0xff] %vm2791_vm2, %v3069_v55 }
 0x57c   :  { %v6998_v20 = vpop.eup %6997  ;;  %v5760_v41 = vmul.f32 %v6996_v49, %v9590_v17  ;;  %v3020_v1 = vpop.xlane.xlu1 %3019 }
 0x57d   :  { %v5758_v15 = vmul.f32 %v6998_v20, %v9592_v57  ;;  %7007 = vrcp.f32 %v3020_v1  ;;  %v3017_v54 = vpop.xlane.xlu0 %3016 }
 0x57e   :  { %5848 = vst.msk [vmem:[%s9950_s3 + $0x168] sm:$0xff] %vm2791_vm2, %v5760_v41  ;;  %7009 = vrcp.f32 %v3017_v54 }
 0x57f   :  { %v7000_v21 = vpop.eup %6999  ;;  %5847 = vst.msk [vmem:[%s9950_s3 + $0x160] sm:$0xff] %vm2791_vm2, %v5758_v15 }
 0x580   :  { %v7002_v26 = vpop.eup %7001  ;;  %v3075_v17 = vmul.f32 %v7000_v21, %v9600_v47  ;;  %v5710_v4 = vpop.xlane.xlu1 %5709 }
 0x581   :  { %v3073_v57 = vmul.f32 %v7002_v26, %v9602_v46  ;;  %7011 = vrcp.f32 %v5710_v4  ;;  %v5707_v50 = vpop.xlane.xlu0 %5706 }
 0x582   :  { %3109 = vst.msk [vmem:[%s9950_s3 + $0x98] sm:$0xff] %vm2791_vm2, %v3075_v17  ;;  %7013 = vrcp.f32 %v5707_v50 }
 0x583   :  { %v7004_v44 = vpop.eup %7003  ;;  %3108 = vst.msk [vmem:[%s9950_s3 + $0x90] sm:$0xff] %vm2791_vm2, %v3073_v57 }
 0x584   :  { %v7006_v34 = vpop.eup %7005  ;;  %v5764_v47 = vmul.f32 %v7004_v44, %v9610_v62  ;;  %v3026_v12 = vpop.xlane.xlu1 %3025 }
 0x585   :  { %v5762_v46 = vmul.f32 %v7006_v34, %v9612_v36  ;;  %7015 = vrcp.f32 %v3026_v12  ;;  %v3023_v42 = vpop.xlane.xlu0 %3022 }
 0x586   :  { %5850 = vst.msk [vmem:[%s9950_s3 + $0x178] sm:$0xff] %vm2791_vm2, %v5764_v47  ;;  %7017 = vrcp.f32 %v3023_v42 }
 0x587   :  { %v7008_v59 = vpop.eup %7007  ;;  %5849 = vst.msk [vmem:[%s9950_s3 + $0x170] sm:$0xff] %vm2791_vm2, %v5762_v46 }
 0x588   :  { %v7010_v63 = vpop.eup %7009  ;;  %v3079_v62 = vmul.f32 %v7008_v59, %v9620_v45  ;;  %v5716_v0 = vpop.xlane.xlu1 %5715 }
 0x589   :  { %v3077_v36 = vmul.f32 %v7010_v63, %v9622_v9  ;;  %7019 = vrcp.f32 %v5716_v0  ;;  %v5713_v7 = vpop.xlane.xlu0 %5712 }
 0x58a   :  { %3111 = vst.msk [vmem:[%s9950_s3 + $0xa8] sm:$0xff] %vm2791_vm2, %v3079_v62  ;;  %7021 = vrcp.f32 %v5713_v7 }
 0x58b   :  { %v7012_v60 = vpop.eup %7011  ;;  %3110 = vst.msk [vmem:[%s9950_s3 + $0xa0] sm:$0xff] %vm2791_vm2, %v3077_v36 }
 0x58c   :  { %v7014_v10 = vpop.eup %7013  ;;  %v5768_v45 = vmul.f32 %v7012_v60, %v9630_v6  ;;  %v3032_v8 = vpop.xlane.xlu1 %3031 }
 0x58d   :  { %v5766_v9 = vmul.f32 %v7014_v10, %v9632_v3  ;;  %7023 = vrcp.f32 %v3032_v8  ;;  %v3029_v2 = vpop.xlane.xlu0 %3028 }
 0x58e   :  { %5852 = vst.msk [vmem:[%s9950_s3 + $0x188] sm:$0xff] %vm2791_vm2, %v5768_v45  ;;  %7025 = vrcp.f32 %v3029_v2 }
 0x58f   :  { %v7016_v51 = vpop.eup %7015  ;;  %5851 = vst.msk [vmem:[%s9950_s3 + $0x180] sm:$0xff] %vm2791_vm2, %v5766_v9 }
 0x590   :  { %v7018_v14 = vpop.eup %7017  ;;  %v3083_v6 = vmul.f32 %v7016_v51, %v9639_v43  ;;  %v5722_v27 = vpop.xlane.xlu1 %5721 }
 0x591   :  { %v3081_v3 = vmul.f32 %v7018_v14, %v9642_v61  ;;  %7027 = vrcp.f32 %v5722_v27 }
 0x592   :  { %3113 = vst.msk [vmem:[%s9950_s3 + $0xb8] sm:$0xff] %vm2791_vm2, %v3083_v6 }
 0x593   :  { %v7020_v38 = vpop.eup %7019  ;;  %3112 = vst.msk [vmem:[%s9950_s3 + $0xb0] sm:$0xff] %vm2791_vm2, %v3081_v3 }
 0x594   :  { %v7022_v37 = vpop.eup %7021  ;;  %v5772_v52 = vmul.f32 %v7020_v38, %v9649_v56 }
 0x595   :  { %v3035_v25 = vpop.xlane.xlu0 %3034  ;;  %v5770_v43 = vmul.f32 %v7022_v37, %v9651_v22 }
 0x596   :  { %7029 = vrcp.f32 %v3035_v25  ;;  %5854 = vst.msk [vmem:[%s9950_s3 + $0x198] sm:$0xff] %vm2791_vm2, %v5772_v52 }
 0x597   :  { %v7024_v61 = vpop.eup %7023  ;;  %5853 = vst.msk [vmem:[%s9950_s3 + $0x190] sm:$0xff] %vm2791_vm2, %v5770_v43 }
 0x598   :  { %v7026_v5 = vpop.eup %7025  ;;  %v3087_v23 = vmul.f32 %v7024_v61, %v9657_v39 }
 0x599   :  { %v5719_v24 = vpop.xlane.xlu0 %5718  ;;  %v3085_v56 = vmul.f32 %v7026_v5, %v9659_v33  ;;  %v10774_v33 = vld [vmem:[#allocation22_spill] sm:$0xff] }
 0x59a   :  { %7031 = vrcp.f32 %v5719_v24  ;;  %3115 = vst.msk [vmem:[%s9950_s3 + $0xc8] sm:$0xff] %vm2791_vm2, %v3087_v23 }
 0x59b   :  { %v7028_v22 = vpop.eup %7027  ;;  %3114 = vst.msk [vmem:[%s9950_s3 + $0xc0] sm:$0xff] %vm2791_vm2, %v3085_v56 }
 0x59c   :  { %v5776_v18 = vmul.f32 %v7028_v22, %v9665_v19 }
 0x59e   :  { %5856 = vst.msk [vmem:[%s9950_s3 + $0x1a8] sm:$0x1] %vm2870_vm10, %v5776_v18 }
 0x5a0   :  { %v7030_v39 = vpop.eup %7029 }
 0x5a1   :  { %v3089_v11 = vmul.f32 %v7030_v39, %v10774_v33 }
 0x5a3   :  { %3116 = vst.msk [vmem:[%s9950_s3 + $0xd0] sm:$0x1] %vm2870_vm10, %v3089_v11 }
 0x5a4   :  { %v7032_v29 = vpop.eup %7031 }
 0x5a5   :  { %v5774_v32 = vmul.f32 %v7032_v29, %v10775_v48 }
 0x5a7   :  { %5855 = vst.msk [vmem:[%s9950_s3 + $0x1a0] sm:$0xff] %vm2791_vm2, %v5774_v32 }

</bundles_post_ra>
